<compile_context>
chip_gen: v7x
topology: tpu7x:2x2x1
jax: 0.10.0
libtpu: 0.0.40
codegen_flags: <defaults>
</compile_context>

<pallas_src>
import functools

import jax
import jax.numpy as jnp
from jax.experimental import pallas as pl
from jax.experimental.pallas import tpu as pltpu

LANE = 128
SUBLANE = 8
TM_MAX = 256          # max batch-tile rows
LEAKY_SLOPE = 0.01
BN_EPS = 1e-5

# Row indices inside the packed bias slab (must match prepare_params ordering).
_B_STEM, _B_INCEP = 0, 1
_B_T1, _B_T2, _B_T3, _B_T4, _B_T5, _B_T6, _B_T7 = 2, 3, 4, 5, 6, 7, 8
_B_R1, _B_R2, _B_R3, _B_R4, _B_R5, _B_R6, _B_R7 = 9, 10, 11, 12, 13, 14, 15
_N_BIAS_ROWS = 16


def _round_up(x, m):
    return (x + m - 1) // m * m


# ------------------------------ fused kernel ---------------------------------

def _fused_kernel(pooled_ref, tab_ref, bias_ref, stem_ref, w128_ref, w256_ref,
                  w512_ref, out_ref, *, layout):
    """Whole PricePredictionModel forward for one (TM, ...) batch tile.

    Weight slabs are bf16 (in_features rows stacked, lane-dense columns); all
    layer offsets are static Python ints.  Activations stay f32; only the dot
    inputs are cast to bf16, accumulation is f32 on the MXU.
    """
    o128, o256, o512 = layout["o128"], layout["o256"], layout["o512"]

    def leaky(x):
        # exact for slope in (0, 1); 2 VALU ops instead of cmp+mul+select
        return jnp.maximum(x, LEAKY_SLOPE * x)

    def relu(x):
        return jnp.maximum(x, 0.0)

    def sigmoid(x):
        # exp + approximate reciprocal both run on the EUP slot (no VPU divide).
        return pl.reciprocal(1.0 + jnp.exp(-x), approx=True)

    def bias(row, n):
        return bias_ref[pl.ds(row, 1), pl.ds(0, n)]          # (1, n) f32

    def dense(x, w_ref, off, rows, b_row):
        w = w_ref[pl.ds(off, rows), :]                        # bf16 (rows, n)
        y = jnp.dot(x.astype(jnp.bfloat16), w, preferred_element_type=jnp.float32)
        return y + bias(b_row, w_ref.shape[1])

    # ---------------- image branch (ModifiedInception) ----------------
    # TODO(synk): timm inception_v4 pretrained conv backbone has no clean Pallas
    # equivalent; approximated by GAP (done in the wrapper) + a synthetic linear
    # stem producing the 1536-d features feeding the trainable last_linear.
    pooled = pooled_ref[...]                                  # (TM, CP) f32
    feats = relu(jnp.dot(pooled.astype(jnp.bfloat16), stem_ref[...],
                         preferred_element_type=jnp.float32)
                 + bias(_B_STEM, stem_ref.shape[1]))
    off, rows = o128["incep"]
    image_out = dense(feats, w128_ref, off, rows, _B_INCEP)   # trainable last_linear

    # ---------------- tabular branch (TabularFFNN, eval mode) ----------------
    t = tab_ref[...]                                          # (TM, TP) f32
    off, rows = o256["t1"]; t = leaky(dense(t, w256_ref, off, rows, _B_T1))
    # BatchNorm1d(256) is folded into the t2 weights / bias row (eval mode, exact).
    off, rows = o512["t2"]; t = sigmoid(dense(t, w512_ref, off, rows, _B_T2))
    off, rows = o256["t3"]; t = leaky(dense(t, w256_ref, off, rows, _B_T3))
    off, rows = o256["t4"]; t = leaky(dense(t, w256_ref, off, rows, _B_T4))
    off, rows = o256["t5"]; t = sigmoid(dense(t, w256_ref, off, rows, _B_T5))
    off, rows = o128["t6"]; t = leaky(dense(t, w128_ref, off, rows, _B_T6))
    off, rows = o128["t7"]; tab_out = dense(t, w128_ref, off, rows, _B_T7)

    # ------------- concat-free regression head (eval mode) --------------
    # cat([image_out, tab_out], 1) @ W1 == image_out @ W1_top + tab_out @ W1_bot
    oi, ri = o256["r1i"]
    ot, rt = o256["r1t"]
    r = (jnp.dot(image_out.astype(jnp.bfloat16), w256_ref[pl.ds(oi, ri), :],
                 preferred_element_type=jnp.float32)
         + jnp.dot(tab_out.astype(jnp.bfloat16), w256_ref[pl.ds(ot, rt), :],
                   preferred_element_type=jnp.float32)
         + bias(_B_R1, w256_ref.shape[1]))
    r = leaky(r)                                              # (BN folded) -> LeakyReLU
    off, rows = o512["r2"]; r = leaky(dense(r, w512_ref, off, rows, _B_R2))
    off, rows = o256["r3"]; r = relu(dense(r, w256_ref, off, rows, _B_R3))
    off, rows = o256["r4"]; r = relu(dense(r, w256_ref, off, rows, _B_R4))
    off, rows = o256["r5"]; r = relu(dense(r, w256_ref, off, rows, _B_R5))
    off, rows = o128["r6"]; r = relu(dense(r, w128_ref, off, rows, _B_R6))
    off, rows = o128["r7"]; price = dense(r, w128_ref, off, rows, _B_R7)

    out_ref[...] = price.astype(out_ref.dtype)


# --------------------------- parameter creation -------------------------------

def _init_linear(key, fan_in, fan_out):
    # PyTorch nn.Linear default: U(-1/sqrt(fan_in), +1/sqrt(fan_in)); stored (in, out).
    kw, kb = jax.random.split(key)
    bound = 1.0 / float(fan_in) ** 0.5
    w = jax.random.uniform(kw, (fan_in, fan_out), jnp.float32, -bound, bound)
    b = jax.random.uniform(kb, (fan_out,), jnp.float32, -bound, bound)
    return w, b


def _bn_affine(n, eps=BN_EPS):
    # PyTorch BatchNorm1d defaults: gamma=1, beta=0, running_mean=0, running_var=1.
    # For real checkpoints, compute scale/shift from the actual running stats.
    gamma = jnp.ones((n,), jnp.float32)
    beta = jnp.zeros((n,), jnp.float32)
    mean = jnp.zeros((n,), jnp.float32)
    var = jnp.ones((n,), jnp.float32)
    scale = gamma / jnp.sqrt(var + eps)
    shift = beta - mean * scale
    return scale, shift


def make_params(key, *, image_channels, tabular_data_size,
                inception_out, tabular_out, n_features=1536):
    keys = jax.random.split(key, 16)
    p = {}
    p["stem_w"], p["stem_b"] = _init_linear(keys[0], image_channels, n_features)
    p["incep_w"], p["incep_b"] = _init_linear(keys[1], n_features, inception_out)

    p["t_w1"], p["t_b1"] = _init_linear(keys[2], tabular_data_size, 256)
    p["t_bn_scale"], p["t_bn_shift"] = _bn_affine(256)
    p["t_w2"], p["t_b2"] = _init_linear(keys[3], 256, 512)
    p["t_w3"], p["t_b3"] = _init_linear(keys[4], 512, 256)
    p["t_w4"], p["t_b4"] = _init_linear(keys[5], 256, 256)
    p["t_w5"], p["t_b5"] = _init_linear(keys[6], 256, 256)
    p["t_w6"], p["t_b6"] = _init_linear(keys[7], 256, 64)
    p["t_w7"], p["t_b7"] = _init_linear(keys[8], 64, tabular_out)

    reg_in = inception_out + tabular_out
    p["r_w1"], p["r_b1"] = _init_linear(keys[9], reg_in, 256)
    p["r_bn_scale"], p["r_bn_shift"] = _bn_affine(256)
    p["r_w2"], p["r_b2"] = _init_linear(keys[10], 256, 512)
    p["r_w3"], p["r_b3"] = _init_linear(keys[11], 512, 256)
    p["r_w4"], p["r_b4"] = _init_linear(keys[12], 256, 256)
    p["r_w5"], p["r_b5"] = _init_linear(keys[13], 256, 256)
    p["r_w6"], p["r_b6"] = _init_linear(keys[14], 256, 128)
    p["r_w7"], p["r_b7"] = _init_linear(keys[15], 128, 1)
    return p


def prepare_params(p, *, image_channels, tabular_data_size,
                   inception_out, tabular_out, n_features=1536):
    """Fold BN, split the concat weight, zero-pad to lane multiples, pack weights
    into 3 lane-dense bf16 slabs (+ stem) and all biases into one f32 slab."""
    assert inception_out <= LANE and tabular_out <= LANE

    cp = _round_up(image_channels, LANE)       # padded pooled-image features
    tp = _round_up(tabular_data_size, LANE)    # padded tabular features
    ioutp = LANE                               # padded inception output
    toutp = LANE                               # padded tabular output
    outp = LANE                                # padded scalar price output

    def pad_w(w, rows, cols):
        r, c = w.shape
        return jnp.pad(w, ((0, rows - r), (0, cols - c)))

    # --- fold eval-mode BatchNorm1d affines (exact) ---
    # TabularFFNN: Linear -> LeakyReLU -> BN -> Linear(256,512): fold into FOLLOWING linear.
    t_w2f = p["t_bn_scale"][:, None] * p["t_w2"]
    t_b2f = p["t_b2"] + p["t_bn_shift"] @ p["t_w2"]
    # RegressionModel: Linear -> BN -> LeakyReLU: fold into PRECEDING linear.
    r_w1f = p["r_w1"] * p["r_bn_scale"][None, :]
    r_b1f = p["r_b1"] * p["r_bn_scale"] + p["r_bn_shift"]

    # --- kill the concat: split the first regression weight by input source ---
    r_w1_img = r_w1f[:inception_out, :]
    r_w1_tab = r_w1f[inception_out:, :]

    def pack(parts):
        offs, rows, mats = {}, 0, []
        for name, w in parts:
            offs[name] = (rows, int(w.shape[0]))
            rows += int(w.shape[0])
            mats.append(w)
        return jnp.concatenate(mats, axis=0).astype(jnp.bfloat16), offs

    # One slab per output width (all layer row offsets are multiples of 128).
    w256, o256 = pack([
        ("t1",  pad_w(p["t_w1"], tp, 256)),
        ("t3",  pad_w(p["t_w3"], 512, 256)),
        ("t4",  pad_w(p["t_w4"], 256, 256)),
        ("t5",  pad_w(p["t_w5"], 256, 256)),
        ("r1i", pad_w(r_w1_img, ioutp, 256)),
        ("r1t", pad_w(r_w1_tab, toutp, 256)),
        ("r3",  pad_w(p["r_w3"], 512, 256)),
        ("r4",  pad_w(p["r_w4"], 256, 256)),
        ("r5",  pad_w(p["r_w5"], 256, 256)),
    ])
    w512, o512 = pack([
        ("t2", pad_w(t_w2f, 256, 512)),
        ("r2", pad_w(p["r_w2"], 256, 512)),
    ])
    w128, o128 = pack([
        ("incep", pad_w(p["incep_w"], n_features, ioutp)),
        ("t6",    pad_w(p["t_w6"], 256, LANE)),
        ("t7",    pad_w(p["t_w7"], LANE, toutp)),
        ("r6",    pad_w(p["r_w6"], 256, LANE)),
        ("r7",    pad_w(p["r_w7"], LANE, outp)),
    ])
    stem_w = pad_w(p["stem_w"], cp, n_features).astype(jnp.bfloat16)

    # --- pack every bias into a single lane-dense f32 slab (one operand) ---
    bias_list = [
        p["stem_b"], p["incep_b"],
        p["t_b1"], t_b2f, p["t_b3"], p["t_b4"], p["t_b5"], p["t_b6"], p["t_b7"],
        r_b1f, p["r_b2"], p["r_b3"], p["r_b4"], p["r_b5"], p["r_b6"], p["r_b7"],
    ]
    assert len(bias_list) == _N_BIAS_ROWS and _N_BIAS_ROWS % SUBLANE == 0
    bias_w = _round_up(max(int(b.shape[0]) for b in bias_list), LANE)
    biases = jnp.stack(
        [jnp.pad(b, (0, bias_w - int(b.shape[0]))) for b in bias_list]
    ).astype(jnp.float32)

    arrays = {"stem_w": stem_w, "w128": w128, "w256": w256, "w512": w512,
              "biases": biases}
    layout = {"cp": cp, "tp": tp, "o128": o128, "o256": o256, "o512": o512}
    return arrays, layout


# ------------------------------ forward pass ----------------------------------

def price_prediction_forward(arrays, image_nchw, tabular, *, layout):
    stem_w, w128, w256, w512, biases = (arrays["stem_w"], arrays["w128"],
                                        arrays["w256"], arrays["w512"],
                                        arrays["biases"])
    cp, tp = layout["cp"], layout["tp"]
    outp = LANE

    n = image_nchw.shape[0]

    # Global average pool in XLA (memory-bound; keeps the big image tensor out of
    # kernel VMEM — critical on v7x's 64 MiB for inception-scale inputs).
    pooled = jnp.mean(image_nchw.astype(jnp.float32), axis=(2, 3))     # (n, C)
    tab = tabular.astype(jnp.float32).reshape(n, -1)                   # x.float(); x.view(B,-1)

    # Batch tiling: big tile for MXU M-fill, but >= 2 "parallel" grid steps when
    # the batch allows so v7x's two TensorCores both get work.
    bp0 = _round_up(n, SUBLANE)
    if bp0 >= 2 * SUBLANE:
        tm = min(TM_MAX, _round_up(bp0 // 2, SUBLANE))
    else:
        tm = SUBLANE
    bp = _round_up(bp0, tm)

    pooled = jnp.pad(pooled, ((0, bp - n), (0, cp - pooled.shape[1])))
    tab = jnp.pad(tab, ((0, bp - n), (0, tp - tab.shape[1])))

    grid = (bp // tm,)
    # Weights / biases: whole-array, resident in VMEM once per call (single-buffered,
    # no per-step pipeline bookkeeping for constant operands).
    weight_spec = pl.BlockSpec(memory_space=pltpu.MemorySpace.VMEM)
    in_specs = [
        pl.BlockSpec((tm, cp), lambda i: (i, 0)),     # pooled image features
        pl.BlockSpec((tm, tp), lambda i: (i, 0)),     # tabular features
        weight_spec,                                  # biases (f32)
        weight_spec,                                  # stem  (bf16)
        weight_spec,                                  # w128  (bf16)
        weight_spec,                                  # w256  (bf16)
        weight_spec,                                  # w512  (bf16)
    ]

    kernel = functools.partial(_fused_kernel, layout=layout)

    out = pl.pallas_call(
        kernel,
        out_shape=jax.ShapeDtypeStruct((bp, outp), jnp.float32),
        grid=grid,
        in_specs=in_specs,
        out_specs=pl.BlockSpec((tm, outp), lambda i: (i, 0)),
        compiler_params=pltpu.CompilerParams(
            dimension_semantics=("parallel",),        # batch tiles shard across v7x's 2 TCs
            # Actual footprint: ~2.8 MB bf16 weights (single-buffered) + ~1 MB
            # activation/in/out tiles at TM=256.  48 MiB is a comfortable cap that
            # is safe on v5e (16 MiB scoped default) and below v7x's 64 MiB physical.
            vmem_limit_bytes=48 * 1024 * 1024,
        ),
    )(pooled, tab, biases, stem_w, w128, w256, w512)

    return out[:n, :1]


# ----------------------------------- main --------------------------------------

if __name__ == "__main__":
    key = jax.random.PRNGKey(0)
    k_img, k_tab, k_par = jax.random.split(key, 3)

    # Small shapes consistent with the module's forward signature.
    B, C, H, W = 2, 4, 16, 16          # image_tensor (NCHW)
    TABULAR_SIZE = 8                   # tabular_data_size
    INCEPTION_OUT = 32                 # params['inception_model_output_size']
    TABULAR_OUT = 16                   # params['tabular_ffnn_output_size']

    image = jax.random.normal(k_img, (B, C, H, W), jnp.float32)
    tabular = jax.random.normal(k_tab, (B, TABULAR_SIZE), jnp.float32)

    raw_params = make_params(
        k_par,
        image_channels=C,
        tabular_data_size=TABULAR_SIZE,
        inception_out=INCEPTION_OUT,
        tabular_out=TABULAR_OUT,
    )
    arrays, layout = prepare_params(
        raw_params,
        image_channels=C,
        tabular_data_size=TABULAR_SIZE,
        inception_out=INCEPTION_OUT,
        tabular_out=TABULAR_OUT,
    )

    fwd = jax.jit(functools.partial(price_prediction_forward, layout=layout))
    price = fwd(arrays, image, tabular)
    price = jax.block_until_ready(price)
    assert price.shape == (B, 1), price.shape
    assert bool(jnp.all(jnp.isfinite(price)))
    print("KERNEL_OK")
</pallas_src>

<mosaic_0001>
module attributes {stable_mosaic.version = 11 : i64} {
  func.func @_fused_kernel(%arg0: i32, %arg1: memref<8x128xf32, #tpu.memory_space<vmem>>, %arg2: memref<8x128xf32, #tpu.memory_space<vmem>>, %arg3: memref<16x1536xf32, #tpu.memory_space<vmem>>, %arg4: memref<128x1536xbf16, #tpu.memory_space<vmem>>, %arg5: memref<2304x128xbf16, #tpu.memory_space<vmem>>, %arg6: memref<2432x256xbf16, #tpu.memory_space<vmem>>, %arg7: memref<512x512xbf16, #tpu.memory_space<vmem>>, %arg8: memref<8x128xf32, #tpu.memory_space<vmem>>) attributes {dimension_semantics = [#tpu.dimension_semantics<parallel>], iteration_bounds = array<i64: 1>, scalar_prefetch = 0 : i64, scratch_operands = 0 : i64, tpu.core_type = #tpu.core_type<tc>, window_params = [{transform_indices = @transform_0, window_bounds = array<i64: 8, 128>}, {transform_indices = @transform_1, window_bounds = array<i64: 8, 128>}, {pipeline_mode = #tpu.pipeline_mode<synchronous>, transform_indices = @transform_2, window_bounds = array<i64: 16, 1536>}, {pipeline_mode = #tpu.pipeline_mode<synchronous>, transform_indices = @transform_3, window_bounds = array<i64: 128, 1536>}, {pipeline_mode = #tpu.pipeline_mode<synchronous>, transform_indices = @transform_4, window_bounds = array<i64: 2304, 128>}, {pipeline_mode = #tpu.pipeline_mode<synchronous>, transform_indices = @transform_5, window_bounds = array<i64: 2432, 256>}, {pipeline_mode = #tpu.pipeline_mode<synchronous>, transform_indices = @transform_6, window_bounds = array<i64: 512, 512>}, {transform_indices = @transform_7, window_bounds = array<i64: 8, 128>}]} {
    %c0 = arith.constant 0 : index
    %c0_0 = arith.constant 0 : index
    %0 = vector.load %arg1[%c0, %c0_0] : memref<8x128xf32, #tpu.memory_space<vmem>>, vector<8x128xf32>
    %1 = arith.truncf %0 : vector<8x128xf32> to vector<8x128xbf16>
    %c0_1 = arith.constant 0 : index
    %c0_2 = arith.constant 0 : index
    %2 = vector.load %arg4[%c0_1, %c0_2] : memref<128x1536xbf16, #tpu.memory_space<vmem>>, vector<128x1536xbf16>
    %cst = arith.constant dense<0.000000e+00> : vector<8x1536xf32>
    %3 = tpu.matmul %1, %2, %cst {dimension_numbers = #tpu.dot_dimension_numbers<[1], [0], [0], [1], [0, 0, 1, 1], [], []>} : vector<8x128xbf16>, vector<128x1536xbf16>, vector<8x1536xf32> -> vector<8x1536xf32>
    %c0_3 = arith.constant 0 : index
    %c0_4 = arith.constant 0 : index
    %4 = vector.load %arg3[%c0_3, %c0_4] : memref<16x1536xf32, #tpu.memory_space<vmem>>, vector<1x1536xf32>
    %5 = vector.broadcast %4 : vector<1x1536xf32> to vector<8x1536xf32>
    %6 = arith.addf %3, %5 : vector<8x1536xf32>
    %cst_5 = arith.constant 0.000000e+00 : f32
    %7 = vector.broadcast %cst_5 : f32 to vector<8x1536xf32>
    %8 = arith.maximumf %6, %7 : vector<8x1536xf32>
    %c0_6 = arith.constant 0 : index
    %c0_7 = arith.constant 0 : index
    %9 = vector.load %arg5[%c0_6, %c0_7] : memref<2304x128xbf16, #tpu.memory_space<vmem>>, vector<1536x128xbf16>
    %10 = arith.truncf %8 : vector<8x1536xf32> to vector<8x1536xbf16>
    %cst_8 = arith.constant dense<0.000000e+00> : vector<8x128xf32>
    %11 = tpu.matmul %10, %9, %cst_8 {dimension_numbers = #tpu.dot_dimension_numbers<[1], [0], [0], [1], [0, 0, 1, 1], [], []>} : vector<8x1536xbf16>, vector<1536x128xbf16>, vector<8x128xf32> -> vector<8x128xf32>
    %c1 = arith.constant 1 : index
    %c0_9 = arith.constant 0 : index
    %12 = vector.load %arg3[%c1, %c0_9] : memref<16x1536xf32, #tpu.memory_space<vmem>>, vector<1x128xf32>
    %13 = vector.broadcast %12 : vector<1x128xf32> to vector<8x128xf32>
    %14 = arith.addf %11, %13 : vector<8x128xf32>
    %c0_10 = arith.constant 0 : index
    %c0_11 = arith.constant 0 : index
    %15 = vector.load %arg2[%c0_10, %c0_11] : memref<8x128xf32, #tpu.memory_space<vmem>>, vector<8x128xf32>
    %c0_12 = arith.constant 0 : index
    %c0_13 = arith.constant 0 : index
    %16 = vector.load %arg6[%c0_12, %c0_13] : memref<2432x256xbf16, #tpu.memory_space<vmem>>, vector<128x256xbf16>
    %17 = arith.truncf %15 : vector<8x128xf32> to vector<8x128xbf16>
    %cst_14 = arith.constant dense<0.000000e+00> : vector<8x256xf32>
    %18 = tpu.matmul %17, %16, %cst_14 {dimension_numbers = #tpu.dot_dimension_numbers<[1], [0], [0], [1], [0, 0, 1, 1], [], []>} : vector<8x128xbf16>, vector<128x256xbf16>, vector<8x256xf32> -> vector<8x256xf32>
    %c2 = arith.constant 2 : index
    %c0_15 = arith.constant 0 : index
    %19 = vector.load %arg3[%c2, %c0_15] : memref<16x1536xf32, #tpu.memory_space<vmem>>, vector<1x256xf32>
    %20 = vector.broadcast %19 : vector<1x256xf32> to vector<8x256xf32>
    %21 = arith.addf %18, %20 : vector<8x256xf32>
    %cst_16 = arith.constant 0.00999999977 : f32
    %22 = vector.broadcast %cst_16 : f32 to vector<8x256xf32>
    %23 = arith.mulf %22, %21 : vector<8x256xf32>
    %24 = arith.maximumf %21, %23 : vector<8x256xf32>
    %c0_17 = arith.constant 0 : index
    %c0_18 = arith.constant 0 : index
    %25 = vector.load %arg7[%c0_17, %c0_18] : memref<512x512xbf16, #tpu.memory_space<vmem>>, vector<256x512xbf16>
    %26 = arith.truncf %24 : vector<8x256xf32> to vector<8x256xbf16>
    %cst_19 = arith.constant dense<0.000000e+00> : vector<8x512xf32>
    %27 = tpu.matmul %26, %25, %cst_19 {dimension_numbers = #tpu.dot_dimension_numbers<[1], [0], [0], [1], [0, 0, 1, 1], [], []>} : vector<8x256xbf16>, vector<256x512xbf16>, vector<8x512xf32> -> vector<8x512xf32>
    %c3 = arith.constant 3 : index
    %c0_20 = arith.constant 0 : index
    %28 = vector.load %arg3[%c3, %c0_20] : memref<16x1536xf32, #tpu.memory_space<vmem>>, vector<1x512xf32>
    %29 = vector.broadcast %28 : vector<1x512xf32> to vector<8x512xf32>
    %30 = arith.addf %27, %29 : vector<8x512xf32>
    %cst_21 = arith.constant 0.000000e+00 : f32
    %31 = vector.broadcast %cst_21 : f32 to vector<8x512xf32>
    %32 = arith.subf %31, %30 : vector<8x512xf32>
    %33 = math.exp %32 : vector<8x512xf32>
    %cst_22 = arith.constant 1.000000e+00 : f32
    %34 = vector.broadcast %cst_22 : f32 to vector<8x512xf32>
    %35 = arith.addf %34, %33 : vector<8x512xf32>
    %36 = tpu.reciprocal %35 {approx = true} : vector<8x512xf32> -> vector<8x512xf32>
    %c128 = arith.constant 128 : index
    %c0_23 = arith.constant 0 : index
    %37 = vector.load %arg6[%c128, %c0_23] : memref<2432x256xbf16, #tpu.memory_space<vmem>>, vector<512x256xbf16>
    %38 = arith.truncf %36 : vector<8x512xf32> to vector<8x512xbf16>
    %cst_24 = arith.constant dense<0.000000e+00> : vector<8x256xf32>
    %39 = tpu.matmul %38, %37, %cst_24 {dimension_numbers = #tpu.dot_dimension_numbers<[1], [0], [0], [1], [0, 0, 1, 1], [], []>} : vector<8x512xbf16>, vector<512x256xbf16>, vector<8x256xf32> -> vector<8x256xf32>
    %c4 = arith.constant 4 : index
    %c0_25 = arith.constant 0 : index
    %40 = vector.load %arg3[%c4, %c0_25] : memref<16x1536xf32, #tpu.memory_space<vmem>>, vector<1x256xf32>
    %41 = vector.broadcast %40 : vector<1x256xf32> to vector<8x256xf32>
    %42 = arith.addf %39, %41 : vector<8x256xf32>
    %cst_26 = arith.constant 0.00999999977 : f32
    %43 = vector.broadcast %cst_26 : f32 to vector<8x256xf32>
    %44 = arith.mulf %43, %42 : vector<8x256xf32>
    %45 = arith.maximumf %42, %44 : vector<8x256xf32>
    %c640 = arith.constant 640 : index
    %c0_27 = arith.constant 0 : index
    %46 = vector.load %arg6[%c640, %c0_27] : memref<2432x256xbf16, #tpu.memory_space<vmem>>, vector<256x256xbf16>
    %47 = arith.truncf %45 : vector<8x256xf32> to vector<8x256xbf16>
    %cst_28 = arith.constant dense<0.000000e+00> : vector<8x256xf32>
    %48 = tpu.matmul %47, %46, %cst_28 {dimension_numbers = #tpu.dot_dimension_numbers<[1], [0], [0], [1], [0, 0, 1, 1], [], []>} : vector<8x256xbf16>, vector<256x256xbf16>, vector<8x256xf32> -> vector<8x256xf32>
    %c5 = arith.constant 5 : index
    %c0_29 = arith.constant 0 : index
    %49 = vector.load %arg3[%c5, %c0_29] : memref<16x1536xf32, #tpu.memory_space<vmem>>, vector<1x256xf32>
    %50 = vector.broadcast %49 : vector<1x256xf32> to vector<8x256xf32>
    %51 = arith.addf %48, %50 : vector<8x256xf32>
    %cst_30 = arith.constant 0.00999999977 : f32
    %52 = vector.broadcast %cst_30 : f32 to vector<8x256xf32>
    %53 = arith.mulf %52, %51 : vector<8x256xf32>
    %54 = arith.maximumf %51, %53 : vector<8x256xf32>
    %c896 = arith.constant 896 : index
    %c0_31 = arith.constant 0 : index
    %55 = vector.load %arg6[%c896, %c0_31] : memref<2432x256xbf16, #tpu.memory_space<vmem>>, vector<256x256xbf16>
    %56 = arith.truncf %54 : vector<8x256xf32> to vector<8x256xbf16>
    %cst_32 = arith.constant dense<0.000000e+00> : vector<8x256xf32>
    %57 = tpu.matmul %56, %55, %cst_32 {dimension_numbers = #tpu.dot_dimension_numbers<[1], [0], [0], [1], [0, 0, 1, 1], [], []>} : vector<8x256xbf16>, vector<256x256xbf16>, vector<8x256xf32> -> vector<8x256xf32>
    %c6 = arith.constant 6 : index
    %c0_33 = arith.constant 0 : index
    %58 = vector.load %arg3[%c6, %c0_33] : memref<16x1536xf32, #tpu.memory_space<vmem>>, vector<1x256xf32>
    %59 = vector.broadcast %58 : vector<1x256xf32> to vector<8x256xf32>
    %60 = arith.addf %57, %59 : vector<8x256xf32>
    %cst_34 = arith.constant 0.000000e+00 : f32
    %61 = vector.broadcast %cst_34 : f32 to vector<8x256xf32>
    %62 = arith.subf %61, %60 : vector<8x256xf32>
    %63 = math.exp %62 : vector<8x256xf32>
    %cst_35 = arith.constant 1.000000e+00 : f32
    %64 = vector.broadcast %cst_35 : f32 to vector<8x256xf32>
    %65 = arith.addf %64, %63 : vector<8x256xf32>
    %66 = tpu.reciprocal %65 {approx = true} : vector<8x256xf32> -> vector<8x256xf32>
    %c1536 = arith.constant 1536 : index
    %c0_36 = arith.constant 0 : index
    %67 = vector.load %arg5[%c1536, %c0_36] : memref<2304x128xbf16, #tpu.memory_space<vmem>>, vector<256x128xbf16>
    %68 = arith.truncf %66 : vector<8x256xf32> to vector<8x256xbf16>
    %cst_37 = arith.constant dense<0.000000e+00> : vector<8x128xf32>
    %69 = tpu.matmul %68, %67, %cst_37 {dimension_numbers = #tpu.dot_dimension_numbers<[1], [0], [0], [1], [0, 0, 1, 1], [], []>} : vector<8x256xbf16>, vector<256x128xbf16>, vector<8x128xf32> -> vector<8x128xf32>
    %c7 = arith.constant 7 : index
    %c0_38 = arith.constant 0 : index
    %70 = vector.load %arg3[%c7, %c0_38] : memref<16x1536xf32, #tpu.memory_space<vmem>>, vector<1x128xf32>
    %71 = vector.broadcast %70 : vector<1x128xf32> to vector<8x128xf32>
    %72 = arith.addf %69, %71 : vector<8x128xf32>
    %cst_39 = arith.constant 0.00999999977 : f32
    %73 = vector.broadcast %cst_39 : f32 to vector<8x128xf32>
    %74 = arith.mulf %73, %72 : vector<8x128xf32>
    %75 = arith.maximumf %72, %74 : vector<8x128xf32>
    %c1792 = arith.constant 1792 : index
    %c0_40 = arith.constant 0 : index
    %76 = vector.load %arg5[%c1792, %c0_40] : memref<2304x128xbf16, #tpu.memory_space<vmem>>, vector<128x128xbf16>
    %77 = arith.truncf %75 : vector<8x128xf32> to vector<8x128xbf16>
    %cst_41 = arith.constant dense<0.000000e+00> : vector<8x128xf32>
    %78 = tpu.matmul %77, %76, %cst_41 {dimension_numbers = #tpu.dot_dimension_numbers<[1], [0], [0], [1], [0, 0, 1, 1], [], []>} : vector<8x128xbf16>, vector<128x128xbf16>, vector<8x128xf32> -> vector<8x128xf32>
    %c8 = arith.constant 8 : index
    %c0_42 = arith.constant 0 : index
    %79 = vector.load %arg3[%c8, %c0_42] : memref<16x1536xf32, #tpu.memory_space<vmem>>, vector<1x128xf32>
    %80 = vector.broadcast %79 : vector<1x128xf32> to vector<8x128xf32>
    %81 = arith.addf %78, %80 : vector<8x128xf32>
    %82 = arith.truncf %14 : vector<8x128xf32> to vector<8x128xbf16>
    %c1152 = arith.constant 1152 : index
    %c0_43 = arith.constant 0 : index
    %83 = vector.load %arg6[%c1152, %c0_43] : memref<2432x256xbf16, #tpu.memory_space<vmem>>, vector<128x256xbf16>
    %cst_44 = arith.constant dense<0.000000e+00> : vector<8x256xf32>
    %84 = tpu.matmul %82, %83, %cst_44 {dimension_numbers = #tpu.dot_dimension_numbers<[1], [0], [0], [1], [0, 0, 1, 1], [], []>} : vector<8x128xbf16>, vector<128x256xbf16>, vector<8x256xf32> -> vector<8x256xf32>
    %85 = arith.truncf %81 : vector<8x128xf32> to vector<8x128xbf16>
    %c1280 = arith.constant 1280 : index
    %c0_45 = arith.constant 0 : index
    %86 = vector.load %arg6[%c1280, %c0_45] : memref<2432x256xbf16, #tpu.memory_space<vmem>>, vector<128x256xbf16>
    %cst_46 = arith.constant dense<0.000000e+00> : vector<8x256xf32>
    %87 = tpu.matmul %85, %86, %cst_46 {dimension_numbers = #tpu.dot_dimension_numbers<[1], [0], [0], [1], [0, 0, 1, 1], [], []>} : vector<8x128xbf16>, vector<128x256xbf16>, vector<8x256xf32> -> vector<8x256xf32>
    %88 = arith.addf %84, %87 : vector<8x256xf32>
    %c9 = arith.constant 9 : index
    %c0_47 = arith.constant 0 : index
    %89 = vector.load %arg3[%c9, %c0_47] : memref<16x1536xf32, #tpu.memory_space<vmem>>, vector<1x256xf32>
    %90 = vector.broadcast %89 : vector<1x256xf32> to vector<8x256xf32>
    %91 = arith.addf %88, %90 : vector<8x256xf32>
    %cst_48 = arith.constant 0.00999999977 : f32
    %92 = vector.broadcast %cst_48 : f32 to vector<8x256xf32>
    %93 = arith.mulf %92, %91 : vector<8x256xf32>
    %94 = arith.maximumf %91, %93 : vector<8x256xf32>
    %c256 = arith.constant 256 : index
    %c0_49 = arith.constant 0 : index
    %95 = vector.load %arg7[%c256, %c0_49] : memref<512x512xbf16, #tpu.memory_space<vmem>>, vector<256x512xbf16>
    %96 = arith.truncf %94 : vector<8x256xf32> to vector<8x256xbf16>
    %cst_50 = arith.constant dense<0.000000e+00> : vector<8x512xf32>
    %97 = tpu.matmul %96, %95, %cst_50 {dimension_numbers = #tpu.dot_dimension_numbers<[1], [0], [0], [1], [0, 0, 1, 1], [], []>} : vector<8x256xbf16>, vector<256x512xbf16>, vector<8x512xf32> -> vector<8x512xf32>
    %c10 = arith.constant 10 : index
    %c0_51 = arith.constant 0 : index
    %98 = vector.load %arg3[%c10, %c0_51] : memref<16x1536xf32, #tpu.memory_space<vmem>>, vector<1x512xf32>
    %99 = vector.broadcast %98 : vector<1x512xf32> to vector<8x512xf32>
    %100 = arith.addf %97, %99 : vector<8x512xf32>
    %cst_52 = arith.constant 0.00999999977 : f32
    %101 = vector.broadcast %cst_52 : f32 to vector<8x512xf32>
    %102 = arith.mulf %101, %100 : vector<8x512xf32>
    %103 = arith.maximumf %100, %102 : vector<8x512xf32>
    %c1408 = arith.constant 1408 : index
    %c0_53 = arith.constant 0 : index
    %104 = vector.load %arg6[%c1408, %c0_53] : memref<2432x256xbf16, #tpu.memory_space<vmem>>, vector<512x256xbf16>
    %105 = arith.truncf %103 : vector<8x512xf32> to vector<8x512xbf16>
    %cst_54 = arith.constant dense<0.000000e+00> : vector<8x256xf32>
    %106 = tpu.matmul %105, %104, %cst_54 {dimension_numbers = #tpu.dot_dimension_numbers<[1], [0], [0], [1], [0, 0, 1, 1], [], []>} : vector<8x512xbf16>, vector<512x256xbf16>, vector<8x256xf32> -> vector<8x256xf32>
    %c11 = arith.constant 11 : index
    %c0_55 = arith.constant 0 : index
    %107 = vector.load %arg3[%c11, %c0_55] : memref<16x1536xf32, #tpu.memory_space<vmem>>, vector<1x256xf32>
    %108 = vector.broadcast %107 : vector<1x256xf32> to vector<8x256xf32>
    %109 = arith.addf %106, %108 : vector<8x256xf32>
    %cst_56 = arith.constant 0.000000e+00 : f32
    %110 = vector.broadcast %cst_56 : f32 to vector<8x256xf32>
    %111 = arith.maximumf %109, %110 : vector<8x256xf32>
    %c1920 = arith.constant 1920 : index
    %c0_57 = arith.constant 0 : index
    %112 = vector.load %arg6[%c1920, %c0_57] : memref<2432x256xbf16, #tpu.memory_space<vmem>>, vector<256x256xbf16>
    %113 = arith.truncf %111 : vector<8x256xf32> to vector<8x256xbf16>
    %cst_58 = arith.constant dense<0.000000e+00> : vector<8x256xf32>
    %114 = tpu.matmul %113, %112, %cst_58 {dimension_numbers = #tpu.dot_dimension_numbers<[1], [0], [0], [1], [0, 0, 1, 1], [], []>} : vector<8x256xbf16>, vector<256x256xbf16>, vector<8x256xf32> -> vector<8x256xf32>
    %c12 = arith.constant 12 : index
    %c0_59 = arith.constant 0 : index
    %115 = vector.load %arg3[%c12, %c0_59] : memref<16x1536xf32, #tpu.memory_space<vmem>>, vector<1x256xf32>
    %116 = vector.broadcast %115 : vector<1x256xf32> to vector<8x256xf32>
    %117 = arith.addf %114, %116 : vector<8x256xf32>
    %cst_60 = arith.constant 0.000000e+00 : f32
    %118 = vector.broadcast %cst_60 : f32 to vector<8x256xf32>
    %119 = arith.maximumf %117, %118 : vector<8x256xf32>
    %c2176 = arith.constant 2176 : index
    %c0_61 = arith.constant 0 : index
    %120 = vector.load %arg6[%c2176, %c0_61] : memref<2432x256xbf16, #tpu.memory_space<vmem>>, vector<256x256xbf16>
    %121 = arith.truncf %119 : vector<8x256xf32> to vector<8x256xbf16>
    %cst_62 = arith.constant dense<0.000000e+00> : vector<8x256xf32>
    %122 = tpu.matmul %121, %120, %cst_62 {dimension_numbers = #tpu.dot_dimension_numbers<[1], [0], [0], [1], [0, 0, 1, 1], [], []>} : vector<8x256xbf16>, vector<256x256xbf16>, vector<8x256xf32> -> vector<8x256xf32>
    %c13 = arith.constant 13 : index
    %c0_63 = arith.constant 0 : index
    %123 = vector.load %arg3[%c13, %c0_63] : memref<16x1536xf32, #tpu.memory_space<vmem>>, vector<1x256xf32>
    %124 = vector.broadcast %123 : vector<1x256xf32> to vector<8x256xf32>
    %125 = arith.addf %122, %124 : vector<8x256xf32>
    %cst_64 = arith.constant 0.000000e+00 : f32
    %126 = vector.broadcast %cst_64 : f32 to vector<8x256xf32>
    %127 = arith.maximumf %125, %126 : vector<8x256xf32>
    %c1920_65 = arith.constant 1920 : index
    %c0_66 = arith.constant 0 : index
    %128 = vector.load %arg5[%c1920_65, %c0_66] : memref<2304x128xbf16, #tpu.memory_space<vmem>>, vector<256x128xbf16>
    %129 = arith.truncf %127 : vector<8x256xf32> to vector<8x256xbf16>
    %cst_67 = arith.constant dense<0.000000e+00> : vector<8x128xf32>
    %130 = tpu.matmul %129, %128, %cst_67 {dimension_numbers = #tpu.dot_dimension_numbers<[1], [0], [0], [1], [0, 0, 1, 1], [], []>} : vector<8x256xbf16>, vector<256x128xbf16>, vector<8x128xf32> -> vector<8x128xf32>
    %c14 = arith.constant 14 : index
    %c0_68 = arith.constant 0 : index
    %131 = vector.load %arg3[%c14, %c0_68] : memref<16x1536xf32, #tpu.memory_space<vmem>>, vector<1x128xf32>
    %132 = vector.broadcast %131 : vector<1x128xf32> to vector<8x128xf32>
    %133 = arith.addf %130, %132 : vector<8x128xf32>
    %cst_69 = arith.constant 0.000000e+00 : f32
    %134 = vector.broadcast %cst_69 : f32 to vector<8x128xf32>
    %135 = arith.maximumf %133, %134 : vector<8x128xf32>
    %c2176_70 = arith.constant 2176 : index
    %c0_71 = arith.constant 0 : index
    %136 = vector.load %arg5[%c2176_70, %c0_71] : memref<2304x128xbf16, #tpu.memory_space<vmem>>, vector<128x128xbf16>
    %137 = arith.truncf %135 : vector<8x128xf32> to vector<8x128xbf16>
    %cst_72 = arith.constant dense<0.000000e+00> : vector<8x128xf32>
    %138 = tpu.matmul %137, %136, %cst_72 {dimension_numbers = #tpu.dot_dimension_numbers<[1], [0], [0], [1], [0, 0, 1, 1], [], []>} : vector<8x128xbf16>, vector<128x128xbf16>, vector<8x128xf32> -> vector<8x128xf32>
    %c15 = arith.constant 15 : index
    %c0_73 = arith.constant 0 : index
    %139 = vector.load %arg3[%c15, %c0_73] : memref<16x1536xf32, #tpu.memory_space<vmem>>, vector<1x128xf32>
    %140 = vector.broadcast %139 : vector<1x128xf32> to vector<8x128xf32>
    %141 = arith.addf %138, %140 : vector<8x128xf32>
    %c0_74 = arith.constant 0 : index
    %c0_75 = arith.constant 0 : index
    %142 = vector.load %arg8[%c0_74, %c0_75] : memref<8x128xf32, #tpu.memory_space<vmem>>, vector<8x128xf32>
    tpu.vector_store %arg8[%c0_74, %c0_75], %141 {strides = array<i32>} : memref<8x128xf32, #tpu.memory_space<vmem>>, vector<8x128xf32>,
    return
  }
  func.func @transform_0(%arg0: i32) -> (i32, i32) {
    %c0_i32 = arith.constant 0 : i32
    %c0_i32_0 = arith.constant 0 : i32
    return %arg0, %c0_i32 : i32, i32
  }
  func.func @transform_1(%arg0: i32) -> (i32, i32) {
    %c0_i32 = arith.constant 0 : i32
    %c0_i32_0 = arith.constant 0 : i32
    return %arg0, %c0_i32 : i32, i32
  }
  func.func @transform_2(%arg0: i32) -> (i32, i32) {
    %c0_i32 = arith.constant 0 : i32
    %c0_i32_0 = arith.constant 0 : i32
    %c0_i32_1 = arith.constant 0 : i32
    return %c0_i32, %c0_i32_0 : i32, i32
  }
  func.func @transform_3(%arg0: i32) -> (i32, i32) {
    %c0_i32 = arith.constant 0 : i32
    %c0_i32_0 = arith.constant 0 : i32
    %c0_i32_1 = arith.constant 0 : i32
    return %c0_i32, %c0_i32_0 : i32, i32
  }
  func.func @transform_4(%arg0: i32) -> (i32, i32) {
    %c0_i32 = arith.constant 0 : i32
    %c0_i32_0 = arith.constant 0 : i32
    %c0_i32_1 = arith.constant 0 : i32
    return %c0_i32, %c0_i32_0 : i32, i32
  }
  func.func @transform_5(%arg0: i32) -> (i32, i32) {
    %c0_i32 = arith.constant 0 : i32
    %c0_i32_0 = arith.constant 0 : i32
    %c0_i32_1 = arith.constant 0 : i32
    return %c0_i32, %c0_i32_0 : i32, i32
  }
  func.func @transform_6(%arg0: i32) -> (i32, i32) {
    %c0_i32 = arith.constant 0 : i32
    %c0_i32_0 = arith.constant 0 : i32
    %c0_i32_1 = arith.constant 0 : i32
    return %c0_i32, %c0_i32_0 : i32, i32
  }
  func.func @transform_7(%arg0: i32) -> (i32, i32) {
    %c0_i32 = arith.constant 0 : i32
    %c0_i32_0 = arith.constant 0 : i32
    return %arg0, %c0_i32 : i32, i32
  }
}

</mosaic_0001>

<bundles_post_ra>
// kernel: price_prediction_forward.1
= control target key start
LH: loop header
LB: loop body
LE: loop exit
PB: predicated region body
PF: predicated region fallthrough
CT: control target
= control target key end

     0   :  { %12 = vsyncpa [#allocation3], 0  ;;  %s8285_s0 = inlined_call_operand.vmem [shape: f32[8,128], index: 0, kind: input, shape index: {}]   ;;  %s8286_s1 = inlined_call_operand.vmem [shape: f32[8,128], index: 1, kind: input, shape index: {}]   ;;  %s8287_s2 = inlined_call_operand.hbm [shape: f32[16,1536], index: 2, kind: input, shape index: {}]   ;;  %s8288_s3 = inlined_call_operand.hbm [shape: bf16[128,1536], index: 3, kind: input, shape index: {}]   ;;  %s8289_s4 = inlined_call_operand.hbm [shape: bf16[2304,128], index: 4, kind: input, shape index: {}]   ;;  %s8290_s5 = inlined_call_operand.hbm [shape: bf16[2432,256], index: 5, kind: input, shape index: {}]   ;;  %s8291_s6 = inlined_call_operand.hbm [shape: bf16[512,512], index: 6, kind: input, shape index: {}]   ;;  %s8292_s7 = inlined_call_operand.vmem [shape: f32[8,128], index: 7, kind: output, shape index: {}]  }
   0x1   :  { %13 = vsyncpa [#allocation5], 0 }
   0x2   :  { %14 = vsyncpa [#allocation8], 0  ;;  %s8039_s24 = smov [#allocation4]   ;;  %s7923_s28 = scalar_lea.hbm %s8288_s3, 12288 }
   0x3   :  { %s36_s25 = sshll.u32 %s8039_s24, 4  ;;  %p7924_p0 = scmp.ne.s32.totalorder %s8288_s3, %s7923_s28  ;;  %s37_s25 = int_to_ptr.vmem [resolvable:$true] %s36_s25 }
   0x4   :  { %p7927_p1 = scmp.lt.u32.totalorder %s7923_s28, %s8288_s3 }
   0x6   :  { %p7929_p2 = pnand %p7927_p1, %p7924_p0 }
   0x8   :  { %7932 = shalt.err (!%p7929_p2)
}
   0x9   :  { %s7933_s10 = scalar_lea.vmem %s37_s25, 12288  ;;  %p7938_p4 = scmp.lt.s32.totalorder %s37_s25, %s37_s25 }
   0xa   :  { %p7934_p3 = scmp.ne.s32.totalorder %s37_s25, %s7933_s10  ;;  %p7939_p5 = scmp.lt.s32.totalorder %s7933_s10, %s7933_s10 }
   0xc   :  { %p7940_p6 = por %p7939_p5, %p7938_p4 }
   0xe   :  { %p7941_p7 = pnand %p7940_p6, %p7934_p3 }
  0x10   :  { %7944 = shalt.err (!%p7941_p7)
}
  0x11   :  { %s8040_s11 = smov 768   ;;  %s8041_s12 = smov 48  }
  0x12   :  { %42 = dma.hbm_to_vmem [thread:$0]  %s8288_s3, 12288, %s37_s25, [#allocation5], %s8040_s11, %s8040_s11, %s8041_s12  }
  0x13   :  { %s8042_s15 = smov [#allocation7]   ;;  %s7945_s19 = scalar_lea.hbm %s8290_s5, 38912 }
  0x14   :  { %s60_s16 = sshll.u32 %s8042_s15, 4  ;;  %p7946_p8 = scmp.ne.s32.totalorder %s8290_s5, %s7945_s19  ;;  %s61_s16 = int_to_ptr.vmem [resolvable:$true] %s60_s16 }
  0x15   :  { %p7949_p9 = scmp.lt.u32.totalorder %s7945_s19, %s8290_s5 }
  0x17   :  { %p7951_p10 = pnand %p7949_p9, %p7946_p8 }
  0x19   :  { %7954 = shalt.err (!%p7951_p10)
}
  0x1a   :  { %s7955_s24 = scalar_lea.vmem %s61_s16, 38912  ;;  %p7960_p12 = scmp.lt.s32.totalorder %s61_s16, %s61_s16 }
  0x1b   :  { %p7956_p11 = scmp.ne.s32.totalorder %s61_s16, %s7955_s24  ;;  %p7961_p13 = scmp.lt.s32.totalorder %s7955_s24, %s7955_s24 }
  0x1d   :  { %p7962_p0 = por %p7961_p13, %p7960_p12 }
  0x1f   :  { %p7963_p1 = pnand %p7962_p0, %p7956_p11 }
  0x21   :  { %7966 = shalt.err (!%p7963_p1)
}
  0x22   :  { %s8043_s3 = smov 128   ;;  %s8044_s25 = smov 8  }
  0x23   :  { %66 = dma.hbm_to_vmem [thread:$0]  %s8290_s5, 38912, %s61_s16, [#allocation8], %s8043_s3, %s8043_s3, %s8044_s25  }
  0x24   :  { %s8045_s28 = smov [#allocation2]   ;;  %s7967_s9 = scalar_lea.hbm %s8287_s2, 3072 }
  0x25   :  { %s24_s29 = sshll.u32 %s8045_s28, 4  ;;  %p7968_p2 = scmp.ne.s32.totalorder %s8287_s2, %s7967_s9  ;;  %s25_s29 = int_to_ptr.vmem [resolvable:$true] %s24_s29 }
  0x26   :  { %p7971_p3 = scmp.lt.u32.totalorder %s7967_s9, %s8287_s2 }
  0x28   :  { %p7973_p4 = pnand %p7971_p3, %p7968_p2 }
  0x2a   :  { %7976 = shalt.err (!%p7973_p4)
}
  0x2b   :  { %s7977_s14 = scalar_lea.vmem %s25_s29, 3072  ;;  %p7982_p6 = scmp.lt.s32.totalorder %s25_s29, %s25_s29 }
  0x2c   :  { %p7978_p5 = scmp.ne.s32.totalorder %s25_s29, %s7977_s14  ;;  %p7983_p7 = scmp.lt.s32.totalorder %s7977_s14, %s7977_s14 }
  0x2e   :  { %p7984_p8 = por %p7983_p7, %p7982_p6 }
  0x30   :  { %p7985_p9 = pnand %p7984_p8, %p7978_p5 }
  0x32   :  { %7988 = shalt.err (!%p7985_p9)
}
  0x33   :  { %s8046_s5 = smov 1536   ;;  %s8047_s15 = smov 96  }
  0x34   :  { %30 = dma.hbm_to_vmem [thread:$0]  %s8287_s2, 3072, %s25_s29, [#allocation3], %s8046_s5, %s8046_s5, %s8047_s15  }
  0x35   :  { %s8048_s18 = smov [#allocation6]   ;;  %s7989_s22 = scalar_lea.hbm %s8289_s4, 18432 }
  0x36   :  { %s48_s19 = sshll.u32 %s8048_s18, 4  ;;  %p7990_p10 = scmp.ne.s32.totalorder %s8289_s4, %s7989_s22  ;;  %s49_s19 = int_to_ptr.vmem [resolvable:$true] %s48_s19 }
  0x37   :  { %p7993_p11 = scmp.lt.u32.totalorder %s7989_s22, %s8289_s4 }
  0x39   :  { %p7995_p12 = pnand %p7993_p11, %p7990_p10 }
  0x3b   :  { %7998 = shalt.err (!%p7995_p12)
}
  0x3c   :  { %s7999_s26 = scalar_lea.vmem %s49_s19, 18432  ;;  %p8004_p0 = scmp.lt.s32.totalorder %s49_s19, %s49_s19 }
  0x3d   :  { %p8000_p13 = scmp.ne.s32.totalorder %s49_s19, %s7999_s26  ;;  %p8005_p1 = scmp.lt.s32.totalorder %s7999_s26, %s7999_s26 }
  0x3f   :  { %p8006_p2 = por %p8005_p1, %p8004_p0 }
  0x41   :  { %p8007_p3 = pnand %p8006_p2, %p8000_p13 }
  0x43   :  { %8010 = shalt.err (!%p8007_p3)
}
  0x44   :  { %s8049_s2 = smov 64   ;;  %s8050_s27 = smov 4  }
  0x45   :  { %54 = dma.hbm_to_vmem [thread:$0]  %s8289_s4, 18432, %s49_s19, [#allocation5], %s8049_s2, %s8049_s2, %s8050_s27  }
  0x46   :  { %s8051_s30 = smov [#allocation9]   ;;  %s8011_s11 = scalar_lea.hbm %s8291_s6, 16384 }
  0x47   :  { %s72_s8 = sshll.u32 %s8051_s30, 4  ;;  %p8012_p4 = scmp.ne.s32.totalorder %s8291_s6, %s8011_s11  ;;  %s73_s8 = int_to_ptr.vmem [resolvable:$true] %s72_s8 }
  0x48   :  { %p8015_p5 = scmp.lt.u32.totalorder %s8011_s11, %s8291_s6 }
  0x4a   :  { %p8017_p6 = pnand %p8015_p5, %p8012_p4 }
  0x4c   :  { %8020 = shalt.err (!%p8017_p6)
}
  0x4d   :  { %s8021_s15 = scalar_lea.vmem %s73_s8, 16384  ;;  %p8026_p8 = scmp.lt.s32.totalorder %s73_s8, %s73_s8 }
  0x4e   :  { %p8022_p7 = scmp.ne.s32.totalorder %s73_s8, %s8021_s15  ;;  %p8027_p9 = scmp.lt.s32.totalorder %s8021_s15, %s8021_s15 }
  0x50   :  { %p8028_p10 = por %p8027_p9, %p8026_p8 }
  0x52   :  { %p8029_p11 = pnand %p8028_p10, %p8022_p7 }
  0x54   :  { %8032 = shalt.err (!%p8029_p11)
}
  0x55   :  { %s8052_s4 = smov 256   ;;  %s8053_s16 = smov 16  }
  0x56   :  { %78 = dma.hbm_to_vmem [thread:$0]  %s8291_s6, 16384, %s73_s8, [#allocation8], %s8052_s4, %s8052_s4, %s8053_s16  }
  0x57   :  { %8033 = dma.done.wait [#allocation3], 3072  }
  0x58   :  { %8034 = vsyncadd [#allocation3], 4294964224 }
  0x59   :  { %8035 = dma.done.wait [#allocation5], 30720  }
  0x5a   :  { %8036 = vsyncadd [#allocation5], 4294936576 }
  0x5b   :  { %8037 = dma.done.wait [#allocation8], 55296  }
  0x5c   :  { %8038 = vsyncadd [#allocation8], 4294912000  ;;  %v8054_v0 = vmov 0   ;;  %v6963_v1 = vld [vmem:[#allocation4 + $0x4] ss:$48 sps:$4 sm:$0xff]   ;;  %vm8056_vm0 = vmmov 0  }
  0x5d   :  { %772 = vmatprep.mubr.bf16.mxu0 %v8054_v0  ;;  %813 = vmatprep.mubr.bf16.mxu1 %v8054_v0  ;;  %v6965_v2 = vld [vmem:[#allocation4] ss:$48 sps:$4 sm:$0xff]   ;;  %v6966_v3 = vld [vmem:[#allocation4 + $0xc] ss:$48 sps:$4 sm:$0xff]   ;;  %v6968_v4 = vld [vmem:[#allocation4 + $0x8] ss:$48 sps:$4 sm:$0xff]  }
  0x5e   :  { %740 = vmatprep.subr.bf16.mxu0 %v6963_v1  ;;  %v6969_v5 = vld [vmem:[#allocation4 + $0x64] ss:$48 sps:$4 sm:$0xff]   ;;  %v6971_v6 = vld [vmem:[#allocation4 + $0x60] ss:$48 sps:$4 sm:$0xff]   ;;  %781 = vmatprep.subr.bf16.mxu1 %v6966_v3  ;;  %v6972_v7 = vld [vmem:[#allocation4 + $0x6c] ss:$48 sps:$4 sm:$0xff]  }
  0x5f   :  { %741 = vmatpush1.bf16.msra.mxu0 %v6965_v2  ;;  %782 = vmatpush1.bf16.msra.mxu1 %v6968_v4  ;;  %v6974_v8 = vld [vmem:[#allocation4 + $0x68] ss:$48 sps:$4 sm:$0xff]   ;;  %v6975_v9 = vld [vmem:[#allocation4 + $0xc4] ss:$48 sps:$4 sm:$0xff]   ;;  %v6977_v10 = vld [vmem:[#allocation4 + $0xc0] ss:$48 sps:$4 sm:$0xff]  }
  0x60   :  { %742 = vmatprep.subr.bf16.mxu0 %v6969_v5  ;;  %783 = vmatprep.subr.bf16.mxu1 %v6972_v7  ;;  %v6978_v11 = vld [vmem:[#allocation4 + $0xcc] ss:$48 sps:$4 sm:$0xff]   ;;  %v6981_v12 = vld [vmem:[#allocation4 + $0x124] ss:$48 sps:$4 sm:$0xff]   ;;  %v6980_v13 = vld [vmem:[#allocation4 + $0xc8] ss:$48 sps:$4 sm:$0xff]  }
  0x61   :  { %v6984_v14 = vld [vmem:[#allocation4 + $0x12c] ss:$48 sps:$4 sm:$0xff]   ;;  %v6983_v15 = vld [vmem:[#allocation4 + $0x120] ss:$48 sps:$4 sm:$0xff]   ;;  %v6987_v16 = vld [vmem:[#allocation4 + $0x184] ss:$48 sps:$4 sm:$0xff]  }
  0x62   :  { %v6986_v17 = vld [vmem:[#allocation4 + $0x128] ss:$48 sps:$4 sm:$0xff]   ;;  %v6990_v18 = vld [vmem:[#allocation4 + $0x18c] ss:$48 sps:$4 sm:$0xff]   ;;  %v6989_v19 = vld [vmem:[#allocation4 + $0x180] ss:$48 sps:$4 sm:$0xff]  }
  0x63   :  { %743 = vmatpush1.bf16.msra.mxu0 %v6971_v6  ;;  %784 = vmatpush1.bf16.msra.mxu1 %v6974_v8  ;;  %v6993_v20 = vld [vmem:[#allocation4 + $0x1e4] ss:$48 sps:$4 sm:$0xff]   ;;  %v6992_v21 = vld [vmem:[#allocation4 + $0x188] ss:$48 sps:$4 sm:$0xff]   ;;  %v6996_v22 = vld [vmem:[#allocation4 + $0x1ec] ss:$48 sps:$4 sm:$0xff]  }
  0x64   :  { %744 = vmatprep.subr.bf16.mxu0 %v6975_v9  ;;  %785 = vmatprep.subr.bf16.mxu1 %v6978_v11  ;;  %v6995_v23 = vld [vmem:[#allocation4 + $0x1e0] ss:$48 sps:$4 sm:$0xff]   ;;  %v6999_v24 = vld [vmem:[#allocation4 + $0x244] ss:$48 sps:$4 sm:$0xff]   ;;  %v6998_v25 = vld [vmem:[#allocation4 + $0x1e8] ss:$48 sps:$4 sm:$0xff]  }
  0x65   :  { %v7002_v26 = vld [vmem:[#allocation4 + $0x24c] ss:$48 sps:$4 sm:$0xff]   ;;  %v7001_v27 = vld [vmem:[#allocation4 + $0x240] ss:$48 sps:$4 sm:$0xff]   ;;  %v7005_v28 = vld [vmem:[#allocation4 + $0x2a4] ss:$48 sps:$4 sm:$0xff]  }
  0x66   :  { %v7004_v29 = vld [vmem:[#allocation4 + $0x248] ss:$48 sps:$4 sm:$0xff]   ;;  %v7007_v30 = vld [vmem:[#allocation4 + $0x2a0] ss:$48 sps:$4 sm:$0xff]   ;;  %v7008_v31 = vld [vmem:[#allocation4 + $0x2ac] ss:$48 sps:$4 sm:$0xff]  }
  0x67   :  { %745 = vmatpush1.bf16.msra.mxu0 %v6977_v10  ;;  %786 = vmatpush1.bf16.msra.mxu1 %v6980_v13  ;;  %v95_v32 = vld [vmem:[%s8285_s0] sm:$0xff]  ;;  %v7010_v34 = vld [vmem:[#allocation4 + $0x2a8] ss:$48 sps:$4 sm:$0xff]   ;;  %v7016_v36 = vld [vmem:[#allocation4 + $0x1c] ss:$48 sps:$4 sm:$0xff]  }
  0x68   :  { %746 = vmatprep.subr.bf16.mxu0 %v6981_v12  ;;  %787 = vmatprep.subr.bf16.mxu1 %v6984_v14  ;;  %v7013_v33 = vld [vmem:[#allocation4 + $0x14] ss:$48 sps:$4 sm:$0xff]   ;;  %v8162_v35 = vpack.c.bf16 %v95_v32, %v95_v32  ;;  %v7011_v37 = vld [vmem:[#allocation4 + $0x10] ss:$48 sps:$4 sm:$0xff]   ;;  %v7014_v39 = vld [vmem:[#allocation4 + $0x18] ss:$48 sps:$4 sm:$0xff]  }
  0x69   :  { %v7019_v38 = vld [vmem:[#allocation4 + $0x74] ss:$48 sps:$4 sm:$0xff]   ;;  %v7022_v40 = vld [vmem:[#allocation4 + $0x7c] ss:$48 sps:$4 sm:$0xff]   ;;  %v7017_v41 = vld [vmem:[#allocation4 + $0x70] ss:$48 sps:$4 sm:$0xff]  }
  0x6a   :  { %v7025_v42 = vld [vmem:[#allocation4 + $0xd4] ss:$48 sps:$4 sm:$0xff]   ;;  %v7020_v43 = vld [vmem:[#allocation4 + $0x78] ss:$48 sps:$4 sm:$0xff]   ;;  %v7028_v44 = vld [vmem:[#allocation4 + $0xdc] ss:$48 sps:$4 sm:$0xff]  }
  0x6b   :  { %747 = vmatpush1.bf16.msra.mxu0 %v6983_v15  ;;  %788 = vmatpush1.bf16.msra.mxu1 %v6986_v17  ;;  %v7023_v45 = vld [vmem:[#allocation4 + $0xd0] ss:$48 sps:$4 sm:$0xff]   ;;  %v7031_v46 = vld [vmem:[#allocation4 + $0x134] ss:$48 sps:$4 sm:$0xff]   ;;  %v7026_v47 = vld [vmem:[#allocation4 + $0xd8] ss:$48 sps:$4 sm:$0xff]  }
  0x6c   :  { %748 = vmatprep.subr.bf16.mxu0 %v6987_v16  ;;  %789 = vmatprep.subr.bf16.mxu1 %v6990_v18  ;;  %v7034_v48 = vld [vmem:[#allocation4 + $0x13c] ss:$48 sps:$4 sm:$0xff]   ;;  %v7029_v49 = vld [vmem:[#allocation4 + $0x130] ss:$48 sps:$4 sm:$0xff]   ;;  %v7037_v50 = vld [vmem:[#allocation4 + $0x194] ss:$48 sps:$4 sm:$0xff]  }
  0x6d   :  { %v7032_v51 = vld [vmem:[#allocation4 + $0x138] ss:$48 sps:$4 sm:$0xff]   ;;  %v7040_v52 = vld [vmem:[#allocation4 + $0x19c] ss:$48 sps:$4 sm:$0xff]   ;;  %v7035_v53 = vld [vmem:[#allocation4 + $0x190] ss:$48 sps:$4 sm:$0xff]  }
  0x6e   :  { %v7043_v54 = vld [vmem:[#allocation4 + $0x1f4] ss:$48 sps:$4 sm:$0xff]   ;;  %v7038_v55 = vld [vmem:[#allocation4 + $0x198] ss:$48 sps:$4 sm:$0xff]   ;;  %v7046_v56 = vld [vmem:[#allocation4 + $0x1fc] ss:$48 sps:$4 sm:$0xff]  }
  0x6f   :  { %749 = vmatpush1.bf16.msra.mxu0 %v6989_v19  ;;  %790 = vmatpush1.bf16.msra.mxu1 %v6992_v21  ;;  %v7041_v57 = vld [vmem:[#allocation4 + $0x1f0] ss:$48 sps:$4 sm:$0xff]   ;;  %v7049_v58 = vld [vmem:[#allocation4 + $0x254] ss:$48 sps:$4 sm:$0xff]   ;;  %v7044_v59 = vld [vmem:[#allocation4 + $0x1f8] ss:$48 sps:$4 sm:$0xff]  }
  0x70   :  { %750 = vmatprep.subr.bf16.mxu0 %v6993_v20  ;;  %791 = vmatprep.subr.bf16.mxu1 %v6996_v22  ;;  %v7052_v60 = vld [vmem:[#allocation4 + $0x25c] ss:$48 sps:$4 sm:$0xff]   ;;  %v7047_v61 = vld [vmem:[#allocation4 + $0x250] ss:$48 sps:$4 sm:$0xff]   ;;  %v7055_v62 = vld [vmem:[#allocation4 + $0x2b4] ss:$48 sps:$4 sm:$0xff]  }
  0x71   :  { %v7050_v63 = vld [vmem:[#allocation4 + $0x258] ss:$48 sps:$4 sm:$0xff]   ;;  %v7058_v1 = vld [vmem:[#allocation4 + $0x2bc] ss:$48 sps:$4 sm:$0xff]   ;;  %v7053_v2 = vld [vmem:[#allocation4 + $0x2b0] ss:$48 sps:$4 sm:$0xff]  }
  0x72   :  { %v7061_v3 = vld [vmem:[#allocation4 + $0x24] ss:$48 sps:$4 sm:$0xff]   ;;  %v7056_v4 = vld [vmem:[#allocation4 + $0x2b8] ss:$48 sps:$4 sm:$0xff]   ;;  %v7059_v5 = vld [vmem:[#allocation4 + $0x20] ss:$48 sps:$4 sm:$0xff]  }
  0x73   :  { %751 = vmatpush1.bf16.msra.mxu0 %v6995_v23  ;;  %792 = vmatpush1.bf16.msra.mxu1 %v6998_v25  ;;  %v7064_v6 = vld [vmem:[#allocation4 + $0x2c] ss:$48 sps:$4 sm:$0xff]   ;;  %v7062_v7 = vld [vmem:[#allocation4 + $0x28] ss:$48 sps:$4 sm:$0xff]   ;;  %v7067_v8 = vld [vmem:[#allocation4 + $0x84] ss:$48 sps:$4 sm:$0xff]  }
  0x74   :  { %752 = vmatprep.subr.bf16.mxu0 %v6999_v24  ;;  %793 = vmatprep.subr.bf16.mxu1 %v7002_v26  ;;  %v7065_v9 = vld [vmem:[#allocation4 + $0x80] ss:$48 sps:$4 sm:$0xff]   ;;  %v7070_v10 = vld [vmem:[#allocation4 + $0x8c] ss:$48 sps:$4 sm:$0xff]   ;;  %v7068_v11 = vld [vmem:[#allocation4 + $0x88] ss:$48 sps:$4 sm:$0xff]  }
  0x75   :  { %v7073_v12 = vld [vmem:[#allocation4 + $0xe4] ss:$48 sps:$4 sm:$0xff]   ;;  %v7071_v13 = vld [vmem:[#allocation4 + $0xe0] ss:$48 sps:$4 sm:$0xff]   ;;  %v7076_v14 = vld [vmem:[#allocation4 + $0xec] ss:$48 sps:$4 sm:$0xff]  }
  0x76   :  { %v7074_v15 = vld [vmem:[#allocation4 + $0xe8] ss:$48 sps:$4 sm:$0xff]   ;;  %v7079_v16 = vld [vmem:[#allocation4 + $0x144] ss:$48 sps:$4 sm:$0xff]   ;;  %v7077_v17 = vld [vmem:[#allocation4 + $0x140] ss:$48 sps:$4 sm:$0xff]  }
  0x77   :  { %753 = vmatpush1.bf16.msra.mxu0 %v7001_v27  ;;  %794 = vmatpush1.bf16.msra.mxu1 %v7004_v29  ;;  %v7082_v18 = vld [vmem:[#allocation4 + $0x14c] ss:$48 sps:$4 sm:$0xff]   ;;  %v7080_v19 = vld [vmem:[#allocation4 + $0x148] ss:$48 sps:$4 sm:$0xff]   ;;  %v7085_v20 = vld [vmem:[#allocation4 + $0x1a4] ss:$48 sps:$4 sm:$0xff]  }
  0x78   :  { %754 = vmatprep.subr.bf16.mxu0 %v7005_v28  ;;  %795 = vmatprep.subr.bf16.mxu1 %v7008_v31  ;;  %v7083_v21 = vld [vmem:[#allocation4 + $0x1a0] ss:$48 sps:$4 sm:$0xff]   ;;  %v7088_v22 = vld [vmem:[#allocation4 + $0x1ac] ss:$48 sps:$4 sm:$0xff]   ;;  %v7086_v23 = vld [vmem:[#allocation4 + $0x1a8] ss:$48 sps:$4 sm:$0xff]  }
  0x79   :  { %v7091_v24 = vld [vmem:[#allocation4 + $0x204] ss:$48 sps:$4 sm:$0xff]   ;;  %v7089_v25 = vld [vmem:[#allocation4 + $0x200] ss:$48 sps:$4 sm:$0xff]   ;;  %v7094_v26 = vld [vmem:[#allocation4 + $0x20c] ss:$48 sps:$4 sm:$0xff]  }
  0x7a   :  { %v7092_v27 = vld [vmem:[#allocation4 + $0x208] ss:$48 sps:$4 sm:$0xff]   ;;  %v7097_v28 = vld [vmem:[#allocation4 + $0x264] ss:$48 sps:$4 sm:$0xff]   ;;  %v7095_v29 = vld [vmem:[#allocation4 + $0x260] ss:$48 sps:$4 sm:$0xff]  }
  0x7b   :  { %755 = vmatpush1.bf16.msra.mxu0 %v7007_v30  ;;  %796 = vmatpush1.bf16.msra.mxu1 %v7010_v34  ;;  %v7100_v30 = vld [vmem:[#allocation4 + $0x26c] ss:$48 sps:$4 sm:$0xff]   ;;  %v7098_v31 = vld [vmem:[#allocation4 + $0x268] ss:$48 sps:$4 sm:$0xff]   ;;  %v7103_v32 = vld [vmem:[#allocation4 + $0x2c4] ss:$48 sps:$4 sm:$0xff]  }
  0x7c   :  { %822 = vmatprep.subr.bf16.mxu0 %v7013_v33  ;;  %863 = vmatprep.subr.bf16.mxu1 %v7016_v36  ;;  %v7106_v33 = vld [vmem:[#allocation4 + $0x2cc] ss:$48 sps:$4 sm:$0xff]   ;;  %v7101_v34 = vld [vmem:[#allocation4 + $0x2c0] ss:$48 sps:$4 sm:$0xff]  }
  0x7d   :  { %v7107_v36 = vld [vmem:[#allocation6 + $0x40] sm:$0xff]  }
  0x7e   :  { %773 = vmatmul.mubr.bf16.vlgmr.msra.gmra.mrb[0].mxu0 %v8162_v35  ;;  %814 = vmatmul.mubr.bf16.vlgmr.msra.gmra.mrb[0].mxu1 %v8162_v35 }
  0x7f   :  { %823 = vmatpush1.bf16.msra.mxu0 %v7011_v37  ;;  %854 = vmatprep.mubr.bf16.mxu0 %v8054_v0  ;;  %v7104_v37 = vld [vmem:[#allocation4 + $0x2c8] ss:$48 sps:$4 sm:$0xff]  }
  0x80   :  { %824 = vmatprep.subr.bf16.mxu0 %v7019_v38  ;;  %864 = vmatpush1.bf16.msra.mxu1 %v7014_v39  ;;  %v7109_v38 = vld [vmem:[#allocation6 + $0xc0] sm:$0xff]  }
  0x81   :  { %895 = vmatprep.mubr.bf16.mxu1 %v8054_v0  ;;  %865 = vmatprep.subr.bf16.mxu1 %v7022_v40  ;;  %v7108_v39 = vld [vmem:[#allocation6] sm:$0xff]   ;;  %v7110_v40 = vld [vmem:[#allocation6 + $0x48] sm:$0xff]  }
  0x83   :  { %825 = vmatpush1.bf16.msra.mxu0 %v7017_v41  ;;  %v7111_v41 = vld [vmem:[#allocation6 + $0x80] sm:$0xff]  }
  0x84   :  { %826 = vmatprep.subr.bf16.mxu0 %v7025_v42  ;;  %866 = vmatpush1.bf16.msra.mxu1 %v7020_v43  ;;  %v7113_v42 = vld [vmem:[#allocation6 + $0xc8] sm:$0xff]  }
  0x85   :  { %867 = vmatprep.subr.bf16.mxu1 %v7028_v44  ;;  %v7112_v43 = vld [vmem:[#allocation6 + $0x8] sm:$0xff]   ;;  %v7114_v44 = vld [vmem:[#allocation6 + $0x50] sm:$0xff]  }
  0x87   :  { %827 = vmatpush1.bf16.msra.mxu0 %v7023_v45  ;;  %v7115_v45 = vld [vmem:[#allocation6 + $0x88] sm:$0xff]  }
  0x88   :  { %828 = vmatprep.subr.bf16.mxu0 %v7031_v46  ;;  %868 = vmatpush1.bf16.msra.mxu1 %v7026_v47  ;;  %v7117_v46 = vld [vmem:[#allocation6 + $0xd0] sm:$0xff]  }
  0x89   :  { %869 = vmatprep.subr.bf16.mxu1 %v7034_v48  ;;  %v7116_v47 = vld [vmem:[#allocation6 + $0x10] sm:$0xff]   ;;  %v7118_v48 = vld [vmem:[#allocation6 + $0x58] sm:$0xff]  }
  0x8b   :  { %829 = vmatpush1.bf16.msra.mxu0 %v7029_v49  ;;  %v7119_v49 = vld [vmem:[#allocation6 + $0x90] sm:$0xff]  }
  0x8c   :  { %830 = vmatprep.subr.bf16.mxu0 %v7037_v50  ;;  %870 = vmatpush1.bf16.msra.mxu1 %v7032_v51  ;;  %v7121_v50 = vld [vmem:[#allocation6 + $0xd8] sm:$0xff]  }
  0x8d   :  { %871 = vmatprep.subr.bf16.mxu1 %v7040_v52  ;;  %v7120_v51 = vld [vmem:[#allocation6 + $0x18] sm:$0xff]   ;;  %v7122_v52 = vld [vmem:[#allocation6 + $0x60] sm:$0xff]  }
  0x8f   :  { %831 = vmatpush1.bf16.msra.mxu0 %v7035_v53  ;;  %v7123_v53 = vld [vmem:[#allocation6 + $0x98] sm:$0xff]  }
  0x90   :  { %832 = vmatprep.subr.bf16.mxu0 %v7043_v54  ;;  %872 = vmatpush1.bf16.msra.mxu1 %v7038_v55  ;;  %v7125_v54 = vld [vmem:[#allocation6 + $0xe0] sm:$0xff]   ;;  %v7126_v55 = vld [vmem:[#allocation6 + $0x68] sm:$0xff]  }
  0x91   :  { %873 = vmatprep.subr.bf16.mxu1 %v7046_v56  ;;  %v7127_v56 = vld [vmem:[#allocation6 + $0xa0] sm:$0xff]  }
  0x93   :  { %833 = vmatpush1.bf16.msra.mxu0 %v7041_v57  ;;  %v7129_v57 = vld [vmem:[#allocation6 + $0xe8] sm:$0xff]  }
  0x94   :  { %834 = vmatprep.subr.bf16.mxu0 %v7049_v58  ;;  %874 = vmatpush1.bf16.msra.mxu1 %v7044_v59  ;;  %v7128_v58 = vld [vmem:[#allocation6 + $0x28] sm:$0xff]   ;;  %v7130_v59 = vld [vmem:[#allocation6 + $0x70] sm:$0xff]  }
  0x95   :  { %875 = vmatprep.subr.bf16.mxu1 %v7052_v60  ;;  %v7131_v60 = vld [vmem:[#allocation6 + $0xa8] sm:$0xff]  }
  0x97   :  { %835 = vmatpush1.bf16.msra.mxu0 %v7047_v61  ;;  %v7133_v61 = vld [vmem:[#allocation6 + $0xf0] sm:$0xff]  }
  0x98   :  { %836 = vmatprep.subr.bf16.mxu0 %v7055_v62  ;;  %876 = vmatpush1.bf16.msra.mxu1 %v7050_v63  ;;  %v7132_v62 = vld [vmem:[#allocation6 + $0x30] sm:$0xff]   ;;  %v7134_v63 = vld [vmem:[#allocation6 + $0x78] sm:$0xff]  }
  0x99   :  { %877 = vmatprep.subr.bf16.mxu1 %v7058_v1  ;;  %v7135_v1 = vld [vmem:[#allocation6 + $0xb0] sm:$0xff]  }
  0x9b   :  { %837 = vmatpush1.bf16.msra.mxu0 %v7053_v2  ;;  %v7137_v2 = vld [vmem:[#allocation6 + $0xf8] sm:$0xff]  }
  0x9c   :  { %904 = vmatprep.subr.bf16.mxu0 %v7061_v3  ;;  %878 = vmatpush1.bf16.msra.mxu1 %v7056_v4  ;;  %v7136_v3 = vld [vmem:[#allocation6 + $0x38] sm:$0xff]  }
  0x9d   :  { %945 = vmatprep.subr.bf16.mxu1 %v7064_v6  ;;  %v7138_v4 = vld [vmem:[#allocation6 + $0xb8] sm:$0xff]   ;;  %v7141_v6 = vld [vmem:[#allocation6 + $0x1c0] sm:$0xff]  }
  0x9e   :  { %855 = vmatmul.mubr.bf16.vlgmr.msra.gmra.mrb[4].mxu0 %v8162_v35 }
  0x9f   :  { %905 = vmatpush1.bf16.msra.mxu0 %v7059_v5  ;;  %936 = vmatprep.mubr.bf16.mxu0 %v8054_v0  ;;  %v7139_v5 = vld [vmem:[#allocation6 + $0x140] sm:$0xff]  }
  0xa0   :  { %896 = vmatmul.mubr.bf16.vlgmr.msra.gmra.mrb[4].mxu1 %v8162_v35  ;;  %906 = vmatprep.subr.bf16.mxu0 %v7067_v8 }
  0xa1   :  { %946 = vmatpush1.bf16.msra.mxu1 %v7062_v7  ;;  %977 = vmatprep.mubr.bf16.mxu1 %v8054_v0  ;;  %v200_v7 = vlaneseq }
  0xa2   :  { %947 = vmatprep.subr.bf16.mxu1 %v7070_v10  ;;  %v194_v10 = vld [vmem:[#allocation2] ss:$8 sm:$0xf0] }
  0xa3   :  { %907 = vmatpush1.bf16.msra.mxu0 %v7065_v9  ;;  %v8174_v8 = vshrl.u32 %v200_v7, 7  ;;  %v193_v9 = vld [vmem:[#allocation2] ss:$8 sm:$0xf] }
  0xa4   :  { %908 = vmatprep.subr.bf16.mxu0 %v7073_v12  ;;  %v7166_v7 = vld [vmem:[#allocation6 + $0x178] sm:$0xff]  }
  0xa5   :  { %948 = vmatpush1.bf16.msra.mxu1 %v7068_v11  ;;  %v8177_v11 = vsub.s32 0, %v8174_v8  ;;  %v8180_v12 = vsub.s32 1, %v8174_v8 }
  0xa6   :  { %949 = vmatprep.subr.bf16.mxu1 %v7076_v14  ;;  %v8186_v14 = vsub.s32 2, %v8174_v8 }
  0xa7   :  { %909 = vmatpush1.bf16.msra.mxu0 %v7071_v13  ;;  %v8183_v13 = vsub.s32 3, %v8174_v8 }
  0xa8   :  { %910 = vmatprep.subr.bf16.mxu0 %v7079_v16 }
  0xa9   :  { %950 = vmatpush1.bf16.msra.mxu1 %v7074_v15  ;;  %v8188_v15 = vor.u32 %v194_v10, %v193_v9  ;;  %v7167_v10 = vld [vmem:[#allocation6 + $0x1b0] sm:$0xff]  }
  0xaa   :  { %951 = vmatprep.subr.bf16.mxu1 %v7082_v18 }
  0xab   :  { %911 = vmatpush1.bf16.msra.mxu0 %v7077_v17  ;;  %v203_v16 = vrot.slane %v8188_v15, %v8177_v11  ;;  %v207_v17 = vrot.slane %v8188_v15, %v8180_v12  ;;  %v211_v18 = vrot.slane %v8188_v15, %v8186_v14 }
  0xac   :  { %912 = vmatprep.subr.bf16.mxu0 %v7085_v20  ;;  %v215_v20 = vrot.slane %v8188_v15, %v8183_v13 }
  0xad   :  { %952 = vmatpush1.bf16.msra.mxu1 %v7080_v19 }
  0xae   :  { %953 = vmatprep.subr.bf16.mxu1 %v7088_v22 }
  0xaf   :  { %913 = vmatpush1.bf16.msra.mxu0 %v7083_v21 }
  0xb0   :  { %914 = vmatprep.subr.bf16.mxu0 %v7091_v24 }
  0xb1   :  { %954 = vmatpush1.bf16.msra.mxu1 %v7086_v23 }
  0xb2   :  { %955 = vmatprep.subr.bf16.mxu1 %v7094_v26 }
  0xb3   :  { %915 = vmatpush1.bf16.msra.mxu0 %v7089_v25 }
  0xb4   :  { %916 = vmatprep.subr.bf16.mxu0 %v7097_v28 }
  0xb5   :  { %956 = vmatpush1.bf16.msra.mxu1 %v7092_v27 }
  0xb6   :  { %957 = vmatprep.subr.bf16.mxu1 %v7100_v30 }
  0xb7   :  { %917 = vmatpush1.bf16.msra.mxu0 %v7095_v29 }
  0xb8   :  { %918 = vmatprep.subr.bf16.mxu0 %v7103_v32  ;;  %v7140_v32 = vld [vmem:[#allocation6 + $0x100] sm:$0xff]  }
  0xb9   :  { %958 = vmatpush1.bf16.msra.mxu1 %v7098_v31 }
  0xba   :  { %959 = vmatprep.subr.bf16.mxu1 %v7106_v33 }
  0xbb   :  { %919 = vmatpush1.bf16.msra.mxu0 %v7101_v34 }
  0xbc   :  { %6699 = vmatprep.subr.bf16.mxu0 %v7107_v36  ;;  %v7142_v36 = vld [vmem:[#allocation6 + $0x148] sm:$0xff]  }
  0xbd   :  { %960 = vmatpush1.bf16.msra.mxu1 %v7104_v37 }
  0xbe   :  { %937 = vmatmul.mubr.bf16.vlgmr.msra.gmra.mrb[8].mxu0 %v8162_v35  ;;  %6721 = vmatprep.subr.bf16.mxu1 %v7109_v38 }
  0xbf   :  { %6700 = vmatpush3.bf16.msra.mxu0 %v7108_v39 }
  0xc0   :  { %978 = vmatmul.mubr.bf16.vlgmr.msra.gmra.mrb[8].mxu1 %v8162_v35  ;;  %6701 = vmatprep.subr.bf16.mxu0 %v7110_v40  ;;  %v7124_v35 = vld [vmem:[#allocation6 + $0x20] sm:$0xff]  }
  0xc1   :  { %6722 = vmatpush3.bf16.msra.mxu1 %v7111_v41  ;;  %v7143_v40 = vld [vmem:[#allocation6 + $0x180] sm:$0xff]  }
  0xc2   :  { %6723 = vmatprep.subr.bf16.mxu1 %v7113_v42 }
  0xc3   :  { %6702 = vmatpush3.bf16.msra.mxu0 %v7112_v43  ;;  %v7145_v43 = vld [vmem:[#allocation6 + $0x1c8] sm:$0xff]  }
  0xc4   :  { %6703 = vmatprep.subr.bf16.mxu0 %v7114_v44 }
  0xc5   :  { %6724 = vmatpush3.bf16.msra.mxu1 %v7115_v45  ;;  %v7144_v45 = vld [vmem:[#allocation6 + $0x108] sm:$0xff]  }
  0xc6   :  { %6725 = vmatprep.subr.bf16.mxu1 %v7117_v46  ;;  %v7146_v46 = vld [vmem:[#allocation6 + $0x150] sm:$0xff]  }
  0xc7   :  { %6704 = vmatpush3.bf16.msra.mxu0 %v7116_v47  ;;  %v7147_v47 = vld [vmem:[#allocation6 + $0x188] sm:$0xff]  }
  0xc8   :  { %6705 = vmatprep.subr.bf16.mxu0 %v7118_v48  ;;  %v7149_v48 = vld [vmem:[#allocation6 + $0x1d0] sm:$0xff]  }
  0xc9   :  { %6726 = vmatpush3.bf16.msra.mxu1 %v7119_v49  ;;  %v7148_v49 = vld [vmem:[#allocation6 + $0x110] sm:$0xff]  }
  0xca   :  { %6727 = vmatprep.subr.bf16.mxu1 %v7121_v50  ;;  %v7150_v50 = vld [vmem:[#allocation6 + $0x158] sm:$0xff]  }
  0xcb   :  { %6706 = vmatpush3.bf16.msra.mxu0 %v7120_v51  ;;  %v7151_v51 = vld [vmem:[#allocation6 + $0x190] sm:$0xff]  }
  0xcc   :  { %6707 = vmatprep.subr.bf16.mxu0 %v7122_v52  ;;  %v7153_v52 = vld [vmem:[#allocation6 + $0x1d8] sm:$0xff]  }
  0xcd   :  { %6728 = vmatpush3.bf16.msra.mxu1 %v7123_v53  ;;  %v7152_v53 = vld [vmem:[#allocation6 + $0x118] sm:$0xff]  }
  0xce   :  { %6729 = vmatprep.subr.bf16.mxu1 %v7125_v54  ;;  %v7154_v54 = vld [vmem:[#allocation6 + $0x160] sm:$0xff]  }
  0xcf   :  { %6708 = vmatpush3.bf16.msra.mxu0 %v7124_v35  ;;  %v7155_v35 = vld [vmem:[#allocation6 + $0x198] sm:$0xff]  }
  0xd0   :  { %6709 = vmatprep.subr.bf16.mxu0 %v7126_v55  ;;  %v7157_v55 = vld [vmem:[#allocation6 + $0x1e0] sm:$0xff]  }
  0xd1   :  { %6730 = vmatpush3.bf16.msra.mxu1 %v7127_v56  ;;  %v7156_v56 = vld [vmem:[#allocation6 + $0x120] sm:$0xff]  }
  0xd2   :  { %6731 = vmatprep.subr.bf16.mxu1 %v7129_v57  ;;  %v7158_v57 = vld [vmem:[#allocation6 + $0x168] sm:$0xff]  }
  0xd3   :  { %6710 = vmatpush3.bf16.msra.mxu0 %v7128_v58  ;;  %v7159_v58 = vld [vmem:[#allocation6 + $0x1a0] sm:$0xff]  }
  0xd4   :  { %6711 = vmatprep.subr.bf16.mxu0 %v7130_v59  ;;  %v7161_v59 = vld [vmem:[#allocation6 + $0x1e8] sm:$0xff]  }
  0xd5   :  { %6732 = vmatpush3.bf16.msra.mxu1 %v7131_v60  ;;  %v7160_v60 = vld [vmem:[#allocation6 + $0x128] sm:$0xff]  }
  0xd6   :  { %6733 = vmatprep.subr.bf16.mxu1 %v7133_v61  ;;  %v218_v61 = vsub.s32 4, %v8174_v8 }
  0xd7   :  { %6712 = vmatpush3.bf16.msra.mxu0 %v7132_v62  ;;  %v7162_v62 = vld [vmem:[#allocation6 + $0x170] sm:$0xff]  }
  0xd8   :  { %6713 = vmatprep.subr.bf16.mxu0 %v7134_v63  ;;  %v7163_v63 = vld [vmem:[#allocation6 + $0x1a8] sm:$0xff]  }
  0xd9   :  { %6734 = vmatpush3.bf16.msra.mxu1 %v7135_v1  ;;  %v222_v1 = vsub.s32 5, %v8174_v8 }
  0xda   :  { %6735 = vmatprep.subr.bf16.mxu1 %v7137_v2  ;;  %v226_v2 = vsub.s32 6, %v8174_v8 }
  0xdb   :  { %6714 = vmatpush3.bf16.msra.mxu0 %v7136_v3  ;;  %v7165_v3 = vld [vmem:[#allocation6 + $0x1f0] sm:$0xff]   ;;  %v223_v9 = vrot.slane %v8188_v15, %v222_v1  ;;  %v7195_v1 = vld [vmem:[#allocation6 + $0x2a8] sm:$0xff]  }
  0xdc   :  { %6743 = vmatprep.subr.bf16.mxu0 %v7139_v5  ;;  %v230_v5 = vsub.s32 7, %v8174_v8  ;;  %v7171_v8 = vld [vmem:[#allocation6 + $0x240] sm:$0xff]  }
  0xdd   :  { %6736 = vmatpush3.bf16.msra.mxu1 %v7138_v4  ;;  %v7164_v4 = vld [vmem:[#allocation6 + $0x130] sm:$0xff]  }
  0xde   :  { %6765 = vmatprep.subr.bf16.mxu1 %v7141_v6  ;;  %v219_v6 = vrot.slane %v8188_v15, %v218_v61  ;;  %v7192_v61 = vld [vmem:[#allocation6 + $0x228] sm:$0xff]  }
 0x151   :  { %v774_v19 = vpop.f32.mrb[0].mxu0  ;;  %v815_v25 = vpop.f32.mrb[0].mxu1 }
 0x152   :  { %v775_v21 = vadd.f32 %v774_v19, %v203_v16  ;;  %v776_v22 = vpop.f32.mrb[1].mxu0  ;;  %v816_v27 = vadd.f32 %v815_v25, %v211_v18  ;;  %v817_v29 = vpop.f32.mrb[1].mxu1  ;;  %v227_v16 = vrot.slane %v8188_v15, %v226_v2  ;;  %v231_v19 = vrot.slane %v8188_v15, %v230_v5  ;;  %v7172_v15 = vld [vmem:[#allocation6 + $0x200] sm:$0xff]   ;;  %v7197_v2 = vld [vmem:[#allocation6 + $0x2f0] sm:$0xff]   ;;  %v7198_v5 = vld [vmem:[#allocation6 + $0x278] sm:$0xff]  }
 0x153   :  { %v777_v23 = vadd.f32 %v776_v22, %v207_v17  ;;  %v778_v24 = vpop.f32.mrb[2].mxu0  ;;  %v818_v31 = vadd.f32 %v817_v29, %v215_v20  ;;  %v819_v33 = vpop.f32.mrb[2].mxu1  ;;  %v7169_v17 = vld [vmem:[#allocation6 + $0x1f8] sm:$0xff]  }
 0x154   :  { %v986_v26 = vmax.f32 %v775_v21, 0.0  ;;  %v779_v28 = vpop.f32.mrb[3].mxu0  ;;  %v988_v34 = vmax.f32 %v816_v27, 0.0  ;;  %v820_v37 = vpop.f32.mrb[3].mxu1  ;;  %v7168_v20 = vld [vmem:[#allocation6 + $0x138] sm:$0xff]  }
 0x155   :  { %v987_v30 = vmax.f32 %v777_v23, 0.0  ;;  %v989_v39 = vmax.f32 %v818_v31, 0.0  ;;  %v7173_v31 = vld [vmem:[#allocation6 + $0x2c0] sm:$0xff]   ;;  %v7174_v37 = vld [vmem:[#allocation6 + $0x248] sm:$0xff]  }
 0x156   :  { %v1190_v41 = vpack.c.bf16 %v986_v26, %v986_v26  ;;  %v1192_v42 = vpack.c.bf16 %v988_v34, %v988_v34  ;;  %v7170_v26 = vld [vmem:[#allocation6 + $0x1b8] sm:$0xff]  }
 0x157   :  { %v1191_v38 = vpack.c.bf16 %v987_v30, %v987_v30  ;;  %v1193_v44 = vpack.c.bf16 %v989_v39, %v989_v39 }
 0x159   :  { %1811 = vmatprep.mubr.bf16.mxu0 %v1191_v38  ;;  %1851 = vmatprep.mubr.bf16.mxu1 %v1193_v44  ;;  %v7177_v44 = vld [vmem:[#allocation6 + $0x2c8] sm:$0xff]  }
 0x15a   :  { %1812 = vmatmul.mubr.bf16.vlgmr.msra.gmra.mrb[12].mxu0 %v1190_v41  ;;  %1852 = vmatmul.mubr.bf16.vlgmr.msra.gmra.mrb[12].mxu1 %v1192_v42  ;;  %v7175_v41 = vld [vmem:[#allocation6 + $0x280] sm:$0xff]  }
 0x15b   :  { %6744 = vmatpush3.bf16.msra.mxu0 %v7140_v32  ;;  %6766 = vmatpush3.bf16.msra.mxu1 %v7143_v40 }
 0x15c   :  { %6745 = vmatprep.subr.bf16.mxu0 %v7142_v36  ;;  %6767 = vmatprep.subr.bf16.mxu1 %v7145_v43 }
 0x15f   :  { %6746 = vmatpush3.bf16.msra.mxu0 %v7144_v45  ;;  %6768 = vmatpush3.bf16.msra.mxu1 %v7147_v47  ;;  %v7178_v47 = vld [vmem:[#allocation6 + $0x250] sm:$0xff]  }
 0x160   :  { %6747 = vmatprep.subr.bf16.mxu0 %v7146_v46  ;;  %6769 = vmatprep.subr.bf16.mxu1 %v7149_v48  ;;  %v7176_v46 = vld [vmem:[#allocation6 + $0x208] sm:$0xff]  }
 0x161   :  { %v7179_v48 = vld [vmem:[#allocation6 + $0x288] sm:$0xff]  }
 0x163   :  { %6748 = vmatpush3.bf16.msra.mxu0 %v7148_v49  ;;  %6770 = vmatpush3.bf16.msra.mxu1 %v7151_v51  ;;  %v7181_v49 = vld [vmem:[#allocation6 + $0x2d0] sm:$0xff]   ;;  %v7182_v51 = vld [vmem:[#allocation6 + $0x258] sm:$0xff]  }
 0x164   :  { %6749 = vmatprep.subr.bf16.mxu0 %v7150_v50  ;;  %6771 = vmatprep.subr.bf16.mxu1 %v7153_v52  ;;  %v7180_v50 = vld [vmem:[#allocation6 + $0x210] sm:$0xff]  }
 0x165   :  { %v7183_v52 = vld [vmem:[#allocation6 + $0x290] sm:$0xff]  }
 0x167   :  { %6750 = vmatpush3.bf16.msra.mxu0 %v7152_v53  ;;  %6772 = vmatpush3.bf16.msra.mxu1 %v7155_v35  ;;  %v7185_v53 = vld [vmem:[#allocation6 + $0x2d8] sm:$0xff]   ;;  %v7186_v35 = vld [vmem:[#allocation6 + $0x260] sm:$0xff]  }
 0x168   :  { %6751 = vmatprep.subr.bf16.mxu0 %v7154_v54  ;;  %6773 = vmatprep.subr.bf16.mxu1 %v7157_v55  ;;  %v7184_v54 = vld [vmem:[#allocation6 + $0x218] sm:$0xff]  }
 0x169   :  { %v7187_v55 = vld [vmem:[#allocation6 + $0x298] sm:$0xff]  }
 0x16b   :  { %6752 = vmatpush3.bf16.msra.mxu0 %v7156_v56  ;;  %6774 = vmatpush3.bf16.msra.mxu1 %v7159_v58  ;;  %v7189_v56 = vld [vmem:[#allocation6 + $0x2e0] sm:$0xff]   ;;  %v7190_v58 = vld [vmem:[#allocation6 + $0x268] sm:$0xff]  }
 0x16c   :  { %6753 = vmatprep.subr.bf16.mxu0 %v7158_v57  ;;  %6775 = vmatprep.subr.bf16.mxu1 %v7161_v59  ;;  %v7188_v57 = vld [vmem:[#allocation6 + $0x220] sm:$0xff]  }
 0x16d   :  { %v7191_v59 = vld [vmem:[#allocation6 + $0x2a0] sm:$0xff]  }
 0x16f   :  { %6754 = vmatpush3.bf16.msra.mxu0 %v7160_v60  ;;  %6776 = vmatpush3.bf16.msra.mxu1 %v7163_v63  ;;  %v7193_v60 = vld [vmem:[#allocation6 + $0x2e8] sm:$0xff]   ;;  %v7194_v63 = vld [vmem:[#allocation6 + $0x270] sm:$0xff]  }
 0x170   :  { %6755 = vmatprep.subr.bf16.mxu0 %v7162_v62  ;;  %6777 = vmatprep.subr.bf16.mxu1 %v7165_v3  ;;  %v197_v62 = vld [vmem:[#allocation2 + $0x40] ss:$8 sm:$0xf] }
 0x171   :  { %v856_v18 = vpop.f32.mrb[4].mxu0  ;;  %v7196_v3 = vld [vmem:[#allocation6 + $0x230] sm:$0xff]  }
 0x172   :  { %v857_v21 = vadd.f32 %v856_v18, %v219_v6  ;;  %v858_v22 = vpop.f32.mrb[5].mxu0  ;;  %v239_v6 = vrot.slane %v197_v62, %v8180_v12  ;;  %v7200_v18 = vld [vmem:[#allocation6 + $0x238] sm:$0xff]  }
 0x173   :  { %v859_v23 = vadd.f32 %v858_v22, %v223_v9  ;;  %6756 = vmatpush3.bf16.msra.mxu0 %v7164_v4  ;;  %v860_v24 = vpop.f32.mrb[6].mxu0  ;;  %v897_v25 = vpop.f32.mrb[4].mxu1  ;;  %6778 = vmatpush3.bf16.msra.mxu1 %v7167_v10  ;;  %v235_v4 = vrot.slane %v197_v62, %v8177_v11  ;;  %v243_v9 = vrot.slane %v197_v62, %v8186_v14  ;;  %v7201_v10 = vld [vmem:[#allocation6 + $0x2f8] sm:$0xff]  }
 0x174   :  { %v990_v27 = vmax.f32 %v857_v21, 0.0  ;;  %v898_v28 = vadd.f32 %v897_v25, %v227_v16  ;;  %v861_v29 = vpop.f32.mrb[7].mxu0  ;;  %v899_v30 = vpop.f32.mrb[5].mxu1  ;;  %6757 = vmatprep.subr.bf16.mxu0 %v7166_v7  ;;  %6779 = vmatprep.subr.bf16.mxu1 %v7169_v17  ;;  %v7199_v7 = vld [vmem:[#allocation6 + $0x2b0] sm:$0xff]   ;;  %v247_v17 = vrot.slane %v197_v62, %v8183_v13  ;;  %v7205_v21 = vld [vmem:[#allocation7 + $0x4] ss:$8 sps:$4 sm:$0xff]  }
 0x175   :  { %v991_v32 = vmax.f32 %v859_v23, 0.0  ;;  %v900_v33 = vadd.f32 %v899_v30, %v231_v19  ;;  %v901_v34 = vpop.f32.mrb[6].mxu1  ;;  %v7202_v24 = vld [vmem:[#allocation6 + $0x2b8] sm:$0xff]  }
 0x176   :  { %v992_v36 = vmax.f32 %v898_v28, 0.0  ;;  %v902_v38 = vpop.f32.mrb[7].mxu1  ;;  %v1194_v42 = vpack.c.bf16 %v990_v27, %v990_v27  ;;  %v7236_v62 = vld [vmem:[#allocation9 + $0x28] ss:$16 sps:$4 sm:$0xff]  }
 0x177   :  { %v1195_v39 = vpack.c.bf16 %v991_v32, %v991_v32  ;;  %v993_v40 = vmax.f32 %v900_v33, 0.0  ;;  %6758 = vmatpush3.bf16.msra.mxu0 %v7168_v20  ;;  %6780 = vmatpush3.bf16.msra.mxu1 %v7170_v26 }
 0x178   :  { %v1196_v43 = vpack.c.bf16 %v992_v36, %v992_v36  ;;  %6787 = vmatprep.subr.bf16.mxu0 %v7171_v8  ;;  %6809 = vmatprep.subr.bf16.mxu1 %v7173_v31  ;;  %v7203_v31 = vld [vmem:[#allocation7] ss:$8 sps:$4 sm:$0xff]  }
 0x179   :  { %v1197_v45 = vpack.c.bf16 %v993_v40, %v993_v40  ;;  %1891 = vmatprep.mubr.bf16.mxu0 %v1195_v39 }
 0x17a   :  { %1892 = vmatmul.mubr.bf16.vlgmr.msra.gmra.mrb[16].mxu0 %v1194_v42  ;;  %v7211_v42 = vld [vmem:[#allocation7 + $0x24] ss:$8 sps:$4 sm:$0xff]  }
 0x17b   :  { %6788 = vmatpush3.bf16.msra.mxu0 %v7172_v15  ;;  %1931 = vmatprep.mubr.bf16.mxu1 %v1197_v45  ;;  %v7208_v15 = vld [vmem:[#allocation7 + $0x14] ss:$8 sps:$4 sm:$0xff]   ;;  %v7212_v45 = vld [vmem:[#allocation7 + $0x30] ss:$8 sps:$4 sm:$0xff]  }
 0x17c   :  { %1932 = vmatmul.mubr.bf16.vlgmr.msra.gmra.mrb[16].mxu1 %v1196_v43  ;;  %6789 = vmatprep.subr.bf16.mxu0 %v7174_v37  ;;  %v7209_v43 = vld [vmem:[#allocation7 + $0x20] ss:$8 sps:$4 sm:$0xff]  }
 0x17d   :  { %6810 = vmatpush3.bf16.msra.mxu1 %v7175_v41  ;;  %v7206_v41 = vld [vmem:[#allocation7 + $0x10] ss:$8 sps:$4 sm:$0xff]  }
 0x17e   :  { %6811 = vmatprep.subr.bf16.mxu1 %v7177_v44  ;;  %v7214_v44 = vld [vmem:[#allocation7 + $0x34] ss:$8 sps:$4 sm:$0xff]  }
 0x17f   :  { %6790 = vmatpush3.bf16.msra.mxu0 %v7176_v46  ;;  %v7217_v46 = vld [vmem:[#allocation7 + $0x44] ss:$8 sps:$4 sm:$0xff]  }
 0x180   :  { %6791 = vmatprep.subr.bf16.mxu0 %v7178_v47  ;;  %v7215_v47 = vld [vmem:[#allocation7 + $0x40] ss:$8 sps:$4 sm:$0xff]  }
 0x181   :  { %6812 = vmatpush3.bf16.msra.mxu1 %v7179_v48  ;;  %v7220_v48 = vld [vmem:[#allocation7 + $0x54] ss:$8 sps:$4 sm:$0xff]  }
 0x182   :  { %6813 = vmatprep.subr.bf16.mxu1 %v7181_v49  ;;  %v7218_v49 = vld [vmem:[#allocation7 + $0x50] ss:$8 sps:$4 sm:$0xff]  }
 0x183   :  { %6792 = vmatpush3.bf16.msra.mxu0 %v7180_v50  ;;  %v7223_v50 = vld [vmem:[#allocation7 + $0x64] ss:$8 sps:$4 sm:$0xff]  }
 0x184   :  { %6793 = vmatprep.subr.bf16.mxu0 %v7182_v51  ;;  %v7221_v51 = vld [vmem:[#allocation7 + $0x60] ss:$8 sps:$4 sm:$0xff]  }
 0x185   :  { %6814 = vmatpush3.bf16.msra.mxu1 %v7183_v52  ;;  %v7226_v52 = vld [vmem:[#allocation7 + $0x74] ss:$8 sps:$4 sm:$0xff]  }
 0x186   :  { %6815 = vmatprep.subr.bf16.mxu1 %v7185_v53  ;;  %v7224_v53 = vld [vmem:[#allocation7 + $0x70] ss:$8 sps:$4 sm:$0xff]  }
 0x187   :  { %6794 = vmatpush3.bf16.msra.mxu0 %v7184_v54  ;;  %v2019_v54 = vld [vmem:[%s8286_s1] sm:$0xff] }
 0x188   :  { %6795 = vmatprep.subr.bf16.mxu0 %v7186_v35  ;;  %v2036_v35 = vpack.c.bf16 %v2019_v54, %v2019_v54  ;;  %v7316_v54 = vld [vmem:[#allocation9 + $0x1cc] ss:$16 sps:$4 sm:$0xff]  }
 0x189   :  { %6816 = vmatpush3.bf16.msra.mxu1 %v7187_v55  ;;  %v7227_v55 = vld [vmem:[#allocation9] ss:$16 sps:$4 sm:$0xff]  }
 0x18a   :  { %6817 = vmatprep.subr.bf16.mxu1 %v7189_v56  ;;  %v7229_v56 = vld [vmem:[#allocation9 + $0x4] ss:$16 sps:$4 sm:$0xff]  }
 0x18b   :  { %6796 = vmatpush3.bf16.msra.mxu0 %v7188_v57  ;;  %v7230_v57 = vld [vmem:[#allocation9 + $0x8] ss:$16 sps:$4 sm:$0xff]  }
 0x18c   :  { %6797 = vmatprep.subr.bf16.mxu0 %v7190_v58  ;;  %v7232_v58 = vld [vmem:[#allocation9 + $0xc] ss:$16 sps:$4 sm:$0xff]  }
 0x18d   :  { %6818 = vmatpush3.bf16.msra.mxu1 %v7191_v59  ;;  %v7235_v59 = vld [vmem:[#allocation9 + $0x24] ss:$16 sps:$4 sm:$0xff]  }
 0x18e   :  { %6819 = vmatprep.subr.bf16.mxu1 %v7193_v60  ;;  %v7238_v60 = vld [vmem:[#allocation9 + $0x2c] ss:$16 sps:$4 sm:$0xff]  }
 0x18f   :  { %6798 = vmatpush3.bf16.msra.mxu0 %v7192_v61  ;;  %v7233_v61 = vld [vmem:[#allocation9 + $0x20] ss:$16 sps:$4 sm:$0xff]  }
 0x190   :  { %6799 = vmatprep.subr.bf16.mxu0 %v7194_v63  ;;  %v7241_v63 = vld [vmem:[#allocation9 + $0x44] ss:$16 sps:$4 sm:$0xff]  }
 0x191   :  { %v938_v16 = vpop.f32.mrb[8].mxu0  ;;  %6820 = vmatpush3.bf16.msra.mxu1 %v7195_v1  ;;  %v7244_v1 = vld [vmem:[#allocation9 + $0x4c] ss:$16 sps:$4 sm:$0xff]  }
 0x192   :  { %v939_v19 = vadd.f32 %v938_v16, %v235_v4  ;;  %v940_v20 = vpop.f32.mrb[9].mxu0  ;;  %6821 = vmatprep.subr.bf16.mxu1 %v7197_v2  ;;  %v7239_v2 = vld [vmem:[#allocation9 + $0x40] ss:$16 sps:$4 sm:$0xff]   ;;  %v7247_v4 = vld [vmem:[#allocation9 + $0x64] ss:$16 sps:$4 sm:$0xff]  }
 0x193   :  { %v941_v22 = vadd.f32 %v940_v20, %v239_v6  ;;  %6800 = vmatpush3.bf16.msra.mxu0 %v7196_v3  ;;  %v942_v8 = vpop.f32.mrb[10].mxu0  ;;  %v979_v23 = vpop.f32.mrb[8].mxu1  ;;  %v7242_v3 = vld [vmem:[#allocation9 + $0x48] ss:$16 sps:$4 sm:$0xff]   ;;  %v7245_v6 = vld [vmem:[#allocation9 + $0x60] ss:$16 sps:$4 sm:$0xff]  }
 0x194   :  { %v994_v25 = vmax.f32 %v939_v19, 0.0  ;;  %v980_v26 = vadd.f32 %v979_v23, %v243_v9  ;;  %v943_v27 = vpop.f32.mrb[11].mxu0  ;;  %v981_v28 = vpop.f32.mrb[9].mxu1  ;;  %6801 = vmatprep.subr.bf16.mxu0 %v7198_v5  ;;  %v7250_v5 = vld [vmem:[#allocation9 + $0x6c] ss:$16 sps:$4 sm:$0xff]  }
 0x195   :  { %v995_v29 = vmax.f32 %v941_v22, 0.0  ;;  %v982_v30 = vadd.f32 %v981_v28, %v247_v17  ;;  %6822 = vmatpush3.bf16.msra.mxu1 %v7199_v7  ;;  %v983_v32 = vpop.f32.mrb[10].mxu1  ;;  %v7248_v7 = vld [vmem:[#allocation9 + $0x68] ss:$16 sps:$4 sm:$0xff]   ;;  %v7253_v9 = vld [vmem:[#allocation9 + $0x84] ss:$16 sps:$4 sm:$0xff]  }
 0x196   :  { %v996_v33 = vmax.f32 %v980_v26, 0.0  ;;  %6823 = vmatprep.subr.bf16.mxu1 %v7201_v10  ;;  %v984_v34 = vpop.f32.mrb[11].mxu1  ;;  %v1198_v38 = vpack.c.bf16 %v994_v25, %v994_v25  ;;  %v7256_v10 = vld [vmem:[#allocation9 + $0x8c] ss:$16 sps:$4 sm:$0xff]   ;;  %v7251_v16 = vld [vmem:[#allocation9 + $0x80] ss:$16 sps:$4 sm:$0xff]  }
 0x197   :  { %v1199_v36 = vpack.c.bf16 %v995_v29, %v995_v29  ;;  %v997_v37 = vmax.f32 %v982_v30, 0.0  ;;  %6802 = vmatpush3.bf16.msra.mxu0 %v7200_v18  ;;  %v7254_v17 = vld [vmem:[#allocation9 + $0x88] ss:$16 sps:$4 sm:$0xff]   ;;  %v7259_v18 = vld [vmem:[#allocation9 + $0xa4] ss:$16 sps:$4 sm:$0xff]  }
 0x198   :  { %v1200_v39 = vpack.c.bf16 %v996_v33, %v996_v33  ;;  %2130 = vmatprep.subr.bf16.mxu0 %v7205_v21  ;;  %v7262_v19 = vld [vmem:[#allocation9 + $0xac] ss:$16 sps:$4 sm:$0xff]   ;;  %v7257_v20 = vld [vmem:[#allocation9 + $0xa0] ss:$16 sps:$4 sm:$0xff]   ;;  %v7260_v21 = vld [vmem:[#allocation9 + $0xa8] ss:$16 sps:$4 sm:$0xff]  }
 0x199   :  { %v1201_v40 = vpack.c.bf16 %v997_v37, %v997_v37  ;;  %1971 = vmatprep.mubr.bf16.mxu0 %v1199_v36  ;;  %6824 = vmatpush3.bf16.msra.mxu1 %v7202_v24  ;;  %v7265_v22 = vld [vmem:[#allocation9 + $0xc4] ss:$16 sps:$4 sm:$0xff]   ;;  %v7268_v8 = vld [vmem:[#allocation9 + $0xcc] ss:$16 sps:$4 sm:$0xff]   ;;  %v7263_v23 = vld [vmem:[#allocation9 + $0xc0] ss:$16 sps:$4 sm:$0xff]  }
 0x19a   :  { %1972 = vmatmul.mubr.bf16.vlgmr.msra.gmra.mrb[20].mxu0 %v1198_v38  ;;  %2584 = vmatprep.subr.bf16.mxu1 %v7229_v56  ;;  %v7266_v24 = vld [vmem:[#allocation9 + $0xc8] ss:$16 sps:$4 sm:$0xff]   ;;  %v7271_v25 = vld [vmem:[#allocation9 + $0xe4] ss:$16 sps:$4 sm:$0xff]   ;;  %v7274_v26 = vld [vmem:[#allocation9 + $0xec] ss:$16 sps:$4 sm:$0xff]  }
 0x19b   :  { %2131 = vmatpush1.bf16.msra.mxu0 %v7203_v31  ;;  %2011 = vmatprep.mubr.bf16.mxu1 %v1201_v40  ;;  %v7269_v27 = vld [vmem:[#allocation9 + $0xe0] ss:$16 sps:$4 sm:$0xff]   ;;  %v7272_v28 = vld [vmem:[#allocation9 + $0xe8] ss:$16 sps:$4 sm:$0xff]   ;;  %v7277_v30 = vld [vmem:[#allocation9 + $0x104] ss:$16 sps:$4 sm:$0xff]  }
 0x19c   :  { %2012 = vmatmul.mubr.bf16.vlgmr.msra.gmra.mrb[20].mxu1 %v1200_v39  ;;  %2132 = vmatprep.subr.bf16.mxu0 %v7208_v15  ;;  %v7275_v29 = vld [vmem:[#allocation9 + $0x100] ss:$16 sps:$4 sm:$0xff]   ;;  %v7278_v31 = vld [vmem:[#allocation9 + $0x108] ss:$16 sps:$4 sm:$0xff]   ;;  %v7280_v32 = vld [vmem:[#allocation9 + $0x10c] ss:$16 sps:$4 sm:$0xff]  }
 0x19d   :  { %2162 = vmatprep.mubr.bf16.mxu0 %v8054_v0  ;;  %2585 = vmatpush1.bf16.msra.mxu1 %v7227_v55  ;;  %v7283_v33 = vld [vmem:[#allocation9 + $0x124] ss:$16 sps:$4 sm:$0xff]   ;;  %v7286_v15 = vld [vmem:[#allocation9 + $0x12c] ss:$16 sps:$4 sm:$0xff]   ;;  %v7281_v34 = vld [vmem:[#allocation9 + $0x120] ss:$16 sps:$4 sm:$0xff]  }
 0x19e   :  { %2586 = vmatprep.subr.bf16.mxu1 %v7235_v59  ;;  %v7284_v36 = vld [vmem:[#allocation9 + $0x128] ss:$16 sps:$4 sm:$0xff]   ;;  %v7289_v37 = vld [vmem:[#allocation9 + $0x144] ss:$16 sps:$4 sm:$0xff]   ;;  %v7292_v38 = vld [vmem:[#allocation9 + $0x14c] ss:$16 sps:$4 sm:$0xff]  }
 0x19f   :  { %2133 = vmatpush1.bf16.msra.mxu0 %v7206_v41  ;;  %v7287_v39 = vld [vmem:[#allocation9 + $0x140] ss:$16 sps:$4 sm:$0xff]   ;;  %v7290_v40 = vld [vmem:[#allocation9 + $0x148] ss:$16 sps:$4 sm:$0xff]   ;;  %v7295_v41 = vld [vmem:[#allocation9 + $0x164] ss:$16 sps:$4 sm:$0xff]  }
 0x1a0   :  { %2134 = vmatprep.subr.bf16.mxu0 %v7211_v42  ;;  %v7298_v42 = vld [vmem:[#allocation9 + $0x16c] ss:$16 sps:$4 sm:$0xff]   ;;  %v7314_v55 = vld [vmem:[#allocation9 + $0x1c8] ss:$16 sps:$4 sm:$0xff]   ;;  %v7319_v56 = vld [vmem:[#allocation9 + $0x1e4] ss:$16 sps:$4 sm:$0xff]  }
 0x1a1   :  { %2587 = vmatpush1.bf16.msra.mxu1 %v7233_v61  ;;  %v7320_v59 = vld [vmem:[#allocation9 + $0x1e8] ss:$16 sps:$4 sm:$0xff]  }
 0x1a2   :  { %2588 = vmatprep.subr.bf16.mxu1 %v7241_v63 }
 0x1a3   :  { %2135 = vmatpush1.bf16.msra.mxu0 %v7209_v43  ;;  %v7293_v43 = vld [vmem:[#allocation9 + $0x160] ss:$16 sps:$4 sm:$0xff]  }
 0x1a4   :  { %2136 = vmatprep.subr.bf16.mxu0 %v7214_v44  ;;  %v7296_v44 = vld [vmem:[#allocation9 + $0x168] ss:$16 sps:$4 sm:$0xff]  }
 0x1a5   :  { %2589 = vmatpush1.bf16.msra.mxu1 %v7239_v2 }
 0x1a6   :  { %2590 = vmatprep.subr.bf16.mxu1 %v7247_v4 }
 0x1a7   :  { %2137 = vmatpush1.bf16.msra.mxu0 %v7212_v45  ;;  %v7301_v45 = vld [vmem:[#allocation9 + $0x184] ss:$16 sps:$4 sm:$0xff]  }
 0x1a8   :  { %2138 = vmatprep.subr.bf16.mxu0 %v7217_v46  ;;  %v7304_v46 = vld [vmem:[#allocation9 + $0x18c] ss:$16 sps:$4 sm:$0xff]  }
 0x1a9   :  { %2591 = vmatpush1.bf16.msra.mxu1 %v7245_v6 }
 0x1aa   :  { %2592 = vmatprep.subr.bf16.mxu1 %v7253_v9 }
 0x1ab   :  { %2139 = vmatpush1.bf16.msra.mxu0 %v7215_v47  ;;  %v7299_v47 = vld [vmem:[#allocation9 + $0x180] ss:$16 sps:$4 sm:$0xff]  }
 0x1ac   :  { %2140 = vmatprep.subr.bf16.mxu0 %v7220_v48  ;;  %v7302_v48 = vld [vmem:[#allocation9 + $0x188] ss:$16 sps:$4 sm:$0xff]  }
 0x1ad   :  { %2593 = vmatpush1.bf16.msra.mxu1 %v7251_v16 }
 0x1ae   :  { %2594 = vmatprep.subr.bf16.mxu1 %v7259_v18 }
 0x1af   :  { %2141 = vmatpush1.bf16.msra.mxu0 %v7218_v49  ;;  %v7307_v49 = vld [vmem:[#allocation9 + $0x1a4] ss:$16 sps:$4 sm:$0xff]  }
 0x1b0   :  { %2142 = vmatprep.subr.bf16.mxu0 %v7223_v50  ;;  %v7310_v50 = vld [vmem:[#allocation9 + $0x1ac] ss:$16 sps:$4 sm:$0xff]  }
 0x1b1   :  { %2595 = vmatpush1.bf16.msra.mxu1 %v7257_v20 }
 0x1b2   :  { %2596 = vmatprep.subr.bf16.mxu1 %v7265_v22 }
 0x1b3   :  { %2143 = vmatpush1.bf16.msra.mxu0 %v7221_v51  ;;  %v7305_v51 = vld [vmem:[#allocation9 + $0x1a0] ss:$16 sps:$4 sm:$0xff]  }
 0x1b4   :  { %2144 = vmatprep.subr.bf16.mxu0 %v7226_v52  ;;  %v7308_v52 = vld [vmem:[#allocation9 + $0x1a8] ss:$16 sps:$4 sm:$0xff]  }
 0x1b5   :  { %2597 = vmatpush1.bf16.msra.mxu1 %v7263_v23 }
 0x1b6   :  { %2598 = vmatprep.subr.bf16.mxu1 %v7271_v25 }
 0x1b7   :  { %2145 = vmatpush1.bf16.msra.mxu0 %v7224_v53  ;;  %v7313_v53 = vld [vmem:[#allocation9 + $0x1c4] ss:$16 sps:$4 sm:$0xff]  }
 0x1b8   :  { %2625 = vmatprep.subr.bf16.mxu0 %v7232_v58  ;;  %v7317_v58 = vld [vmem:[#allocation9 + $0x1e0] ss:$16 sps:$4 sm:$0xff]  }
 0x1b9   :  { %2599 = vmatpush1.bf16.msra.mxu1 %v7269_v27 }
 0x1ba   :  { %2163 = vmatmul.mubr.bf16.vlgmr.msra.gmra.mrb[24].mxu0 %v2036_v35  ;;  %2600 = vmatprep.subr.bf16.mxu1 %v7277_v30  ;;  %v7311_v35 = vld [vmem:[#allocation9 + $0x1c0] ss:$16 sps:$4 sm:$0xff]  }
 0x1bb   :  { %2626 = vmatpush1.bf16.msra.mxu0 %v7230_v57  ;;  %v7322_v57 = vld [vmem:[#allocation9 + $0x1ec] ss:$16 sps:$4 sm:$0xff]  }
 0x1bc   :  { %2627 = vmatprep.subr.bf16.mxu0 %v7238_v60  ;;  %v7325_v60 = vld [vmem:[#allocation7 + $0x84] ss:$8 sps:$4 sm:$0xff]  }
 0x1bd   :  { %2601 = vmatpush1.bf16.msra.mxu1 %v7275_v29 }
 0x1be   :  { %2602 = vmatprep.subr.bf16.mxu1 %v7283_v33 }
 0x1bf   :  { %2628 = vmatpush1.bf16.msra.mxu0 %v7236_v62  ;;  %v1202_v62 = vld [vmem:[#allocation2 + $0x1] ss:$0 sm:$0xff] }
 0x1c0   :  { %2629 = vmatprep.subr.bf16.mxu0 %v7244_v1 }
 0x1c1   :  { %2603 = vmatpush1.bf16.msra.mxu1 %v7281_v34 }
 0x1c2   :  { %2604 = vmatprep.subr.bf16.mxu1 %v7289_v37 }
 0x1c3   :  { %2630 = vmatpush1.bf16.msra.mxu0 %v7242_v3 }
 0x1c4   :  { %2631 = vmatprep.subr.bf16.mxu0 %v7250_v5 }
 0x1c5   :  { %2605 = vmatpush1.bf16.msra.mxu1 %v7287_v39 }
 0x1c6   :  { %2606 = vmatprep.subr.bf16.mxu1 %v7295_v41 }
 0x1c7   :  { %2632 = vmatpush1.bf16.msra.mxu0 %v7248_v7 }
 0x1c8   :  { %2633 = vmatprep.subr.bf16.mxu0 %v7256_v10 }
 0x1c9   :  { %2607 = vmatpush1.bf16.msra.mxu1 %v7293_v43 }
 0x1ca   :  { %2608 = vmatprep.subr.bf16.mxu1 %v7301_v45 }
 0x1cb   :  { %2634 = vmatpush1.bf16.msra.mxu0 %v7254_v17 }
 0x1cc   :  { %2635 = vmatprep.subr.bf16.mxu0 %v7262_v19 }
 0x1cd   :  { %2609 = vmatpush1.bf16.msra.mxu1 %v7299_v47 }
 0x1ce   :  { %2610 = vmatprep.subr.bf16.mxu1 %v7307_v49 }
 0x1cf   :  { %2636 = vmatpush1.bf16.msra.mxu0 %v7260_v21 }
 0x1d0   :  { %2637 = vmatprep.subr.bf16.mxu0 %v7268_v8 }
 0x1d1   :  { %2611 = vmatpush1.bf16.msra.mxu1 %v7305_v51 }
 0x1d2   :  { %2612 = vmatprep.subr.bf16.mxu1 %v7313_v53 }
 0x1d3   :  { %2638 = vmatpush1.bf16.msra.mxu0 %v7266_v24 }
 0x1d4   :  { %2639 = vmatprep.subr.bf16.mxu0 %v7274_v26 }
 0x1d5   :  { %2613 = vmatpush1.bf16.msra.mxu1 %v7311_v35 }
 0x1d6   :  { %2614 = vmatprep.subr.bf16.mxu1 %v7319_v56  ;;  %v7326_v56 = vld [vmem:[#allocation7 + $0x90] ss:$8 sps:$4 sm:$0xff]  }
 0x1d7   :  { %2640 = vmatpush1.bf16.msra.mxu0 %v7272_v28 }
 0x1d8   :  { %2641 = vmatprep.subr.bf16.mxu0 %v7280_v32 }
 0x1d9   :  { %2615 = vmatpush1.bf16.msra.mxu1 %v7317_v58  ;;  %v7329_v58 = vld [vmem:[#allocation7 + $0xa0] ss:$8 sps:$4 sm:$0xff]  }
 0x1da   :  { %3087 = vmatprep.subr.bf16.mxu1 %v7325_v60  ;;  %v7332_v60 = vld [vmem:[#allocation7 + $0xb0] ss:$8 sps:$4 sm:$0xff]  }
 0x1db   :  { %2642 = vmatpush1.bf16.msra.mxu0 %v7278_v31 }
 0x1dc   :  { %2643 = vmatprep.subr.bf16.mxu0 %v7286_v15 }
 0x1df   :  { %2644 = vmatpush1.bf16.msra.mxu0 %v7284_v36 }
 0x1e0   :  { %2645 = vmatprep.subr.bf16.mxu0 %v7292_v38 }
 0x1e3   :  { %2646 = vmatpush1.bf16.msra.mxu0 %v7290_v40  ;;  %v2038_v40 = vld [vmem:[#allocation2 + $0x2] ss:$8 sm:$0x3] }
 0x1e4   :  { %2647 = vmatprep.subr.bf16.mxu0 %v7298_v42  ;;  %v2043_v41 = vrot.slane %v2038_v40, %v8177_v11  ;;  %v2047_v42 = vrot.slane %v2038_v40, %v8180_v12  ;;  %v7434_v40 = vld [vmem:[#allocation7 + $0x2d0] ss:$8 sps:$4 sm:$0xff]  }
 0x1e7   :  { %2648 = vmatpush1.bf16.msra.mxu0 %v7296_v44 }
 0x1e8   :  { %2649 = vmatprep.subr.bf16.mxu0 %v7304_v46 }
 0x1eb   :  { %2650 = vmatpush1.bf16.msra.mxu0 %v7302_v48 }
 0x1ec   :  { %2651 = vmatprep.subr.bf16.mxu0 %v7310_v50 }
 0x1ef   :  { %2652 = vmatpush1.bf16.msra.mxu0 %v7308_v52 }
 0x1f0   :  { %2653 = vmatprep.subr.bf16.mxu0 %v7316_v54  ;;  %v7323_v54 = vld [vmem:[#allocation7 + $0x80] ss:$8 sps:$4 sm:$0xff]  }
 0x1f3   :  { %2654 = vmatpush1.bf16.msra.mxu0 %v7314_v55  ;;  %v7328_v55 = vld [vmem:[#allocation7 + $0x94] ss:$8 sps:$4 sm:$0xff]  }
 0x1f4   :  { %2655 = vmatprep.subr.bf16.mxu0 %v7322_v57  ;;  %v7331_v57 = vld [vmem:[#allocation7 + $0xa4] ss:$8 sps:$4 sm:$0xff]  }
 0x1f7   :  { %2656 = vmatpush1.bf16.msra.mxu0 %v7320_v59  ;;  %v7334_v59 = vld [vmem:[#allocation7 + $0xb4] ss:$8 sps:$4 sm:$0xff]  }
 0x22d   :  { %v6715_v61 = vpop.f32.mrb[12].mxu0  ;;  %v6737_v3 = vpop.f32.mrb[12].mxu1 }
 0x22e   :  { %v6716_v63 = vpop.f32.mrb[13].mxu0  ;;  %v6738_v5 = vpop.f32.mrb[13].mxu1 }
 0x22f   :  { %v6717_v1 = vadd.f32 %v6716_v63, %v6715_v61  ;;  %v6718_v2 = vpop.f32.mrb[14].mxu0  ;;  %v6739_v7 = vadd.f32 %v6738_v5, %v6737_v3  ;;  %v6740_v9 = vpop.f32.mrb[14].mxu1  ;;  %v7337_v61 = vld [vmem:[#allocation7 + $0xc4] ss:$8 sps:$4 sm:$0xff]   ;;  %v7340_v63 = vld [vmem:[#allocation7 + $0xd4] ss:$8 sps:$4 sm:$0xff]  }
 0x230   :  { %v6719_v4 = vpop.f32.mrb[15].mxu0  ;;  %v6741_v10 = vpop.f32.mrb[15].mxu1  ;;  %v7343_v2 = vld [vmem:[#allocation7 + $0xe4] ss:$8 sps:$4 sm:$0xff]   ;;  %v7341_v3 = vld [vmem:[#allocation7 + $0xe0] ss:$8 sps:$4 sm:$0xff]  }
 0x231   :  { %v1814_v6 = vadd.f32 %v6717_v1, %v1202_v62  ;;  %v7335_v62 = vld [vmem:[#allocation7 + $0xc0] ss:$8 sps:$4 sm:$0xff]   ;;  %v7338_v1 = vld [vmem:[#allocation7 + $0xd0] ss:$8 sps:$4 sm:$0xff]   ;;  %v7346_v4 = vld [vmem:[#allocation7 + $0xf4] ss:$8 sps:$4 sm:$0xff]  }
 0x232   :  { %v7344_v5 = vld [vmem:[#allocation7 + $0xf0] ss:$8 sps:$4 sm:$0xff]   ;;  %v7352_v9 = vld [vmem:[#allocation7 + $0x114] ss:$8 sps:$4 sm:$0xff]  }
 0x233   :  { %v1854_v16 = vadd.f32 %v6739_v7, %v1814_v6  ;;  %v7349_v6 = vld [vmem:[#allocation7 + $0x104] ss:$8 sps:$4 sm:$0xff]   ;;  %v7347_v7 = vld [vmem:[#allocation7 + $0x100] ss:$8 sps:$4 sm:$0xff]   ;;  %v7350_v10 = vld [vmem:[#allocation7 + $0x110] ss:$8 sps:$4 sm:$0xff]  }
 0x24d   :  { %v6759_v17 = vpop.f32.mrb[16].mxu0 }
 0x24e   :  { %v6760_v18 = vpop.f32.mrb[17].mxu0 }
 0x24f   :  { %v6761_v19 = vadd.f32 %v6760_v18, %v6759_v17  ;;  %v6762_v20 = vpop.f32.mrb[18].mxu0  ;;  %v6781_v21 = vpop.f32.mrb[16].mxu1  ;;  %v7353_v17 = vld [vmem:[#allocation7 + $0x120] ss:$8 sps:$4 sm:$0xff]   ;;  %v7358_v18 = vld [vmem:[#allocation7 + $0x134] ss:$8 sps:$4 sm:$0xff]  }
 0x250   :  { %v6763_v22 = vpop.f32.mrb[19].mxu0  ;;  %v6782_v8 = vpop.f32.mrb[17].mxu1  ;;  %v7361_v20 = vld [vmem:[#allocation7 + $0x144] ss:$8 sps:$4 sm:$0xff]  }
 0x251   :  { %v1894_v23 = vadd.f32 %v6761_v19, %v1854_v16  ;;  %v6783_v24 = vadd.f32 %v6782_v8, %v6781_v21  ;;  %v6784_v25 = vpop.f32.mrb[18].mxu1  ;;  %v7355_v16 = vld [vmem:[#allocation7 + $0x124] ss:$8 sps:$4 sm:$0xff]   ;;  %v7356_v19 = vld [vmem:[#allocation7 + $0x130] ss:$8 sps:$4 sm:$0xff]  }
 0x252   :  { %v6785_v26 = vpop.f32.mrb[19].mxu1  ;;  %v7359_v21 = vld [vmem:[#allocation7 + $0x140] ss:$8 sps:$4 sm:$0xff]   ;;  %v7364_v22 = vld [vmem:[#allocation7 + $0x154] ss:$8 sps:$4 sm:$0xff]  }
 0x253   :  { %v1934_v27 = vadd.f32 %v6783_v24, %v1894_v23  ;;  %v7362_v8 = vld [vmem:[#allocation7 + $0x150] ss:$8 sps:$4 sm:$0xff]   ;;  %v7367_v23 = vld [vmem:[#allocation7 + $0x164] ss:$8 sps:$4 sm:$0xff]   ;;  %v7365_v24 = vld [vmem:[#allocation7 + $0x160] ss:$8 sps:$4 sm:$0xff]  }
 0x254   :  { %v7370_v25 = vld [vmem:[#allocation7 + $0x174] ss:$8 sps:$4 sm:$0xff]   ;;  %v7368_v26 = vld [vmem:[#allocation7 + $0x170] ss:$8 sps:$4 sm:$0xff]  }
 0x26d   :  { %v6803_v28 = vpop.f32.mrb[20].mxu0 }
 0x26e   :  { %v6804_v29 = vpop.f32.mrb[21].mxu0 }
 0x26f   :  { %v6805_v30 = vadd.f32 %v6804_v29, %v6803_v28  ;;  %v6806_v31 = vpop.f32.mrb[22].mxu0  ;;  %v6825_v32 = vpop.f32.mrb[20].mxu1  ;;  %v7419_v28 = vld [vmem:[#allocation7 + $0x280] ss:$8 sps:$4 sm:$0xff]   ;;  %v7421_v29 = vld [vmem:[#allocation7 + $0x284] ss:$8 sps:$4 sm:$0xff]  }
 0x270   :  { %v6807_v33 = vpop.f32.mrb[23].mxu0  ;;  %v6826_v15 = vpop.f32.mrb[21].mxu1  ;;  %3380 = vmatprep.subr.bf16.mxu0 %v7421_v29  ;;  %v7422_v31 = vld [vmem:[#allocation7 + $0x290] ss:$8 sps:$4 sm:$0xff]   ;;  %v7371_v29 = vld [vmem:[#allocation7 + $0x180] ss:$8 sps:$4 sm:$0xff]  }
 0x271   :  { %v1974_v34 = vadd.f32 %v6805_v30, %v1934_v27  ;;  %v6827_v36 = vadd.f32 %v6826_v15, %v6825_v32  ;;  %v6828_v37 = vpop.f32.mrb[22].mxu1  ;;  %v7373_v27 = vld [vmem:[#allocation7 + $0x184] ss:$8 sps:$4 sm:$0xff]   ;;  %v7424_v30 = vld [vmem:[#allocation7 + $0x294] ss:$8 sps:$4 sm:$0xff]  }
 0x272   :  { %v6829_v38 = vpop.f32.mrb[23].mxu1  ;;  %v7427_v32 = vld [vmem:[#allocation7 + $0x2a4] ss:$8 sps:$4 sm:$0xff]   ;;  %v7425_v33 = vld [vmem:[#allocation7 + $0x2a0] ss:$8 sps:$4 sm:$0xff]  }
 0x273   :  { %v8214_v39 = vadd.f32 %v6827_v36, %v1974_v34  ;;  %v7430_v15 = vld [vmem:[#allocation7 + $0x2b4] ss:$8 sps:$4 sm:$0xff]   ;;  %v7428_v34 = vld [vmem:[#allocation7 + $0x2b0] ss:$8 sps:$4 sm:$0xff]   ;;  %v7433_v36 = vld [vmem:[#allocation7 + $0x2c4] ss:$8 sps:$4 sm:$0xff]  }
 0x274   :  { %v7431_v37 = vld [vmem:[#allocation7 + $0x2c0] ss:$8 sps:$4 sm:$0xff]   ;;  %v7436_v38 = vld [vmem:[#allocation7 + $0x2d4] ss:$8 sps:$4 sm:$0xff]  }
 0x28d   :  { %v2164_v43 = vpop.f32.mrb[24].mxu0 }
 0x28e   :  { %v2165_v44 = vadd.f32 %v2164_v43, %v2043_v41  ;;  %v2166_v45 = vpop.f32.mrb[25].mxu0  ;;  %v7439_v41 = vld [vmem:[#allocation7 + $0x2e4] ss:$8 sps:$4 sm:$0xff]   ;;  %v7437_v43 = vld [vmem:[#allocation7 + $0x2e0] ss:$8 sps:$4 sm:$0xff]  }
 0x28f   :  { %v2167_v46 = vadd.f32 %v2166_v45, %v2047_v42  ;;  %v2168_v47 = vpop.f32.mrb[26].mxu0  ;;  %v8218_v42 = vld [vmem:[#allocation2 + $0x3] ss:$8 sm:$0xf] }
 0x290   :  { %v2171_v48 = vmul.f32 0.01, %v2165_v44  ;;  %v2169_v49 = vpop.f32.mrb[27].mxu0  ;;  %v2247_v45 = vrot.slane %v8218_v42, %v8177_v11  ;;  %v2259_v47 = vrot.slane %v8218_v42, %v8183_v13 }
 0x291   :  { %v2172_v50 = vmul.f32 0.01, %v2167_v46 }
 0x292   :  { %v2173_v51 = vmax.f32 %v2165_v44, %v2171_v48  ;;  %v7442_v44 = vld [vmem:[#allocation7 + $0x2f4] ss:$8 sps:$4 sm:$0xff]   ;;  %v7440_v48 = vld [vmem:[#allocation7 + $0x2f0] ss:$8 sps:$4 sm:$0xff]  }
 0x293   :  { %v2174_v52 = vmax.f32 %v2167_v46, %v2172_v50  ;;  %v2251_v46 = vrot.slane %v8218_v42, %v8180_v12 }
 0x294   :  { %v2239_v35 = vpack.c.bf16 %v2173_v51, %v2173_v51  ;;  %v7445_v51 = vld [vmem:[#allocation7 + $0x304] ss:$8 sps:$4 sm:$0xff]  }
 0x295   :  { %v2240_v53 = vpack.c.bf16 %v2174_v52, %v2174_v52 }
 0x297   :  { %2616 = vmatprep.mubr.bf16.mxu1 %v2240_v53  ;;  %2657 = vmatprep.mubr.bf16.mxu0 %v2240_v53 }
 0x298   :  { %2617 = vmatmul.mubr.bf16.vlgmr.msra.gmra.mrb[24].mxu1 %v2239_v35  ;;  %2658 = vmatmul.mubr.bf16.vlgmr.msra.gmra.mrb[28].mxu0 %v2239_v35 }
 0x299   :  { %3088 = vmatpush1.bf16.msra.mxu1 %v7323_v54  ;;  %3381 = vmatpush1.bf16.msra.mxu0 %v7419_v28 }
 0x29a   :  { %3089 = vmatprep.subr.bf16.mxu1 %v7328_v55  ;;  %3382 = vmatprep.subr.bf16.mxu0 %v7424_v30 }
 0x29d   :  { %3090 = vmatpush1.bf16.msra.mxu1 %v7326_v56  ;;  %3383 = vmatpush1.bf16.msra.mxu0 %v7422_v31  ;;  %v7376_v31 = vld [vmem:[#allocation7 + $0x194] ss:$8 sps:$4 sm:$0xff]  }
 0x29e   :  { %3091 = vmatprep.subr.bf16.mxu1 %v7331_v57  ;;  %3384 = vmatprep.subr.bf16.mxu0 %v7427_v32 }
 0x2a1   :  { %3092 = vmatpush1.bf16.msra.mxu1 %v7329_v58  ;;  %3385 = vmatpush1.bf16.msra.mxu0 %v7425_v33  ;;  %v7374_v33 = vld [vmem:[#allocation7 + $0x190] ss:$8 sps:$4 sm:$0xff]  }
 0x2a2   :  { %3093 = vmatprep.subr.bf16.mxu1 %v7334_v59  ;;  %3386 = vmatprep.subr.bf16.mxu0 %v7430_v15  ;;  %v7379_v15 = vld [vmem:[#allocation7 + $0x1a4] ss:$8 sps:$4 sm:$0xff]  }
 0x2a5   :  { %3094 = vmatpush1.bf16.msra.mxu1 %v7332_v60  ;;  %3387 = vmatpush1.bf16.msra.mxu0 %v7428_v34  ;;  %v7377_v34 = vld [vmem:[#allocation7 + $0x1a0] ss:$8 sps:$4 sm:$0xff]  }
 0x2a6   :  { %3095 = vmatprep.subr.bf16.mxu1 %v7337_v61  ;;  %3388 = vmatprep.subr.bf16.mxu0 %v7433_v36  ;;  %v7443_v61 = vld [vmem:[#allocation7 + $0x300] ss:$8 sps:$4 sm:$0xff]   ;;  %v7382_v36 = vld [vmem:[#allocation7 + $0x1b4] ss:$8 sps:$4 sm:$0xff]  }
 0x2a9   :  { %3096 = vmatpush1.bf16.msra.mxu1 %v7335_v62  ;;  %3389 = vmatpush1.bf16.msra.mxu0 %v7431_v37  ;;  %v7380_v37 = vld [vmem:[#allocation7 + $0x1b0] ss:$8 sps:$4 sm:$0xff]  }
 0x2aa   :  { %3097 = vmatprep.subr.bf16.mxu1 %v7340_v63  ;;  %3390 = vmatprep.subr.bf16.mxu0 %v7436_v38  ;;  %v7385_v38 = vld [vmem:[#allocation7 + $0x1c4] ss:$8 sps:$4 sm:$0xff]  }
 0x2ad   :  { %3098 = vmatpush1.bf16.msra.mxu1 %v7338_v1  ;;  %3391 = vmatpush1.bf16.msra.mxu0 %v7434_v40  ;;  %v7448_v1 = vld [vmem:[#allocation7 + $0x314] ss:$8 sps:$4 sm:$0xff]   ;;  %v7383_v40 = vld [vmem:[#allocation7 + $0x1c0] ss:$8 sps:$4 sm:$0xff]  }
 0x2ae   :  { %3099 = vmatprep.subr.bf16.mxu1 %v7343_v2  ;;  %3392 = vmatprep.subr.bf16.mxu0 %v7439_v41  ;;  %v7388_v41 = vld [vmem:[#allocation7 + $0x1d4] ss:$8 sps:$4 sm:$0xff]  }
 0x2b1   :  { %3100 = vmatpush1.bf16.msra.mxu1 %v7341_v3  ;;  %3393 = vmatpush1.bf16.msra.mxu0 %v7437_v43  ;;  %v2255_v43 = vrot.slane %v8218_v42, %v8186_v14  ;;  %v7400_v42 = vld [vmem:[#allocation7 + $0x214] ss:$8 sps:$4 sm:$0xff]  }
 0x2b2   :  { %3101 = vmatprep.subr.bf16.mxu1 %v7346_v4  ;;  %3394 = vmatprep.subr.bf16.mxu0 %v7442_v44  ;;  %v7386_v44 = vld [vmem:[#allocation7 + $0x1d0] ss:$8 sps:$4 sm:$0xff]  }
 0x2b5   :  { %3102 = vmatpush1.bf16.msra.mxu1 %v7344_v5  ;;  %3395 = vmatpush1.bf16.msra.mxu0 %v7440_v48  ;;  %v7446_v5 = vld [vmem:[#allocation7 + $0x310] ss:$8 sps:$4 sm:$0xff]   ;;  %v7394_v48 = vld [vmem:[#allocation7 + $0x1f4] ss:$8 sps:$4 sm:$0xff]  }
 0x2b6   :  { %3103 = vmatprep.subr.bf16.mxu1 %v7349_v6  ;;  %3396 = vmatprep.subr.bf16.mxu0 %v7445_v51  ;;  %v7451_v6 = vld [vmem:[#allocation7 + $0x324] ss:$8 sps:$4 sm:$0xff]   ;;  %v7392_v51 = vld [vmem:[#allocation7 + $0x1f0] ss:$8 sps:$4 sm:$0xff]  }
 0x2b9   :  { %3104 = vmatpush1.bf16.msra.mxu1 %v7347_v7  ;;  %3397 = vmatpush1.bf16.msra.mxu0 %v7443_v61  ;;  %v7449_v7 = vld [vmem:[#allocation7 + $0x320] ss:$8 sps:$4 sm:$0xff]  }
 0x2ba   :  { %3105 = vmatprep.subr.bf16.mxu1 %v7352_v9  ;;  %3398 = vmatprep.subr.bf16.mxu0 %v7448_v1  ;;  %v7454_v9 = vld [vmem:[#allocation7 + $0x334] ss:$8 sps:$4 sm:$0xff]   ;;  %v7407_v61 = vld [vmem:[#allocation7 + $0x240] ss:$8 sps:$4 sm:$0xff]   ;;  %v7415_v1 = vld [vmem:[#allocation7 + $0x264] ss:$8 sps:$4 sm:$0xff]  }
 0x2bd   :  { %3106 = vmatpush1.bf16.msra.mxu1 %v7350_v10  ;;  %3399 = vmatpush1.bf16.msra.mxu0 %v7446_v5  ;;  %v7452_v10 = vld [vmem:[#allocation7 + $0x330] ss:$8 sps:$4 sm:$0xff]  }
 0x2be   :  { %3107 = vmatprep.subr.bf16.mxu1 %v7355_v16  ;;  %3400 = vmatprep.subr.bf16.mxu0 %v7451_v6  ;;  %v7457_v16 = vld [vmem:[#allocation7 + $0x344] ss:$8 sps:$4 sm:$0xff]  }
 0x2c1   :  { %3108 = vmatpush1.bf16.msra.mxu1 %v7353_v17  ;;  %3401 = vmatpush1.bf16.msra.mxu0 %v7449_v7  ;;  %v7463_v7 = vld [vmem:[#allocation7 + $0x364] ss:$8 sps:$4 sm:$0xff]  }
 0x2c2   :  { %3109 = vmatprep.subr.bf16.mxu1 %v7358_v18  ;;  %3402 = vmatprep.subr.bf16.mxu0 %v7454_v9  ;;  %v7461_v9 = vld [vmem:[#allocation7 + $0x360] ss:$8 sps:$4 sm:$0xff]  }
 0x2c5   :  { %3110 = vmatpush1.bf16.msra.mxu1 %v7356_v19  ;;  %3403 = vmatpush1.bf16.msra.mxu0 %v7452_v10  ;;  %v7466_v10 = vld [vmem:[#allocation7 + $0x374] ss:$8 sps:$4 sm:$0xff]  }
 0x2c6   :  { %3111 = vmatprep.subr.bf16.mxu1 %v7361_v20  ;;  %v7455_v20 = vld [vmem:[#allocation7 + $0x340] ss:$8 sps:$4 sm:$0xff]   ;;  %3404 = vmatprep.subr.bf16.mxu0 %v7457_v16  ;;  %v7464_v16 = vld [vmem:[#allocation7 + $0x370] ss:$8 sps:$4 sm:$0xff]  }
 0x2c9   :  { %3112 = vmatpush1.bf16.msra.mxu1 %v7359_v21  ;;  %3405 = vmatpush1.bf16.msra.mxu0 %v7455_v20 }
 0x2ca   :  { %3113 = vmatprep.subr.bf16.mxu1 %v7364_v22 }
 0x2cd   :  { %3114 = vmatpush1.bf16.msra.mxu1 %v7362_v8  ;;  %v7460_v8 = vld [vmem:[#allocation7 + $0x354] ss:$8 sps:$4 sm:$0xff]  }
 0x2ce   :  { %3115 = vmatprep.subr.bf16.mxu1 %v7367_v23  ;;  %3406 = vmatprep.subr.bf16.mxu0 %v7460_v8 }
 0x2d1   :  { %3116 = vmatpush1.bf16.msra.mxu1 %v7365_v24  ;;  %v7458_v24 = vld [vmem:[#allocation7 + $0x350] ss:$8 sps:$4 sm:$0xff]  }
 0x2d2   :  { %3117 = vmatprep.subr.bf16.mxu1 %v7370_v25  ;;  %3407 = vmatpush1.bf16.msra.mxu0 %v7458_v24 }
 0x2d3   :  { %3408 = vmatprep.subr.bf16.mxu0 %v7463_v7 }
 0x2d5   :  { %3118 = vmatpush1.bf16.msra.mxu1 %v7368_v26 }
 0x2d6   :  { %3128 = vmatprep.subr.bf16.mxu1 %v7373_v27  ;;  %3409 = vmatpush1.bf16.msra.mxu0 %v7461_v9 }
 0x2d7   :  { %3410 = vmatprep.subr.bf16.mxu0 %v7466_v10 }
 0x2da   :  { %3411 = vmatpush1.bf16.msra.mxu0 %v7464_v16 }
 0x36b   :  { %v2618_v49 = vpop.f32.mrb[24].mxu1  ;;  %v8226_v50 = vpop.f32.mrb[28].mxu0 }
 0x36c   :  { %v2619_v52 = vadd.f32 %v2618_v49, %v2247_v45  ;;  %v2620_v53 = vpop.f32.mrb[25].mxu1  ;;  %v2661_v54 = vpop.f32.mrb[29].mxu0  ;;  %v7391_v45 = vld [vmem:[#allocation7 + $0x1e4] ss:$8 sps:$4 sm:$0xff]  }
 0x36d   :  { %v2621_v35 = vadd.f32 %v2620_v53, %v2251_v46  ;;  %v2662_v55 = vadd.f32 %v2661_v54, %v2259_v47  ;;  %v2622_v56 = vpop.f32.mrb[26].mxu1  ;;  %v2663_v57 = vpop.f32.mrb[30].mxu0  ;;  %v2660_v46 = vadd.f32 %v8226_v50, %v2255_v43  ;;  %v7389_v47 = vld [vmem:[#allocation7 + $0x1e0] ss:$8 sps:$4 sm:$0xff]   ;;  %v7484_v43 = vld [vmem:[#allocation7 + $0x3d4] ss:$8 sps:$4 sm:$0xff]  }
 0x36e   :  { %v2666_v58 = vsub.f32 0.0, %v2619_v52  ;;  %v2623_v59 = vpop.f32.mrb[27].mxu1  ;;  %v2664_v60 = vpop.f32.mrb[31].mxu0  ;;  %v7397_v52 = vld [vmem:[#allocation7 + $0x204] ss:$8 sps:$4 sm:$0xff]  }
 0x36f   :  { %v2667_v62 = vsub.f32 0.0, %v2621_v35  ;;  %v2669_v63 = vsub.f32 0.0, %v2662_v55  ;;  %v2668_v49 = vsub.f32 0.0, %v2660_v46  ;;  %v7395_v54 = vld [vmem:[#allocation7 + $0x200] ss:$8 sps:$4 sm:$0xff]  }
 0x370   :  { %v2670_v2 = vmul.f32 1.442695, %v2666_v58  ;;  %v7398_v35 = vld [vmem:[#allocation7 + $0x210] ss:$8 sps:$4 sm:$0xff]   ;;  %v7403_v55 = vld [vmem:[#allocation7 + $0x224] ss:$8 sps:$4 sm:$0xff]  }
 0x371   :  { %v2672_v3 = vmul.f32 1.442695, %v2667_v62  ;;  %v2676_v4 = vmul.f32 1.442695, %v2669_v63  ;;  %v2674_v53 = vmul.f32 1.442695, %v2668_v49 }
 0x372   :  { %7899 = vpow2.f32 %v2670_v2  ;;  %v7401_v50 = vld [vmem:[#allocation7 + $0x220] ss:$8 sps:$4 sm:$0xff]   ;;  %v7406_v56 = vld [vmem:[#allocation7 + $0x234] ss:$8 sps:$4 sm:$0xff]   ;;  %v7404_v57 = vld [vmem:[#allocation7 + $0x230] ss:$8 sps:$4 sm:$0xff]  }
 0x373   :  { %7901 = vpow2.f32 %v2672_v3  ;;  %v7409_v59 = vld [vmem:[#allocation7 + $0x244] ss:$8 sps:$4 sm:$0xff]   ;;  %v7412_v62 = vld [vmem:[#allocation7 + $0x254] ss:$8 sps:$4 sm:$0xff]   ;;  %v7410_v63 = vld [vmem:[#allocation7 + $0x250] ss:$8 sps:$4 sm:$0xff]  }
 0x374   :  { %7903 = vpow2.f32 %v2676_v4  ;;  %v7413_v2 = vld [vmem:[#allocation7 + $0x260] ss:$8 sps:$4 sm:$0xff]   ;;  %v7418_v3 = vld [vmem:[#allocation7 + $0x274] ss:$8 sps:$4 sm:$0xff]   ;;  %v7416_v4 = vld [vmem:[#allocation7 + $0x270] ss:$8 sps:$4 sm:$0xff]  }
 0x375   :  { %v7485_v46 = vld [vmem:[#allocation7 + $0x3e0] ss:$8 sps:$4 sm:$0xff]   ;;  %v7493_v49 = vld [vmem:[#allocation7 + $0x404] ss:$8 sps:$4 sm:$0xff]  }
 0x37c   :  { %v7900_v17 = vpop.eup %7899 }
 0x37d   :  { %v2678_v18 = vadd.f32 1.0, %v7900_v17  ;;  %v7902_v19 = vpop.eup %7901  ;;  %v7469_v17 = vld [vmem:[#allocation7 + $0x384] ss:$8 sps:$4 sm:$0xff]  }
 0x37e   :  { %v7904_v21 = vpop.eup %7903  ;;  %v2679_v22 = vadd.f32 1.0, %v7902_v19  ;;  %3632 = vmatprep.subr.bf16.mxu0 %v7469_v17 }
 0x37f   :  { %7905 = vrcp.f32 %v2678_v18  ;;  %v2681_v23 = vadd.f32 1.0, %v7904_v21  ;;  %v2755_v18 = vld [vmem:[#allocation2 + $0x4] ss:$8 sm:$0x3] }
 0x380   :  { %7907 = vrcp.f32 %v2679_v22  ;;  %v2760_v19 = vrot.slane %v2755_v18, %v8177_v11  ;;  %v2764_v20 = vrot.slane %v2755_v18, %v8180_v12 }
 0x381   :  { %7909 = vrcp.f32 %v2681_v23 }
 0x382   :  { %7911 = vpow2.f32 %v2674_v53  ;;  %v7494_v53 = vld [vmem:[#allocation7 + $0x410] ss:$8 sps:$4 sm:$0xff]  }
 0x389   :  { %v7906_v25 = vpop.eup %7905 }
 0x38a   :  { %v7908_v26 = vpop.eup %7907  ;;  %v2750_v30 = vpack.c.bf16 %v7906_v25, %v7906_v25 }
 0x38b   :  { %v7910_v27 = vpop.eup %7909  ;;  %v2751_v28 = vpack.c.bf16 %v7908_v26, %v7908_v26 }
 0x38c   :  { %v2753_v32 = vpack.c.bf16 %v7910_v27, %v7910_v27  ;;  %v7912_v58 = vpop.eup %7911 }
 0x38d   :  { %3119 = vmatprep.mubr.bf16.mxu1 %v2751_v28  ;;  %v2680_v60 = vadd.f32 1.0, %v7912_v58  ;;  %v7506_v58 = vld [vmem:[#allocation7 + $0x450] ss:$8 sps:$4 sm:$0xff]  }
 0x38e   :  { %3120 = vmatmul.mubr.bf16.vlgmr.msra.gmra.mrb[28].mxu1 %v2750_v30 }
 0x38f   :  { %3129 = vmatpush1.bf16.msra.mxu1 %v7371_v29  ;;  %3160 = vmatprep.mubr.bf16.mxu1 %v2753_v32  ;;  %7913 = vrcp.f32 %v2680_v60  ;;  %v7509_v60 = vld [vmem:[#allocation7 + $0x460] ss:$8 sps:$4 sm:$0xff]  }
 0x390   :  { %3130 = vmatprep.subr.bf16.mxu1 %v7376_v31  ;;  %v7467_v31 = vld [vmem:[#allocation7 + $0x380] ss:$8 sps:$4 sm:$0xff]  }
 0x393   :  { %3131 = vmatpush1.bf16.msra.mxu1 %v7374_v33  ;;  %v7472_v33 = vld [vmem:[#allocation7 + $0x394] ss:$8 sps:$4 sm:$0xff]  }
 0x394   :  { %3132 = vmatprep.subr.bf16.mxu1 %v7379_v15  ;;  %v7470_v15 = vld [vmem:[#allocation7 + $0x390] ss:$8 sps:$4 sm:$0xff]  }
 0x397   :  { %3133 = vmatpush1.bf16.msra.mxu1 %v7377_v34  ;;  %v7475_v34 = vld [vmem:[#allocation7 + $0x3a4] ss:$8 sps:$4 sm:$0xff]  }
 0x398   :  { %3134 = vmatprep.subr.bf16.mxu1 %v7382_v36  ;;  %v7473_v36 = vld [vmem:[#allocation7 + $0x3a0] ss:$8 sps:$4 sm:$0xff]  }
 0x399   :  { %v7914_v5 = vpop.eup %7913 }
 0x39a   :  { %v2752_v6 = vpack.c.bf16 %v7914_v5, %v7914_v5 }
 0x39b   :  { %3135 = vmatpush1.bf16.msra.mxu1 %v7380_v37  ;;  %v7478_v37 = vld [vmem:[#allocation7 + $0x3b4] ss:$8 sps:$4 sm:$0xff]  }
 0x39c   :  { %3136 = vmatprep.subr.bf16.mxu1 %v7385_v38  ;;  %v7476_v38 = vld [vmem:[#allocation7 + $0x3b0] ss:$8 sps:$4 sm:$0xff]  }
 0x39f   :  { %3137 = vmatpush1.bf16.msra.mxu1 %v7383_v40  ;;  %v7481_v40 = vld [vmem:[#allocation7 + $0x3c4] ss:$8 sps:$4 sm:$0xff]  }
 0x3a0   :  { %3138 = vmatprep.subr.bf16.mxu1 %v7388_v41  ;;  %v7479_v41 = vld [vmem:[#allocation7 + $0x3c0] ss:$8 sps:$4 sm:$0xff]  }
 0x3a3   :  { %3139 = vmatpush1.bf16.msra.mxu1 %v7386_v44  ;;  %v7482_v44 = vld [vmem:[#allocation7 + $0x3d0] ss:$8 sps:$4 sm:$0xff]  }
 0x3a4   :  { %3140 = vmatprep.subr.bf16.mxu1 %v7391_v45  ;;  %v7487_v45 = vld [vmem:[#allocation7 + $0x3e4] ss:$8 sps:$4 sm:$0xff]  }
 0x3a7   :  { %3141 = vmatpush1.bf16.msra.mxu1 %v7389_v47  ;;  %v7490_v47 = vld [vmem:[#allocation7 + $0x3f4] ss:$8 sps:$4 sm:$0xff]  }
 0x3a8   :  { %3142 = vmatprep.subr.bf16.mxu1 %v7394_v48  ;;  %v7488_v48 = vld [vmem:[#allocation7 + $0x3f0] ss:$8 sps:$4 sm:$0xff]  }
 0x3ab   :  { %3143 = vmatpush1.bf16.msra.mxu1 %v7392_v51  ;;  %v7491_v51 = vld [vmem:[#allocation7 + $0x400] ss:$8 sps:$4 sm:$0xff]  }
 0x3ac   :  { %3144 = vmatprep.subr.bf16.mxu1 %v7397_v52  ;;  %v7496_v52 = vld [vmem:[#allocation7 + $0x414] ss:$8 sps:$4 sm:$0xff]  }
 0x3af   :  { %3145 = vmatpush1.bf16.msra.mxu1 %v7395_v54  ;;  %v7499_v54 = vld [vmem:[#allocation7 + $0x424] ss:$8 sps:$4 sm:$0xff]  }
 0x3b0   :  { %3146 = vmatprep.subr.bf16.mxu1 %v7400_v42  ;;  %v7497_v42 = vld [vmem:[#allocation7 + $0x420] ss:$8 sps:$4 sm:$0xff]  }
 0x3b3   :  { %3147 = vmatpush1.bf16.msra.mxu1 %v7398_v35  ;;  %v7502_v35 = vld [vmem:[#allocation7 + $0x434] ss:$8 sps:$4 sm:$0xff]  }
 0x3b4   :  { %3148 = vmatprep.subr.bf16.mxu1 %v7403_v55  ;;  %v7500_v55 = vld [vmem:[#allocation7 + $0x430] ss:$8 sps:$4 sm:$0xff]  }
 0x3b7   :  { %3149 = vmatpush1.bf16.msra.mxu1 %v7401_v50  ;;  %v7505_v50 = vld [vmem:[#allocation7 + $0x444] ss:$8 sps:$4 sm:$0xff]  }
 0x3b8   :  { %3150 = vmatprep.subr.bf16.mxu1 %v7406_v56  ;;  %v7503_v56 = vld [vmem:[#allocation7 + $0x440] ss:$8 sps:$4 sm:$0xff]  }
 0x3bb   :  { %3151 = vmatpush1.bf16.msra.mxu1 %v7404_v57  ;;  %v7508_v57 = vld [vmem:[#allocation7 + $0x454] ss:$8 sps:$4 sm:$0xff]  }
 0x3bc   :  { %3152 = vmatprep.subr.bf16.mxu1 %v7409_v59  ;;  %v7511_v59 = vld [vmem:[#allocation7 + $0x464] ss:$8 sps:$4 sm:$0xff]  }
 0x3bf   :  { %3153 = vmatpush1.bf16.msra.mxu1 %v7407_v61  ;;  %v7514_v61 = vld [vmem:[#allocation7 + $0x474] ss:$8 sps:$4 sm:$0xff]  }
 0x3c0   :  { %3154 = vmatprep.subr.bf16.mxu1 %v7412_v62  ;;  %v7512_v62 = vld [vmem:[#allocation7 + $0x470] ss:$8 sps:$4 sm:$0xff]  }
 0x3c3   :  { %3155 = vmatpush1.bf16.msra.mxu1 %v7410_v63  ;;  %v3208_v63 = vld [vmem:[#allocation2 + $0x5] ss:$8 sm:$0x3] }
 0x3c4   :  { %3156 = vmatprep.subr.bf16.mxu1 %v7415_v1  ;;  %v3213_v1 = vrot.slane %v3208_v63, %v8177_v11 }
 0x3c7   :  { %3157 = vmatpush1.bf16.msra.mxu1 %v7413_v2  ;;  %v3217_v2 = vrot.slane %v3208_v63, %v8180_v12  ;;  %v7536_v63 = vld [vmem:[#allocation6 + $0x3a8] sm:$0xff]  }
 0x3c8   :  { %3158 = vmatprep.subr.bf16.mxu1 %v7418_v3 }
 0x3cb   :  { %3159 = vmatpush1.bf16.msra.mxu1 %v7416_v4 }
 0x3ce   :  { %3161 = vmatmul.mubr.bf16.vlgmr.msra.gmra.mrb[28].mxu1 %v2752_v6 }
 0x4a1   :  { %v3162_v21 = vpop.f32.mrb[28].mxu1 }
 0x4a2   :  { %v6933_v22 = vadd.f32 %v3162_v21, %v2760_v19  ;;  %v3164_v8 = vpop.f32.mrb[29].mxu1  ;;  %v7515_v21 = vld [vmem:[#allocation6 + $0x340] sm:$0xff]  }
 0x4a3   :  { %v6934_v23 = vadd.f32 %v3164_v8, %v2764_v20  ;;  %v3166_v24 = vpop.f32.mrb[30].mxu1  ;;  %6831 = vmatprep.subr.bf16.mxu1 %v7515_v21  ;;  %v7517_v8 = vld [vmem:[#allocation6 + $0x348] sm:$0xff]   ;;  %v7578_v21 = vld [vmem:[#allocation7 + $0x550] ss:$8 sps:$4 sm:$0xff]  }
 0x4a4   :  { %v3169_v25 = vmul.f32 0.01, %v6933_v22  ;;  %v3167_v26 = vpop.f32.mrb[31].mxu1  ;;  %v7519_v24 = vld [vmem:[#allocation6 + $0x350] sm:$0xff]  }
 0x4a5   :  { %v3170_v27 = vmul.f32 0.01, %v6934_v23  ;;  %v7521_v26 = vld [vmem:[#allocation6 + $0x358] sm:$0xff]  }
 0x4a6   :  { %v3171_v28 = vmax.f32 %v6933_v22, %v3169_v25  ;;  %v7516_v22 = vld [vmem:[#allocation6 + $0x300] sm:$0xff]   ;;  %v7520_v25 = vld [vmem:[#allocation6 + $0x310] sm:$0xff]  }
 0x4a7   :  { %v3172_v29 = vmax.f32 %v6934_v23, %v3170_v27  ;;  %6832 = vmatpush3.bf16.msra.mxu1 %v7516_v22  ;;  %v7518_v23 = vld [vmem:[#allocation6 + $0x308] sm:$0xff]   ;;  %v7522_v27 = vld [vmem:[#allocation6 + $0x318] sm:$0xff]  }
 0x4a8   :  { %v3205_v32 = vpack.c.bf16 %v3171_v28, %v3171_v28  ;;  %6833 = vmatprep.subr.bf16.mxu1 %v7517_v8  ;;  %v7523_v28 = vld [vmem:[#allocation6 + $0x360] sm:$0xff]  }
 0x4a9   :  { %v3206_v30 = vpack.c.bf16 %v3172_v29, %v3172_v29  ;;  %v7524_v29 = vld [vmem:[#allocation6 + $0x320] sm:$0xff]  }
 0x4aa   :  { %v7583_v22 = vld [vmem:[#allocation7 + $0x564] ss:$8 sps:$4 sm:$0xff]   ;;  %v7581_v8 = vld [vmem:[#allocation7 + $0x560] ss:$8 sps:$4 sm:$0xff]  }
 0x4ab   :  { %3412 = vmatprep.mubr.bf16.mxu0 %v3206_v30  ;;  %6834 = vmatpush3.bf16.msra.mxu1 %v7518_v23  ;;  %v7525_v30 = vld [vmem:[#allocation6 + $0x368] sm:$0xff]  }
 0x4ac   :  { %3413 = vmatmul.mubr.bf16.vlgmr.msra.gmra.mrb[32].mxu0 %v3205_v32  ;;  %6835 = vmatprep.subr.bf16.mxu1 %v7519_v24  ;;  %v7527_v32 = vld [vmem:[#allocation6 + $0x370] sm:$0xff]   ;;  %v3717_v24 = vld [vmem:[#allocation2 + $0x7] ss:$0 sm:$0xff] }
 0x4ad   :  { %3633 = vmatpush1.bf16.msra.mxu0 %v7467_v31  ;;  %v7526_v31 = vld [vmem:[#allocation6 + $0x328] sm:$0xff]  }
 0x4ae   :  { %3634 = vmatprep.subr.bf16.mxu0 %v7472_v33  ;;  %v7528_v33 = vld [vmem:[#allocation6 + $0x330] sm:$0xff]  }
 0x4af   :  { %6836 = vmatpush3.bf16.msra.mxu1 %v7520_v25 }
 0x4b0   :  { %6837 = vmatprep.subr.bf16.mxu1 %v7521_v26 }
 0x4b1   :  { %3635 = vmatpush1.bf16.msra.mxu0 %v7470_v15  ;;  %v7529_v15 = vld [vmem:[#allocation6 + $0x378] sm:$0xff]  }
 0x4b2   :  { %3636 = vmatprep.subr.bf16.mxu0 %v7475_v34  ;;  %v7530_v34 = vld [vmem:[#allocation6 + $0x338] sm:$0xff]  }
 0x4b3   :  { %6838 = vmatpush3.bf16.msra.mxu1 %v7522_v27 }
 0x4b4   :  { %6839 = vmatprep.subr.bf16.mxu1 %v7523_v28 }
 0x4b5   :  { %3637 = vmatpush1.bf16.msra.mxu0 %v7473_v36  ;;  %v7531_v36 = vld [vmem:[#allocation6 + $0x380] sm:$0xff]  }
 0x4b6   :  { %3638 = vmatprep.subr.bf16.mxu0 %v7478_v37  ;;  %v8055_v37 = vmov 0.0  }
 0x4b7   :  { %6840 = vmatpush3.bf16.msra.mxu1 %v7524_v29 }
 0x4b8   :  { %6841 = vmatprep.subr.bf16.mxu1 %v7525_v30 }
 0x4b9   :  { %3639 = vmatpush1.bf16.msra.mxu0 %v7476_v38  ;;  %v7532_v38 = vld [vmem:[#allocation6 + $0x388] sm:$0xff]  }
 0x4ba   :  { %3640 = vmatprep.subr.bf16.mxu0 %v7481_v40  ;;  %v7533_v40 = vld [vmem:[#allocation6 + $0x390] sm:$0xff]  }
 0x4bb   :  { %6842 = vmatpush3.bf16.msra.mxu1 %v7526_v31 }
 0x4bc   :  { %6843 = vmatprep.subr.bf16.mxu1 %v7527_v32  ;;  %v7539_v32 = vld [vmem:[#allocation7 + $0x480] ss:$8 sps:$4 sm:$0xff]  }
 0x4bd   :  { %3641 = vmatpush1.bf16.msra.mxu0 %v7479_v41  ;;  %v7534_v41 = vld [vmem:[#allocation6 + $0x398] sm:$0xff]  }
 0x4be   :  { %3642 = vmatprep.subr.bf16.mxu0 %v7484_v43  ;;  %v7535_v43 = vld [vmem:[#allocation6 + $0x3a0] sm:$0xff]  }
 0x4bf   :  { %6844 = vmatpush3.bf16.msra.mxu1 %v7528_v33 }
 0x4c0   :  { %6845 = vmatprep.subr.bf16.mxu1 %v7529_v15  ;;  %v7544_v15 = vld [vmem:[#allocation7 + $0x494] ss:$8 sps:$4 sm:$0xff]  }
 0x4c1   :  { %3643 = vmatpush1.bf16.msra.mxu0 %v7482_v44  ;;  %v3460_v44 = vld [vmem:[#allocation2 + $0x6] ss:$8 sm:$0x3] }
 0x4c2   :  { %3644 = vmatprep.subr.bf16.mxu0 %v7487_v45  ;;  %v3465_v45 = vrot.slane %v3460_v44, %v8177_v11 }
 0x4c3   :  { %6846 = vmatpush3.bf16.msra.mxu1 %v7530_v34  ;;  %v7542_v34 = vld [vmem:[#allocation7 + $0x490] ss:$8 sps:$4 sm:$0xff]  }
 0x4c5   :  { %3645 = vmatpush1.bf16.msra.mxu0 %v7485_v46  ;;  %v3469_v46 = vrot.slane %v3460_v44, %v8180_v12  ;;  %v7551_v44 = vld [vmem:[#allocation7 + $0x4c0] ss:$8 sps:$4 sm:$0xff]  }
 0x4c6   :  { %3646 = vmatprep.subr.bf16.mxu0 %v7490_v47 }
 0x4c9   :  { %3647 = vmatpush1.bf16.msra.mxu0 %v7488_v48 }
 0x4ca   :  { %3648 = vmatprep.subr.bf16.mxu0 %v7493_v49 }
 0x4cd   :  { %3649 = vmatpush1.bf16.msra.mxu0 %v7491_v51 }
 0x4ce   :  { %3650 = vmatprep.subr.bf16.mxu0 %v7496_v52 }
 0x4d1   :  { %3651 = vmatpush1.bf16.msra.mxu0 %v7494_v53 }
 0x4d2   :  { %3652 = vmatprep.subr.bf16.mxu0 %v7499_v54 }
 0x4d5   :  { %3653 = vmatpush1.bf16.msra.mxu0 %v7497_v42 }
 0x4d6   :  { %3654 = vmatprep.subr.bf16.mxu0 %v7502_v35 }
 0x4d9   :  { %3655 = vmatpush1.bf16.msra.mxu0 %v7500_v55 }
 0x4da   :  { %3656 = vmatprep.subr.bf16.mxu0 %v7505_v50 }
 0x4dd   :  { %3657 = vmatpush1.bf16.msra.mxu0 %v7503_v56 }
 0x4de   :  { %3658 = vmatprep.subr.bf16.mxu0 %v7508_v57 }
 0x4e1   :  { %3659 = vmatpush1.bf16.msra.mxu0 %v7506_v58 }
 0x4e2   :  { %3660 = vmatprep.subr.bf16.mxu0 %v7511_v59 }
 0x4e5   :  { %3661 = vmatpush1.bf16.msra.mxu0 %v7509_v60 }
 0x4e6   :  { %3662 = vmatprep.subr.bf16.mxu0 %v7514_v61 }
 0x4e9   :  { %3663 = vmatpush1.bf16.msra.mxu0 %v7512_v62 }
 0x4ea   :  { %6893 = vmatprep.subr.bf16.mxu0 %v8055_v37 }
 0x57f   :  { %v3414_v3 = vpop.f32.mrb[32].mxu0 }
 0x580   :  { %v3415_v4 = vadd.f32 %v3414_v3, %v3213_v1  ;;  %v3416_v5 = vpop.f32.mrb[33].mxu0  ;;  %v7537_v1 = vld [vmem:[#allocation6 + $0x3b0] sm:$0xff]   ;;  %v7541_v3 = vld [vmem:[#allocation7 + $0x484] ss:$8 sps:$4 sm:$0xff]  }
 0x581   :  { %v3417_v6 = vadd.f32 %v3416_v5, %v3217_v2  ;;  %v3418_v7 = vpop.f32.mrb[34].mxu0  ;;  %v7538_v2 = vld [vmem:[#allocation6 + $0x3b8] sm:$0xff]   ;;  %v7565_v5 = vld [vmem:[#allocation7 + $0x504] ss:$8 sps:$4 sm:$0xff]  }
 0x582   :  { %v3421_v9 = vmul.f32 0.01, %v3415_v4  ;;  %v3419_v10 = vpop.f32.mrb[35].mxu0  ;;  %4076 = vmatprep.subr.bf16.mxu1 %v7565_v5  ;;  %v7566_v7 = vld [vmem:[#allocation7 + $0x510] ss:$8 sps:$4 sm:$0xff]  }
 0x583   :  { %v3422_v16 = vmul.f32 0.01, %v3417_v6  ;;  %v7569_v10 = vld [vmem:[#allocation7 + $0x520] ss:$8 sps:$4 sm:$0xff]  }
 0x584   :  { %v3423_v17 = vmax.f32 %v3415_v4, %v3421_v9  ;;  %v7563_v4 = vld [vmem:[#allocation7 + $0x500] ss:$8 sps:$4 sm:$0xff]   ;;  %v7571_v9 = vld [vmem:[#allocation7 + $0x524] ss:$8 sps:$4 sm:$0xff]  }
 0x585   :  { %v3424_v18 = vmax.f32 %v3417_v6, %v3422_v16  ;;  %v7568_v6 = vld [vmem:[#allocation7 + $0x514] ss:$8 sps:$4 sm:$0xff]   ;;  %v7638_v5 = vld [vmem:[#allocation9 + $0x308] ss:$16 sps:$4 sm:$0xff]  }
 0x586   :  { %v3457_v20 = vpack.c.bf16 %v3423_v17, %v3423_v17  ;;  %v7574_v16 = vld [vmem:[#allocation7 + $0x534] ss:$8 sps:$4 sm:$0xff]   ;;  %v7572_v17 = vld [vmem:[#allocation7 + $0x530] ss:$8 sps:$4 sm:$0xff]  }
 0x587   :  { %v3458_v19 = vpack.c.bf16 %v3424_v18, %v3424_v18  ;;  %v7577_v18 = vld [vmem:[#allocation7 + $0x544] ss:$8 sps:$4 sm:$0xff]  }
 0x589   :  { %3664 = vmatprep.mubr.bf16.mxu0 %v3458_v19  ;;  %v7575_v19 = vld [vmem:[#allocation7 + $0x540] ss:$8 sps:$4 sm:$0xff]  }
 0x58a   :  { %3665 = vmatmul.mubr.bf16.vlgmr.msra.gmra.mrb[36].mxu0 %v3457_v20  ;;  %v7580_v20 = vld [vmem:[#allocation7 + $0x554] ss:$8 sps:$4 sm:$0xff]  }
 0x58b   :  { %6894 = vmatpush3.bf16.msra.mxu0 %v7531_v36  ;;  %6909 = vmatprep.mubr.msk.bf16.mxu0 %vm8056_vm0, %v8055_v37  ;;  %v7547_v36 = vld [vmem:[#allocation7 + $0x4a4] ss:$8 sps:$4 sm:$0xff]  }
 0x58c   :  { %6895 = vmatprep.subr.bf16.mxu0 %v8055_v37 }
 0x58f   :  { %6896 = vmatpush3.bf16.msra.mxu0 %v7532_v38  ;;  %v7545_v38 = vld [vmem:[#allocation7 + $0x4a0] ss:$8 sps:$4 sm:$0xff]  }
 0x590   :  { %6897 = vmatprep.subr.bf16.mxu0 %v8055_v37 }
 0x593   :  { %6898 = vmatpush3.bf16.msra.mxu0 %v7533_v40  ;;  %v7550_v40 = vld [vmem:[#allocation7 + $0x4b4] ss:$8 sps:$4 sm:$0xff]  }
 0x594   :  { %6899 = vmatprep.subr.bf16.mxu0 %v8055_v37 }
 0x597   :  { %6900 = vmatpush3.bf16.msra.mxu0 %v7534_v41  ;;  %v7548_v41 = vld [vmem:[#allocation7 + $0x4b0] ss:$8 sps:$4 sm:$0xff]  }
 0x598   :  { %6901 = vmatprep.subr.bf16.mxu0 %v8055_v37 }
 0x59b   :  { %6902 = vmatpush3.bf16.msra.mxu0 %v7535_v43  ;;  %v7553_v43 = vld [vmem:[#allocation7 + $0x4c4] ss:$8 sps:$4 sm:$0xff]  }
 0x59c   :  { %6903 = vmatprep.subr.bf16.mxu0 %v8055_v37 }
 0x59f   :  { %6904 = vmatpush3.bf16.msra.mxu0 %v7536_v63  ;;  %v7628_v63 = vld [vmem:[#allocation9 + $0x2cc] ss:$16 sps:$4 sm:$0xff]  }
 0x5a0   :  { %6905 = vmatprep.subr.bf16.mxu0 %v8055_v37 }
 0x5a3   :  { %6906 = vmatpush3.bf16.msra.mxu0 %v7537_v1  ;;  %v7626_v1 = vld [vmem:[#allocation9 + $0x2c8] ss:$16 sps:$4 sm:$0xff]  }
 0x5a4   :  { %6907 = vmatprep.subr.bf16.mxu0 %v8055_v37 }
 0x5a7   :  { %6908 = vmatpush3.bf16.msra.mxu0 %v7538_v2  ;;  %v7634_v2 = vld [vmem:[#allocation9 + $0x2ec] ss:$16 sps:$4 sm:$0xff]  }
 0x5a8   :  { %4197 = vmatprep.subr.bf16.mxu0 %v7541_v3  ;;  %v7632_v3 = vld [vmem:[#allocation9 + $0x2e8] ss:$16 sps:$4 sm:$0xff]  }
 0x65d   :  { %v3666_v47 = vpop.f32.mrb[36].mxu0 }
 0x65e   :  { %v3667_v48 = vadd.f32 %v3666_v47, %v3465_v45  ;;  %v3668_v49 = vpop.f32.mrb[37].mxu0  ;;  %v7556_v45 = vld [vmem:[#allocation7 + $0x4d4] ss:$8 sps:$4 sm:$0xff]   ;;  %v7559_v47 = vld [vmem:[#allocation7 + $0x4e4] ss:$8 sps:$4 sm:$0xff]  }
 0x65f   :  { %v3669_v51 = vadd.f32 %v3668_v49, %v3469_v46  ;;  %v3670_v52 = vpop.f32.mrb[38].mxu0  ;;  %v7554_v46 = vld [vmem:[#allocation7 + $0x4d0] ss:$8 sps:$4 sm:$0xff]  }
 0x660   :  { %v3673_v53 = vsub.f32 0.0, %v3667_v48  ;;  %v3671_v54 = vpop.f32.mrb[39].mxu0  ;;  %v7562_v48 = vld [vmem:[#allocation7 + $0x4f4] ss:$8 sps:$4 sm:$0xff]   ;;  %v7560_v49 = vld [vmem:[#allocation7 + $0x4f0] ss:$8 sps:$4 sm:$0xff]  }
 0x661   :  { %v3674_v42 = vsub.f32 0.0, %v3669_v51  ;;  %v3962_v51 = vpack.c.bf16 %v8214_v39, %v8214_v39  ;;  %v7586_v52 = vld [vmem:[#allocation7 + $0x574] ss:$8 sps:$4 sm:$0xff]   ;;  %v7608_v39 = vld [vmem:[#allocation9 + $0x268] ss:$16 sps:$4 sm:$0xff]  }
 0x662   :  { %v3675_v35 = vmul.f32 1.442695, %v3673_v53  ;;  %v7584_v53 = vld [vmem:[#allocation7 + $0x570] ss:$8 sps:$4 sm:$0xff]   ;;  %v7589_v54 = vld [vmem:[#allocation9 + $0x204] ss:$16 sps:$4 sm:$0xff]  }
 0x663   :  { %v3677_v55 = vmul.f32 1.442695, %v3674_v42  ;;  %v7590_v42 = vld [vmem:[#allocation9 + $0x208] ss:$16 sps:$4 sm:$0xff]  }
 0x664   :  { %7915 = vpow2.f32 %v3675_v35  ;;  %v7592_v35 = vld [vmem:[#allocation9 + $0x20c] ss:$16 sps:$4 sm:$0xff]  }
 0x665   :  { %7917 = vpow2.f32 %v3677_v55  ;;  %v7598_v55 = vld [vmem:[#allocation9 + $0x22c] ss:$16 sps:$4 sm:$0xff]  }
 0x66e   :  { %v7916_v50 = vpop.eup %7915 }
 0x66f   :  { %v7918_v56 = vpop.eup %7917  ;;  %v3679_v57 = vadd.f32 1.0, %v7916_v50  ;;  %v7596_v50 = vld [vmem:[#allocation9 + $0x228] ss:$16 sps:$4 sm:$0xff]  }
 0x670   :  { %v3680_v58 = vadd.f32 1.0, %v7918_v56  ;;  %v7604_v56 = vld [vmem:[#allocation9 + $0x24c] ss:$16 sps:$4 sm:$0xff]  }
 0x671   :  { %7919 = vrcp.f32 %v3679_v57  ;;  %v7602_v57 = vld [vmem:[#allocation9 + $0x248] ss:$16 sps:$4 sm:$0xff]  }
 0x672   :  { %7921 = vrcp.f32 %v3680_v58  ;;  %v7610_v58 = vld [vmem:[#allocation9 + $0x26c] ss:$16 sps:$4 sm:$0xff]  }
 0x67b   :  { %v7920_v59 = vpop.eup %7919 }
 0x67c   :  { %v7922_v60 = vpop.eup %7921  ;;  %v3715_v62 = vpack.c.bf16 %v7920_v59, %v7920_v59  ;;  %v7616_v59 = vld [vmem:[#allocation9 + $0x28c] ss:$16 sps:$4 sm:$0xff]  }
 0x67d   :  { %v3716_v61 = vpack.c.bf16 %v7922_v60, %v7922_v60  ;;  %v7614_v60 = vld [vmem:[#allocation9 + $0x288] ss:$16 sps:$4 sm:$0xff]  }
 0x67f   :  { %3846 = vmatprep.mubr.bf16.mxu1 %v3716_v61  ;;  %v7622_v61 = vld [vmem:[#allocation9 + $0x2ac] ss:$16 sps:$4 sm:$0xff]  }
 0x680   :  { %3847 = vmatmul.mubr.bf16.vlgmr.msra.gmra.mrb[32].mxu1 %v3715_v62  ;;  %v7620_v62 = vld [vmem:[#allocation9 + $0x2a8] ss:$16 sps:$4 sm:$0xff]  }
 0x681   :  { %4108 = vmatprep.mubr.bf16.mxu1 %v8054_v0  ;;  %4077 = vmatpush1.bf16.msra.mxu1 %v7563_v4  ;;  %v7640_v4 = vld [vmem:[#allocation9 + $0x30c] ss:$16 sps:$4 sm:$0xff]  }
 0x682   :  { %4078 = vmatprep.subr.bf16.mxu1 %v7568_v6  ;;  %v7646_v6 = vld [vmem:[#allocation9 + $0x32c] ss:$16 sps:$4 sm:$0xff]  }
 0x685   :  { %4079 = vmatpush1.bf16.msra.mxu1 %v7566_v7  ;;  %v7644_v7 = vld [vmem:[#allocation9 + $0x328] ss:$16 sps:$4 sm:$0xff]  }
 0x686   :  { %4080 = vmatprep.subr.bf16.mxu1 %v7571_v9  ;;  %v7652_v9 = vld [vmem:[#allocation9 + $0x34c] ss:$16 sps:$4 sm:$0xff]  }
 0x689   :  { %4081 = vmatpush1.bf16.msra.mxu1 %v7569_v10  ;;  %v7650_v10 = vld [vmem:[#allocation9 + $0x348] ss:$16 sps:$4 sm:$0xff]  }
 0x68a   :  { %4082 = vmatprep.subr.bf16.mxu1 %v7574_v16  ;;  %v7658_v16 = vld [vmem:[#allocation9 + $0x36c] ss:$16 sps:$4 sm:$0xff]  }
 0x68d   :  { %4083 = vmatpush1.bf16.msra.mxu1 %v7572_v17  ;;  %v7656_v17 = vld [vmem:[#allocation9 + $0x368] ss:$16 sps:$4 sm:$0xff]  }
 0x68e   :  { %4084 = vmatprep.subr.bf16.mxu1 %v7577_v18  ;;  %v7664_v18 = vld [vmem:[#allocation9 + $0x38c] ss:$16 sps:$4 sm:$0xff]  }
 0x691   :  { %4085 = vmatpush1.bf16.msra.mxu1 %v7575_v19  ;;  %v7662_v19 = vld [vmem:[#allocation9 + $0x388] ss:$16 sps:$4 sm:$0xff]  }
 0x692   :  { %4086 = vmatprep.subr.bf16.mxu1 %v7580_v20  ;;  %v3873_v20 = vld [vmem:[#allocation2 + $0x60] ss:$0 sm:$0xff] }
 0x695   :  { %4087 = vmatpush1.bf16.msra.mxu1 %v7578_v21 }
 0x696   :  { %4088 = vmatprep.subr.bf16.mxu1 %v7583_v22 }
 0x699   :  { %4089 = vmatpush1.bf16.msra.mxu1 %v7581_v8 }
 0x69a   :  { %4090 = vmatprep.subr.bf16.mxu1 %v7586_v52  ;;  %v7649_v52 = vld [vmem:[#allocation9 + $0x344] ss:$16 sps:$4 sm:$0xff]  }
 0x69d   :  { %4091 = vmatpush1.bf16.msra.mxu1 %v7584_v53  ;;  %v7647_v53 = vld [vmem:[#allocation9 + $0x340] ss:$16 sps:$4 sm:$0xff]  }
 0x69e   :  { %4666 = vmatprep.subr.bf16.mxu1 %v7589_v54  ;;  %v7655_v54 = vld [vmem:[#allocation9 + $0x364] ss:$16 sps:$4 sm:$0xff]  }
 0x753   :  { %v6847_v23 = vpop.f32.mrb[32].mxu1 }
 0x754   :  { %v6848_v25 = vpop.f32.mrb[33].mxu1 }
 0x755   :  { %v6849_v26 = vadd.f32 %v6848_v25, %v6847_v23  ;;  %v6850_v27 = vpop.f32.mrb[34].mxu1 }
 0x756   :  { %v6851_v28 = vpop.f32.mrb[35].mxu1  ;;  %v7595_v27 = vld [vmem:[#allocation9 + $0x224] ss:$16 sps:$4 sm:$0xff]  }
 0x757   :  { %v3849_v29 = vadd.f32 %v6849_v26, %v3717_v24  ;;  %v7587_v24 = vld [vmem:[#allocation9 + $0x200] ss:$16 sps:$4 sm:$0xff]  }
 0x758   :  { %v7593_v28 = vld [vmem:[#allocation9 + $0x220] ss:$16 sps:$4 sm:$0xff]  }
 0x759   :  { %v3854_v30 = vmul.f32 0.01, %v3849_v29 }
 0x75b   :  { %v3855_v31 = vmax.f32 %v3849_v29, %v3854_v30  ;;  %v7601_v29 = vld [vmem:[#allocation9 + $0x244] ss:$16 sps:$4 sm:$0xff]   ;;  %v7599_v30 = vld [vmem:[#allocation9 + $0x240] ss:$16 sps:$4 sm:$0xff]  }
 0x75d   :  { %v3872_v33 = vpack.c.bf16 %v3855_v31, %v3855_v31  ;;  %v7607_v31 = vld [vmem:[#allocation9 + $0x264] ss:$16 sps:$4 sm:$0xff]  }
 0x75f   :  { %6910 = vmatmul.mubr.bf16.vlgmr.msra.gmra.mrb[40].mxu0 %v3872_v33  ;;  %v7613_v33 = vld [vmem:[#allocation9 + $0x284] ss:$16 sps:$4 sm:$0xff]  }
 0x760   :  { %4198 = vmatpush1.bf16.msra.mxu0 %v7539_v32  ;;  %4229 = vmatprep.mubr.bf16.mxu0 %v8054_v0  ;;  %v7557_v0 = vld [vmem:[#allocation7 + $0x4e0] ss:$8 sps:$4 sm:$0xff]  }
 0x761   :  { %4199 = vmatprep.subr.bf16.mxu0 %v7544_v15  ;;  %v7605_v32 = vld [vmem:[#allocation9 + $0x260] ss:$16 sps:$4 sm:$0xff]  }
 0x762   :  { %v7611_v15 = vld [vmem:[#allocation9 + $0x280] ss:$16 sps:$4 sm:$0xff]  }
 0x764   :  { %4200 = vmatpush1.bf16.msra.mxu0 %v7542_v34  ;;  %v7619_v34 = vld [vmem:[#allocation9 + $0x2a4] ss:$16 sps:$4 sm:$0xff]  }
 0x765   :  { %4201 = vmatprep.subr.bf16.mxu0 %v7547_v36  ;;  %v7617_v36 = vld [vmem:[#allocation9 + $0x2a0] ss:$16 sps:$4 sm:$0xff]  }
 0x768   :  { %4202 = vmatpush1.bf16.msra.mxu0 %v7545_v38  ;;  %v7625_v38 = vld [vmem:[#allocation9 + $0x2c4] ss:$16 sps:$4 sm:$0xff]  }
 0x769   :  { %4203 = vmatprep.subr.bf16.mxu0 %v7550_v40  ;;  %v7623_v40 = vld [vmem:[#allocation9 + $0x2c0] ss:$16 sps:$4 sm:$0xff]  }
 0x76c   :  { %4204 = vmatpush1.bf16.msra.mxu0 %v7548_v41  ;;  %v7631_v41 = vld [vmem:[#allocation9 + $0x2e4] ss:$16 sps:$4 sm:$0xff]  }
 0x76d   :  { %4205 = vmatprep.subr.bf16.mxu0 %v7553_v43  ;;  %v7629_v43 = vld [vmem:[#allocation9 + $0x2e0] ss:$16 sps:$4 sm:$0xff]  }
 0x770   :  { %4206 = vmatpush1.bf16.msra.mxu0 %v7551_v44  ;;  %v7637_v44 = vld [vmem:[#allocation9 + $0x304] ss:$16 sps:$4 sm:$0xff]  }
 0x771   :  { %4207 = vmatprep.subr.bf16.mxu0 %v7556_v45 }
 0x774   :  { %4208 = vmatpush1.bf16.msra.mxu0 %v7554_v46 }
 0x775   :  { %4209 = vmatprep.subr.bf16.mxu0 %v7559_v47 }
 0x778   :  { %4210 = vmatpush1.bf16.msra.mxu0 %v7557_v0  ;;  %v7635_v0 = vld [vmem:[#allocation9 + $0x300] ss:$16 sps:$4 sm:$0xff]  }
 0x779   :  { %4211 = vmatprep.subr.bf16.mxu0 %v7562_v48 }
 0x77c   :  { %4212 = vmatpush1.bf16.msra.mxu0 %v7560_v49  ;;  %v7643_v49 = vld [vmem:[#allocation9 + $0x324] ss:$16 sps:$4 sm:$0xff]  }
 0x77d   :  { %4707 = vmatprep.subr.bf16.mxu0 %v7592_v35  ;;  %v7661_v35 = vld [vmem:[#allocation9 + $0x384] ss:$16 sps:$4 sm:$0xff]  }
 0x77f   :  { %4230 = vmatmul.mubr.bf16.vlgmr.msra.gmra.mrb[44].mxu0 %v3962_v51  ;;  %v7641_v51 = vld [vmem:[#allocation9 + $0x320] ss:$16 sps:$4 sm:$0xff]  }
 0x780   :  { %4708 = vmatpush1.bf16.msra.mxu0 %v7590_v42  ;;  %v7653_v42 = vld [vmem:[#allocation9 + $0x360] ss:$16 sps:$4 sm:$0xff]  }
 0x781   :  { %4709 = vmatprep.subr.bf16.mxu0 %v7598_v55  ;;  %v7659_v55 = vld [vmem:[#allocation9 + $0x380] ss:$16 sps:$4 sm:$0xff]  }
 0x784   :  { %4710 = vmatpush1.bf16.msra.mxu0 %v7596_v50  ;;  %v7667_v50 = vld [vmem:[#allocation9 + $0x3a4] ss:$16 sps:$4 sm:$0xff]  }
 0x785   :  { %4711 = vmatprep.subr.bf16.mxu0 %v7604_v56  ;;  %v7670_v56 = vld [vmem:[#allocation9 + $0x3ac] ss:$16 sps:$4 sm:$0xff]  }
 0x788   :  { %4712 = vmatpush1.bf16.msra.mxu0 %v7602_v57  ;;  %v7665_v57 = vld [vmem:[#allocation9 + $0x3a0] ss:$16 sps:$4 sm:$0xff]  }
 0x789   :  { %4713 = vmatprep.subr.bf16.mxu0 %v7610_v58  ;;  %v7668_v58 = vld [vmem:[#allocation9 + $0x3a8] ss:$16 sps:$4 sm:$0xff]  }
 0x78c   :  { %4714 = vmatpush1.bf16.msra.mxu0 %v7608_v39  ;;  %v7673_v39 = vld [vmem:[#allocation9 + $0x3c4] ss:$16 sps:$4 sm:$0xff]  }
 0x78d   :  { %4715 = vmatprep.subr.bf16.mxu0 %v7616_v59  ;;  %v7676_v59 = vld [vmem:[#allocation9 + $0x3cc] ss:$16 sps:$4 sm:$0xff]  }
 0x790   :  { %4716 = vmatpush1.bf16.msra.mxu0 %v7614_v60  ;;  %v7671_v60 = vld [vmem:[#allocation9 + $0x3c0] ss:$16 sps:$4 sm:$0xff]  }
 0x791   :  { %4717 = vmatprep.subr.bf16.mxu0 %v7622_v61  ;;  %v7674_v61 = vld [vmem:[#allocation9 + $0x3c8] ss:$16 sps:$4 sm:$0xff]  }
 0x794   :  { %4718 = vmatpush1.bf16.msra.mxu0 %v7620_v62  ;;  %v7679_v62 = vld [vmem:[#allocation9 + $0x3e4] ss:$16 sps:$4 sm:$0xff]  }
 0x795   :  { %4719 = vmatprep.subr.bf16.mxu0 %v7628_v63  ;;  %v7682_v63 = vld [vmem:[#allocation9 + $0x3ec] ss:$16 sps:$4 sm:$0xff]  }
 0x798   :  { %4720 = vmatpush1.bf16.msra.mxu0 %v7626_v1  ;;  %v7677_v1 = vld [vmem:[#allocation9 + $0x3e0] ss:$16 sps:$4 sm:$0xff]  }
 0x799   :  { %4721 = vmatprep.subr.bf16.mxu0 %v7634_v2  ;;  %v7680_v2 = vld [vmem:[#allocation9 + $0x3e8] ss:$16 sps:$4 sm:$0xff]  }
 0x79c   :  { %4722 = vmatpush1.bf16.msra.mxu0 %v7632_v3  ;;  %v7685_v3 = vld [vmem:[#allocation7 + $0x584] ss:$8 sps:$4 sm:$0xff]  }
 0x79d   :  { %4723 = vmatprep.subr.bf16.mxu0 %v7640_v4  ;;  %v4239_v4 = vld [vmem:[#allocation2 + $0x61] ss:$8 sm:$0x3] }
 0x7a0   :  { %4724 = vmatpush1.bf16.msra.mxu0 %v7638_v5  ;;  %v4244_v5 = vrot.slane %v4239_v4, %v8177_v11 }
 0x7a1   :  { %4725 = vmatprep.subr.bf16.mxu0 %v7646_v6 }
 0x7a4   :  { %4726 = vmatpush1.bf16.msra.mxu0 %v7644_v7  ;;  %v4248_v7 = vrot.slane %v4239_v4, %v8180_v12  ;;  %v7796_v4 = vld [vmem:[#allocation7 + $0x7d4] ss:$8 sps:$4 sm:$0xff]  }
 0x7a5   :  { %4727 = vmatprep.subr.bf16.mxu0 %v7652_v9 }
 0x7a8   :  { %4728 = vmatpush1.bf16.msra.mxu0 %v7650_v10 }
 0x7a9   :  { %4729 = vmatprep.subr.bf16.mxu0 %v7658_v16 }
 0x7ac   :  { %4730 = vmatpush1.bf16.msra.mxu0 %v7656_v17 }
 0x7ad   :  { %4731 = vmatprep.subr.bf16.mxu0 %v7664_v18 }
 0x7b0   :  { %4732 = vmatpush1.bf16.msra.mxu0 %v7662_v19 }
 0x7b1   :  { %4733 = vmatprep.subr.bf16.mxu0 %v7670_v56  ;;  %v7728_v56 = vld [vmem:[#allocation7 + $0x670] ss:$8 sps:$4 sm:$0xff]  }
 0x7b4   :  { %4734 = vmatpush1.bf16.msra.mxu0 %v7668_v58  ;;  %v7779_v58 = vld [vmem:[#allocation7 + $0x780] ss:$8 sps:$4 sm:$0xff]  }
 0x7b5   :  { %4735 = vmatprep.subr.bf16.mxu0 %v7676_v59  ;;  %v7784_v59 = vld [vmem:[#allocation7 + $0x794] ss:$8 sps:$4 sm:$0xff]  }
 0x7b8   :  { %4736 = vmatpush1.bf16.msra.mxu0 %v7674_v61  ;;  %v7787_v61 = vld [vmem:[#allocation7 + $0x7a4] ss:$8 sps:$4 sm:$0xff]  }
 0x7b9   :  { %4737 = vmatprep.subr.bf16.mxu0 %v7682_v63  ;;  %v7790_v63 = vld [vmem:[#allocation7 + $0x7b4] ss:$8 sps:$4 sm:$0xff]  }
 0x7bc   :  { %4738 = vmatpush1.bf16.msra.mxu0 %v7680_v2  ;;  %v7793_v2 = vld [vmem:[#allocation7 + $0x7c4] ss:$8 sps:$4 sm:$0xff]  }
 0x832   :  { %v3956_v21 = vpop.f32.mrb[40].mxu0 }
 0x833   :  { %v3957_v22 = vadd.f32 %v3956_v21, %v3873_v20  ;;  %v6911_v8 = vpop.f32.mrb[41].mxu0 }
 0x834   :  { %v3959_v23 = vpop.f32.mrb[42].mxu0 }
 0x835   :  { %v3979_v25 = vpack.c.bf16 %v3957_v22, %v3957_v22  ;;  %v6912_v26 = vpop.f32.mrb[43].mxu0 }
 0x837   :  { %4109 = vmatmul.mubr.bf16.vlgmr.msra.gmra.mrb[36].mxu1 %v3979_v25  ;;  %v7683_v25 = vld [vmem:[#allocation7 + $0x580] ss:$8 sps:$4 sm:$0xff]  }
 0x838   :  { %4667 = vmatpush1.bf16.msra.mxu1 %v7587_v24 }
 0x839   :  { %4668 = vmatprep.subr.bf16.mxu1 %v7595_v27  ;;  %v7688_v27 = vld [vmem:[#allocation7 + $0x594] ss:$8 sps:$4 sm:$0xff]  }
 0x83c   :  { %4669 = vmatpush1.bf16.msra.mxu1 %v7593_v28  ;;  %v7686_v28 = vld [vmem:[#allocation7 + $0x590] ss:$8 sps:$4 sm:$0xff]  }
 0x83d   :  { %4670 = vmatprep.subr.bf16.mxu1 %v7601_v29  ;;  %v7691_v29 = vld [vmem:[#allocation7 + $0x5a4] ss:$8 sps:$4 sm:$0xff]  }
 0x840   :  { %4671 = vmatpush1.bf16.msra.mxu1 %v7599_v30  ;;  %v7689_v30 = vld [vmem:[#allocation7 + $0x5a0] ss:$8 sps:$4 sm:$0xff]  }
 0x841   :  { %4672 = vmatprep.subr.bf16.mxu1 %v7607_v31  ;;  %v7694_v31 = vld [vmem:[#allocation7 + $0x5b4] ss:$8 sps:$4 sm:$0xff]  }
 0x844   :  { %4673 = vmatpush1.bf16.msra.mxu1 %v7605_v32  ;;  %v7692_v32 = vld [vmem:[#allocation7 + $0x5b0] ss:$8 sps:$4 sm:$0xff]  }
 0x845   :  { %4674 = vmatprep.subr.bf16.mxu1 %v7613_v33  ;;  %v7697_v33 = vld [vmem:[#allocation7 + $0x5c4] ss:$8 sps:$4 sm:$0xff]  }
 0x848   :  { %4675 = vmatpush1.bf16.msra.mxu1 %v7611_v15  ;;  %v7695_v15 = vld [vmem:[#allocation7 + $0x5c0] ss:$8 sps:$4 sm:$0xff]  }
 0x849   :  { %4676 = vmatprep.subr.bf16.mxu1 %v7619_v34  ;;  %v7700_v34 = vld [vmem:[#allocation7 + $0x5d4] ss:$8 sps:$4 sm:$0xff]  }
 0x84c   :  { %4677 = vmatpush1.bf16.msra.mxu1 %v7617_v36  ;;  %v7698_v36 = vld [vmem:[#allocation7 + $0x5d0] ss:$8 sps:$4 sm:$0xff]  }
 0x84d   :  { %4678 = vmatprep.subr.bf16.mxu1 %v7625_v38  ;;  %v7703_v38 = vld [vmem:[#allocation7 + $0x5e4] ss:$8 sps:$4 sm:$0xff]  }
 0x850   :  { %4679 = vmatpush1.bf16.msra.mxu1 %v7623_v40  ;;  %v7701_v40 = vld [vmem:[#allocation7 + $0x5e0] ss:$8 sps:$4 sm:$0xff]  }
 0x851   :  { %4680 = vmatprep.subr.bf16.mxu1 %v7631_v41  ;;  %v7706_v41 = vld [vmem:[#allocation7 + $0x5f4] ss:$8 sps:$4 sm:$0xff]  }
 0x852   :  { %v4231_v45 = vpop.f32.mrb[44].mxu0 }
 0x853   :  { %v4233_v46 = vpop.f32.mrb[45].mxu0 }
 0x854   :  { %v4235_v47 = vpop.f32.mrb[46].mxu0  ;;  %4681 = vmatpush1.bf16.msra.mxu1 %v7629_v43  ;;  %v7704_v43 = vld [vmem:[#allocation7 + $0x5f0] ss:$8 sps:$4 sm:$0xff]  }
 0x855   :  { %v4236_v48 = vpop.f32.mrb[47].mxu0  ;;  %4682 = vmatprep.subr.bf16.mxu1 %v7637_v44  ;;  %v7709_v44 = vld [vmem:[#allocation7 + $0x604] ss:$8 sps:$4 sm:$0xff]   ;;  %v7710_v47 = vld [vmem:[#allocation7 + $0x610] ss:$8 sps:$4 sm:$0xff]  }
 0x856   :  { %v7713_v48 = vld [vmem:[#allocation7 + $0x620] ss:$8 sps:$4 sm:$0xff]  }
 0x858   :  { %4683 = vmatpush1.bf16.msra.mxu1 %v7635_v0  ;;  %v7715_v0 = vld [vmem:[#allocation7 + $0x624] ss:$8 sps:$4 sm:$0xff]  }
 0x859   :  { %4684 = vmatprep.subr.bf16.mxu1 %v7643_v49  ;;  %v7718_v49 = vld [vmem:[#allocation7 + $0x634] ss:$8 sps:$4 sm:$0xff]  }
 0x85c   :  { %4685 = vmatpush1.bf16.msra.mxu1 %v7641_v51  ;;  %v7716_v51 = vld [vmem:[#allocation7 + $0x630] ss:$8 sps:$4 sm:$0xff]  }
 0x85d   :  { %4686 = vmatprep.subr.bf16.mxu1 %v7649_v52  ;;  %v7721_v52 = vld [vmem:[#allocation7 + $0x644] ss:$8 sps:$4 sm:$0xff]  }
 0x860   :  { %4687 = vmatpush1.bf16.msra.mxu1 %v7647_v53  ;;  %v7719_v53 = vld [vmem:[#allocation7 + $0x640] ss:$8 sps:$4 sm:$0xff]  }
 0x861   :  { %4688 = vmatprep.subr.bf16.mxu1 %v7655_v54  ;;  %v7724_v54 = vld [vmem:[#allocation7 + $0x654] ss:$8 sps:$4 sm:$0xff]  }
 0x864   :  { %4689 = vmatpush1.bf16.msra.mxu1 %v7653_v42  ;;  %v7722_v42 = vld [vmem:[#allocation7 + $0x650] ss:$8 sps:$4 sm:$0xff]  }
 0x865   :  { %4690 = vmatprep.subr.bf16.mxu1 %v7661_v35  ;;  %v7727_v35 = vld [vmem:[#allocation7 + $0x664] ss:$8 sps:$4 sm:$0xff]  }
 0x868   :  { %4691 = vmatpush1.bf16.msra.mxu1 %v7659_v55  ;;  %v7725_v55 = vld [vmem:[#allocation7 + $0x660] ss:$8 sps:$4 sm:$0xff]  }
 0x869   :  { %4692 = vmatprep.subr.bf16.mxu1 %v7667_v50  ;;  %v7730_v50 = vld [vmem:[#allocation7 + $0x674] ss:$8 sps:$4 sm:$0xff]  }
 0x86c   :  { %4693 = vmatpush1.bf16.msra.mxu1 %v7665_v57  ;;  %v7733_v57 = vld [vmem:[#allocation7 + $0x684] ss:$8 sps:$4 sm:$0xff]  }
 0x86d   :  { %4694 = vmatprep.subr.bf16.mxu1 %v7673_v39  ;;  %v7781_v39 = vld [vmem:[#allocation7 + $0x784] ss:$8 sps:$4 sm:$0xff]  }
 0x86e   :  { %5448 = vmatprep.subr.bf16.mxu0 %v7781_v39  ;;  %v7748_v39 = vld [vmem:[#allocation7 + $0x6d4] ss:$8 sps:$4 sm:$0xff]  }
 0x870   :  { %4695 = vmatpush1.bf16.msra.mxu1 %v7671_v60  ;;  %v7782_v60 = vld [vmem:[#allocation7 + $0x790] ss:$8 sps:$4 sm:$0xff]  }
 0x871   :  { %4696 = vmatprep.subr.bf16.mxu1 %v7679_v62  ;;  %v7785_v62 = vld [vmem:[#allocation7 + $0x7a0] ss:$8 sps:$4 sm:$0xff]  }
 0x874   :  { %4697 = vmatpush1.bf16.msra.mxu1 %v7677_v1  ;;  %v7788_v1 = vld [vmem:[#allocation7 + $0x7b0] ss:$8 sps:$4 sm:$0xff]  }
 0x875   :  { %5157 = vmatprep.subr.bf16.mxu1 %v7685_v3  ;;  %v7791_v3 = vld [vmem:[#allocation7 + $0x7c0] ss:$8 sps:$4 sm:$0xff]  }
 0x90a   :  { %v4110_v6 = vpop.f32.mrb[36].mxu1 }
 0x90b   :  { %v4232_v9 = vadd.f32 %v4231_v45, %v4110_v6  ;;  %v4112_v10 = vpop.f32.mrb[37].mxu1  ;;  %v7707_v45 = vld [vmem:[#allocation7 + $0x600] ss:$8 sps:$4 sm:$0xff]   ;;  %v7799_v6 = vld [vmem:[#allocation7 + $0x7e4] ss:$8 sps:$4 sm:$0xff]  }
 0x90c   :  { %v4234_v16 = vadd.f32 %v4233_v46, %v4112_v10  ;;  %v4114_v17 = vpop.f32.mrb[38].mxu1  ;;  %v7712_v46 = vld [vmem:[#allocation7 + $0x614] ss:$8 sps:$4 sm:$0xff]   ;;  %v7800_v10 = vld [vmem:[#allocation7 + $0x7f0] ss:$8 sps:$4 sm:$0xff]  }
 0x90d   :  { %v4251_v18 = vadd.f32 %v4244_v5, %v4232_v9  ;;  %v4115_v19 = vpop.f32.mrb[39].mxu1  ;;  %v7794_v5 = vld [vmem:[#allocation7 + $0x7d0] ss:$8 sps:$4 sm:$0xff]   ;;  %v7802_v9 = vld [vmem:[#allocation7 + $0x7f4] ss:$8 sps:$4 sm:$0xff]  }
 0x90e   :  { %v4252_v20 = vadd.f32 %v4248_v7, %v4234_v16  ;;  %v7797_v7 = vld [vmem:[#allocation7 + $0x7e0] ss:$8 sps:$4 sm:$0xff]   ;;  %v7805_v16 = vld [vmem:[#allocation7 + $0x804] ss:$8 sps:$4 sm:$0xff]   ;;  %v7806_v19 = vld [vmem:[#allocation7 + $0x810] ss:$8 sps:$4 sm:$0xff]  }
 0x90f   :  { %v4253_v21 = vmul.f32 0.01, %v4251_v18  ;;  %v7803_v17 = vld [vmem:[#allocation7 + $0x800] ss:$8 sps:$4 sm:$0xff]  }
 0x910   :  { %v4254_v22 = vmul.f32 0.01, %v4252_v20 }
 0x911   :  { %v4255_v8 = vmax.f32 %v4251_v18, %v4253_v21  ;;  %v7808_v18 = vld [vmem:[#allocation7 + $0x814] ss:$8 sps:$4 sm:$0xff]   ;;  %v7809_v21 = vld [vmem:[#allocation7 + $0x820] ss:$8 sps:$4 sm:$0xff]  }
 0x912   :  { %v4256_v23 = vmax.f32 %v4252_v20, %v4254_v22  ;;  %v7811_v20 = vld [vmem:[#allocation7 + $0x824] ss:$8 sps:$4 sm:$0xff]   ;;  %v7814_v22 = vld [vmem:[#allocation7 + $0x834] ss:$8 sps:$4 sm:$0xff]  }
 0x913   :  { %v4321_v26 = vpack.c.bf16 %v4255_v8, %v4255_v8  ;;  %v7812_v8 = vld [vmem:[#allocation7 + $0x830] ss:$8 sps:$4 sm:$0xff]  }
 0x914   :  { %v4322_v24 = vpack.c.bf16 %v4256_v23, %v4256_v23  ;;  %v7817_v23 = vld [vmem:[#allocation7 + $0x844] ss:$8 sps:$4 sm:$0xff]  }
 0x916   :  { %4698 = vmatprep.mubr.bf16.mxu1 %v4322_v24  ;;  %4739 = vmatprep.mubr.bf16.mxu0 %v4322_v24  ;;  %v8253_v24 = vld [vmem:[#allocation2 + $0x62] ss:$8 sm:$0xf] }
 0x917   :  { %4699 = vmatmul.mubr.bf16.vlgmr.msra.gmra.mrb[40].mxu1 %v4321_v26  ;;  %4740 = vmatmul.mubr.bf16.vlgmr.msra.gmra.mrb[48].mxu0 %v4321_v26  ;;  %v7820_v26 = vld [vmem:[#allocation7 + $0x854] ss:$8 sps:$4 sm:$0xff]  }
 0x918   :  { %5158 = vmatpush1.bf16.msra.mxu1 %v7683_v25  ;;  %5449 = vmatpush1.bf16.msra.mxu0 %v7779_v58  ;;  %v7815_v25 = vld [vmem:[#allocation7 + $0x840] ss:$8 sps:$4 sm:$0xff]  }
 0x919   :  { %5159 = vmatprep.subr.bf16.mxu1 %v7688_v27  ;;  %5450 = vmatprep.subr.bf16.mxu0 %v7784_v59  ;;  %v4329_v27 = vrot.slane %v8253_v24, %v8177_v11  ;;  %v7743_v58 = vld [vmem:[#allocation7 + $0x6c0] ss:$8 sps:$4 sm:$0xff]   ;;  %v7746_v59 = vld [vmem:[#allocation7 + $0x6d0] ss:$8 sps:$4 sm:$0xff]  }
 0x91c   :  { %5160 = vmatpush1.bf16.msra.mxu1 %v7686_v28  ;;  %5451 = vmatpush1.bf16.msra.mxu0 %v7782_v60  ;;  %v4333_v28 = vrot.slane %v8253_v24, %v8180_v12  ;;  %v7751_v60 = vld [vmem:[#allocation7 + $0x6e4] ss:$8 sps:$4 sm:$0xff]  }
 0x91d   :  { %5161 = vmatprep.subr.bf16.mxu1 %v7691_v29  ;;  %5452 = vmatprep.subr.bf16.mxu0 %v7787_v61  ;;  %v4341_v29 = vrot.slane %v8253_v24, %v8183_v13  ;;  %v7749_v61 = vld [vmem:[#allocation7 + $0x6e0] ss:$8 sps:$4 sm:$0xff]  }
 0x920   :  { %5162 = vmatpush1.bf16.msra.mxu1 %v7689_v30  ;;  %5453 = vmatpush1.bf16.msra.mxu0 %v7785_v62  ;;  %v7818_v30 = vld [vmem:[#allocation7 + $0x850] ss:$8 sps:$4 sm:$0xff]   ;;  %v7754_v62 = vld [vmem:[#allocation7 + $0x6f4] ss:$8 sps:$4 sm:$0xff]  }
 0x921   :  { %5163 = vmatprep.subr.bf16.mxu1 %v7694_v31  ;;  %5454 = vmatprep.subr.bf16.mxu0 %v7790_v63  ;;  %v7752_v63 = vld [vmem:[#allocation7 + $0x6f0] ss:$8 sps:$4 sm:$0xff]  }
 0x924   :  { %5164 = vmatpush1.bf16.msra.mxu1 %v7692_v32  ;;  %5455 = vmatpush1.bf16.msra.mxu0 %v7788_v1  ;;  %v7757_v1 = vld [vmem:[#allocation7 + $0x704] ss:$8 sps:$4 sm:$0xff]  }
 0x925   :  { %5165 = vmatprep.subr.bf16.mxu1 %v7697_v33  ;;  %5456 = vmatprep.subr.bf16.mxu0 %v7793_v2  ;;  %v7755_v2 = vld [vmem:[#allocation7 + $0x700] ss:$8 sps:$4 sm:$0xff]  }
 0x928   :  { %5166 = vmatpush1.bf16.msra.mxu1 %v7695_v15  ;;  %5457 = vmatpush1.bf16.msra.mxu0 %v7791_v3  ;;  %v7760_v3 = vld [vmem:[#allocation7 + $0x714] ss:$8 sps:$4 sm:$0xff]  }
 0x929   :  { %5167 = vmatprep.subr.bf16.mxu1 %v7700_v34  ;;  %5458 = vmatprep.subr.bf16.mxu0 %v7796_v4  ;;  %v7758_v4 = vld [vmem:[#allocation7 + $0x710] ss:$8 sps:$4 sm:$0xff]  }
 0x92c   :  { %5168 = vmatpush1.bf16.msra.mxu1 %v7698_v36  ;;  %5459 = vmatpush1.bf16.msra.mxu0 %v7794_v5  ;;  %v7763_v5 = vld [vmem:[#allocation7 + $0x724] ss:$8 sps:$4 sm:$0xff]  }
 0x92d   :  { %5169 = vmatprep.subr.bf16.mxu1 %v7703_v38  ;;  %5460 = vmatprep.subr.bf16.mxu0 %v7799_v6  ;;  %v7761_v6 = vld [vmem:[#allocation7 + $0x720] ss:$8 sps:$4 sm:$0xff]  }
 0x930   :  { %5170 = vmatpush1.bf16.msra.mxu1 %v7701_v40  ;;  %5461 = vmatpush1.bf16.msra.mxu0 %v7797_v7  ;;  %v7766_v7 = vld [vmem:[#allocation7 + $0x734] ss:$8 sps:$4 sm:$0xff]  }
 0x931   :  { %5171 = vmatprep.subr.bf16.mxu1 %v7706_v41  ;;  %5462 = vmatprep.subr.bf16.mxu0 %v7802_v9  ;;  %v7764_v9 = vld [vmem:[#allocation7 + $0x730] ss:$8 sps:$4 sm:$0xff]  }
 0x934   :  { %5172 = vmatpush1.bf16.msra.mxu1 %v7704_v43  ;;  %5463 = vmatpush1.bf16.msra.mxu0 %v7800_v10  ;;  %v7769_v10 = vld [vmem:[#allocation7 + $0x744] ss:$8 sps:$4 sm:$0xff]  }
 0x935   :  { %5173 = vmatprep.subr.bf16.mxu1 %v7709_v44  ;;  %5464 = vmatprep.subr.bf16.mxu0 %v7805_v16  ;;  %v7767_v16 = vld [vmem:[#allocation7 + $0x740] ss:$8 sps:$4 sm:$0xff]  }
 0x938   :  { %5174 = vmatpush1.bf16.msra.mxu1 %v7707_v45  ;;  %5465 = vmatpush1.bf16.msra.mxu0 %v7803_v17  ;;  %v4337_v17 = vrot.slane %v8253_v24, %v8186_v14  ;;  %v7823_v14 = vld [vmem:[#allocation7 + $0x864] ss:$8 sps:$4 sm:$0xff]   ;;  %v7821_v24 = vld [vmem:[#allocation7 + $0x860] ss:$8 sps:$4 sm:$0xff]  }
 0x939   :  { %5175 = vmatprep.subr.bf16.mxu1 %v7712_v46  ;;  %5466 = vmatprep.subr.bf16.mxu0 %v7808_v18  ;;  %v7772_v18 = vld [vmem:[#allocation7 + $0x754] ss:$8 sps:$4 sm:$0xff]  }
 0x93c   :  { %5176 = vmatpush1.bf16.msra.mxu1 %v7710_v47  ;;  %5467 = vmatpush1.bf16.msra.mxu0 %v7806_v19  ;;  %v7770_v19 = vld [vmem:[#allocation7 + $0x750] ss:$8 sps:$4 sm:$0xff]  }
 0x93d   :  { %5177 = vmatprep.subr.bf16.mxu1 %v7715_v0  ;;  %5468 = vmatprep.subr.bf16.mxu0 %v7811_v20 }
 0x940   :  { %5178 = vmatpush1.bf16.msra.mxu1 %v7713_v48  ;;  %5469 = vmatpush1.bf16.msra.mxu0 %v7809_v21  ;;  %v7775_v21 = vld [vmem:[#allocation7 + $0x764] ss:$8 sps:$4 sm:$0xff]  }
 0x941   :  { %5179 = vmatprep.subr.bf16.mxu1 %v7718_v49  ;;  %5470 = vmatprep.subr.bf16.mxu0 %v7814_v22  ;;  %v7773_v22 = vld [vmem:[#allocation7 + $0x760] ss:$8 sps:$4 sm:$0xff]  }
 0x944   :  { %5180 = vmatpush1.bf16.msra.mxu1 %v7716_v51  ;;  %5471 = vmatpush1.bf16.msra.mxu0 %v7812_v8  ;;  %v7731_v51 = vld [vmem:[#allocation7 + $0x680] ss:$8 sps:$4 sm:$0xff]  }
 0x945   :  { %5181 = vmatprep.subr.bf16.mxu1 %v7721_v52  ;;  %5472 = vmatprep.subr.bf16.mxu0 %v7817_v23  ;;  %v7778_v23 = vld [vmem:[#allocation7 + $0x774] ss:$8 sps:$4 sm:$0xff]  }
 0x948   :  { %5182 = vmatpush1.bf16.msra.mxu1 %v7719_v53  ;;  %5473 = vmatpush1.bf16.msra.mxu0 %v7815_v25  ;;  %v7736_v53 = vld [vmem:[#allocation7 + $0x694] ss:$8 sps:$4 sm:$0xff]   ;;  %v7776_v25 = vld [vmem:[#allocation7 + $0x770] ss:$8 sps:$4 sm:$0xff]  }
 0x949   :  { %5183 = vmatprep.subr.bf16.mxu1 %v7724_v54  ;;  %5474 = vmatprep.subr.bf16.mxu0 %v7820_v26 }
 0x94c   :  { %5184 = vmatpush1.bf16.msra.mxu1 %v7722_v42  ;;  %5475 = vmatpush1.bf16.msra.mxu0 %v7818_v30  ;;  %v7734_v42 = vld [vmem:[#allocation7 + $0x690] ss:$8 sps:$4 sm:$0xff]   ;;  %v7829_v30 = vld [vmem:[#allocation7 + $0x884] ss:$8 sps:$4 sm:$0xff]  }
 0x94d   :  { %5185 = vmatprep.subr.bf16.mxu1 %v7727_v35  ;;  %v7739_v35 = vld [vmem:[#allocation7 + $0x6a4] ss:$8 sps:$4 sm:$0xff]   ;;  %5476 = vmatprep.subr.bf16.mxu0 %v7823_v14 }
 0x94e   :  { %v5276_v14 = vld [vmem:[#allocation2 + $0x64] ss:$8 sm:$0x3] }
 0x950   :  { %5186 = vmatpush1.bf16.msra.mxu1 %v7725_v55  ;;  %v7737_v55 = vld [vmem:[#allocation7 + $0x6a0] ss:$8 sps:$4 sm:$0xff]   ;;  %5477 = vmatpush1.bf16.msra.mxu0 %v7821_v24  ;;  %v5281_v24 = vrot.slane %v5276_v14, %v8177_v11 }
 0x951   :  { %5187 = vmatprep.subr.bf16.mxu1 %v7730_v50  ;;  %v7742_v50 = vld [vmem:[#allocation7 + $0x6b4] ss:$8 sps:$4 sm:$0xff]  }
 0x954   :  { %5188 = vmatpush1.bf16.msra.mxu1 %v7728_v56  ;;  %v7740_v56 = vld [vmem:[#allocation7 + $0x6b0] ss:$8 sps:$4 sm:$0xff]  }
 0x955   :  { %5198 = vmatprep.subr.bf16.mxu1 %v7733_v57  ;;  %v7745_v57 = vld [vmem:[#allocation7 + $0x6c4] ss:$8 sps:$4 sm:$0xff]  }
 0x9ea   :  { %v4700_v31 = vpop.f32.mrb[40].mxu1  ;;  %v8261_v32 = vpop.f32.mrb[48].mxu0 }
 0x9eb   :  { %v4701_v33 = vadd.f32 %v4700_v31, %v4329_v27  ;;  %v4702_v15 = vpop.f32.mrb[41].mxu1  ;;  %v4743_v34 = vpop.f32.mrb[49].mxu0  ;;  %v4742_v20 = vadd.f32 %v8261_v32, %v4337_v17  ;;  %v4825_v31 = vld [vmem:[#allocation2 + $0x63] ss:$8 sm:$0x3] }
 0x9ec   :  { %v4703_v36 = vadd.f32 %v4702_v15, %v4333_v28  ;;  %v4744_v38 = vadd.f32 %v4743_v34, %v4341_v29  ;;  %v4704_v40 = vpop.f32.mrb[42].mxu1  ;;  %v4745_v41 = vpop.f32.mrb[50].mxu0  ;;  %v7826_v28 = vld [vmem:[#allocation7 + $0x874] ss:$8 sps:$4 sm:$0xff]   ;;  %v7824_v29 = vld [vmem:[#allocation7 + $0x870] ss:$8 sps:$4 sm:$0xff]   ;;  %v4830_v32 = vrot.slane %v4825_v31, %v8177_v11 }
 0x9ed   :  { %v4748_v43 = vmul.f32 0.01, %v4701_v33  ;;  %v4705_v44 = vpop.f32.mrb[43].mxu1  ;;  %v4746_v45 = vpop.f32.mrb[51].mxu0  ;;  %v4750_v8 = vmul.f32 0.01, %v4742_v20  ;;  %5478 = vmatprep.subr.bf16.mxu0 %v7826_v28  ;;  %v5285_v28 = vrot.slane %v5276_v14, %v8180_v12 }
 0x9ee   :  { %v4749_v46 = vmul.f32 0.01, %v4703_v36  ;;  %v4751_v47 = vmul.f32 0.01, %v4744_v38  ;;  %5479 = vmatpush1.bf16.msra.mxu0 %v7824_v29  ;;  %v7876_v17 = vld [vmem:[#allocation6 + $0x3c0] sm:$0xff]  }
 0x9ef   :  { %v4752_v13 = vmax.f32 %v4701_v33, %v4748_v43  ;;  %v4754_v26 = vmax.f32 %v4742_v20, %v4750_v8  ;;  %5698 = vmatprep.subr.bf16.mxu0 %v7829_v30  ;;  %v4834_v33 = vrot.slane %v4825_v31, %v8180_v12  ;;  %v7879_v20 = vld [vmem:[#allocation6 + $0x410] sm:$0xff]   ;;  %v7882_v8 = vld [vmem:[#allocation6 + $0x3d8] sm:$0xff]  }
 0x9f0   :  { %v4753_v0 = vmax.f32 %v4703_v36, %v4749_v46  ;;  %v4755_v48 = vmax.f32 %v4744_v38, %v4751_v47  ;;  %v7827_v46 = vld [vmem:[#allocation7 + $0x880] ss:$8 sps:$4 sm:$0xff]  }
 0x9f1   :  { %v4820_v52 = vpack.c.bf16 %v4752_v13, %v4752_v13  ;;  %v4822_v27 = vpack.c.bf16 %v4754_v26, %v4754_v26  ;;  %v7832_v13 = vld [vmem:[#allocation7 + $0x894] ss:$8 sps:$4 sm:$0xff]   ;;  %v7885_v26 = vld [vmem:[#allocation6 + $0x428] sm:$0xff]  }
 0x9f2   :  { %v4821_v49 = vpack.c.bf16 %v4753_v0, %v4753_v0  ;;  %v4823_v54 = vpack.c.bf16 %v4755_v48, %v4755_v48  ;;  %v7830_v0 = vld [vmem:[#allocation7 + $0x890] ss:$8 sps:$4 sm:$0xff]   ;;  %v7835_v48 = vld [vmem:[#allocation7 + $0x8a4] ss:$8 sps:$4 sm:$0xff]  }
 0x9f4   :  { %5189 = vmatprep.mubr.bf16.mxu1 %v4821_v49  ;;  %v7833_v49 = vld [vmem:[#allocation7 + $0x8a0] ss:$8 sps:$4 sm:$0xff]  }
 0x9f5   :  { %5190 = vmatmul.mubr.bf16.vlgmr.msra.gmra.mrb[44].mxu1 %v4820_v52  ;;  %v7836_v52 = vld [vmem:[#allocation7 + $0x8b0] ss:$8 sps:$4 sm:$0xff]  }
 0x9f6   :  { %5199 = vmatpush1.bf16.msra.mxu1 %v7731_v51  ;;  %5230 = vmatprep.mubr.bf16.mxu1 %v4823_v54  ;;  %v7838_v51 = vld [vmem:[#allocation7 + $0x8b4] ss:$8 sps:$4 sm:$0xff]   ;;  %v7839_v54 = vld [vmem:[#allocation7 + $0x8c0] ss:$8 sps:$4 sm:$0xff]  }
 0x9f7   :  { %5200 = vmatprep.subr.bf16.mxu1 %v7736_v53  ;;  %v7841_v53 = vld [vmem:[#allocation7 + $0x8c4] ss:$8 sps:$4 sm:$0xff]  }
 0x9fa   :  { %5201 = vmatpush1.bf16.msra.mxu1 %v7734_v42  ;;  %v7844_v42 = vld [vmem:[#allocation7 + $0x8d4] ss:$8 sps:$4 sm:$0xff]  }
 0x9fb   :  { %5202 = vmatprep.subr.bf16.mxu1 %v7739_v35  ;;  %v7842_v35 = vld [vmem:[#allocation7 + $0x8d0] ss:$8 sps:$4 sm:$0xff]  }
 0x9fe   :  { %5203 = vmatpush1.bf16.msra.mxu1 %v7737_v55  ;;  %v7847_v55 = vld [vmem:[#allocation7 + $0x8e4] ss:$8 sps:$4 sm:$0xff]  }
 0x9ff   :  { %5204 = vmatprep.subr.bf16.mxu1 %v7742_v50  ;;  %v7845_v50 = vld [vmem:[#allocation7 + $0x8e0] ss:$8 sps:$4 sm:$0xff]  }
 0xa02   :  { %5205 = vmatpush1.bf16.msra.mxu1 %v7740_v56  ;;  %v7850_v56 = vld [vmem:[#allocation7 + $0x8f4] ss:$8 sps:$4 sm:$0xff]  }
 0xa03   :  { %5206 = vmatprep.subr.bf16.mxu1 %v7745_v57  ;;  %v7848_v57 = vld [vmem:[#allocation7 + $0x8f0] ss:$8 sps:$4 sm:$0xff]  }
 0xa06   :  { %5207 = vmatpush1.bf16.msra.mxu1 %v7743_v58  ;;  %v7853_v58 = vld [vmem:[#allocation7 + $0x904] ss:$8 sps:$4 sm:$0xff]  }
 0xa07   :  { %5208 = vmatprep.subr.bf16.mxu1 %v7748_v39  ;;  %v7851_v39 = vld [vmem:[#allocation7 + $0x900] ss:$8 sps:$4 sm:$0xff]  }
 0xa0a   :  { %5209 = vmatpush1.bf16.msra.mxu1 %v7746_v59  ;;  %v7856_v59 = vld [vmem:[#allocation7 + $0x914] ss:$8 sps:$4 sm:$0xff]  }
 0xa0b   :  { %5210 = vmatprep.subr.bf16.mxu1 %v7751_v60  ;;  %v7854_v60 = vld [vmem:[#allocation7 + $0x910] ss:$8 sps:$4 sm:$0xff]  }
 0xa0e   :  { %5211 = vmatpush1.bf16.msra.mxu1 %v7749_v61  ;;  %v7859_v61 = vld [vmem:[#allocation7 + $0x924] ss:$8 sps:$4 sm:$0xff]  }
 0xa0f   :  { %5212 = vmatprep.subr.bf16.mxu1 %v7754_v62  ;;  %v7857_v62 = vld [vmem:[#allocation7 + $0x920] ss:$8 sps:$4 sm:$0xff]  }
 0xa12   :  { %5213 = vmatpush1.bf16.msra.mxu1 %v7752_v63  ;;  %v7862_v63 = vld [vmem:[#allocation7 + $0x934] ss:$8 sps:$4 sm:$0xff]  }
 0xa13   :  { %5214 = vmatprep.subr.bf16.mxu1 %v7757_v1  ;;  %v7860_v1 = vld [vmem:[#allocation7 + $0x930] ss:$8 sps:$4 sm:$0xff]  }
 0xa16   :  { %5215 = vmatpush1.bf16.msra.mxu1 %v7755_v2  ;;  %v7865_v2 = vld [vmem:[#allocation7 + $0x944] ss:$8 sps:$4 sm:$0xff]  }
 0xa17   :  { %5216 = vmatprep.subr.bf16.mxu1 %v7760_v3  ;;  %v7863_v3 = vld [vmem:[#allocation7 + $0x940] ss:$8 sps:$4 sm:$0xff]  }
 0xa1a   :  { %5217 = vmatpush1.bf16.msra.mxu1 %v7758_v4  ;;  %v7868_v4 = vld [vmem:[#allocation7 + $0x954] ss:$8 sps:$4 sm:$0xff]  }
 0xa1b   :  { %5218 = vmatprep.subr.bf16.mxu1 %v7763_v5  ;;  %v7866_v5 = vld [vmem:[#allocation7 + $0x950] ss:$8 sps:$4 sm:$0xff]  }
 0xa1e   :  { %5219 = vmatpush1.bf16.msra.mxu1 %v7761_v6  ;;  %v7871_v6 = vld [vmem:[#allocation7 + $0x964] ss:$8 sps:$4 sm:$0xff]  }
 0xa1f   :  { %5220 = vmatprep.subr.bf16.mxu1 %v7766_v7  ;;  %v7869_v7 = vld [vmem:[#allocation7 + $0x960] ss:$8 sps:$4 sm:$0xff]  }
 0xa22   :  { %5221 = vmatpush1.bf16.msra.mxu1 %v7764_v9  ;;  %v7874_v9 = vld [vmem:[#allocation7 + $0x974] ss:$8 sps:$4 sm:$0xff]  }
 0xa23   :  { %5222 = vmatprep.subr.bf16.mxu1 %v7769_v10  ;;  %v7872_v10 = vld [vmem:[#allocation7 + $0x970] ss:$8 sps:$4 sm:$0xff]  }
 0xa26   :  { %5223 = vmatpush1.bf16.msra.mxu1 %v7767_v16  ;;  %v7875_v16 = vld [vmem:[#allocation6 + $0x400] sm:$0xff]  }
 0xa27   :  { %5224 = vmatprep.subr.bf16.mxu1 %v7772_v18  ;;  %v7877_v18 = vld [vmem:[#allocation6 + $0x408] sm:$0xff]  }
 0xa2a   :  { %5225 = vmatpush1.bf16.msra.mxu1 %v7770_v19  ;;  %v7878_v19 = vld [vmem:[#allocation6 + $0x3c8] sm:$0xff]  }
 0xa2b   :  { %5226 = vmatprep.subr.bf16.mxu1 %v7775_v21  ;;  %v7880_v21 = vld [vmem:[#allocation6 + $0x3d0] sm:$0xff]  }
 0xa2e   :  { %5227 = vmatpush1.bf16.msra.mxu1 %v7773_v22  ;;  %v7881_v22 = vld [vmem:[#allocation6 + $0x418] sm:$0xff]  }
 0xa2f   :  { %5228 = vmatprep.subr.bf16.mxu1 %v7778_v23  ;;  %v7883_v23 = vld [vmem:[#allocation6 + $0x420] sm:$0xff]  }
 0xa32   :  { %5229 = vmatpush1.bf16.msra.mxu1 %v7776_v25  ;;  %v7884_v25 = vld [vmem:[#allocation6 + $0x3e0] sm:$0xff]  }
 0xa33   :  { %6862 = vmatprep.subr.bf16.mxu1 %v7875_v16 }
 0xa35   :  { %5231 = vmatmul.mubr.bf16.vlgmr.msra.gmra.mrb[44].mxu1 %v4822_v27  ;;  %v7886_v27 = vld [vmem:[#allocation6 + $0x3e8] sm:$0xff]  }
 0xa36   :  { %6863 = vmatpush3.bf16.msra.mxu1 %v7876_v17 }
 0xa37   :  { %6864 = vmatprep.subr.bf16.mxu1 %v7877_v18 }
 0xa3a   :  { %6865 = vmatpush3.bf16.msra.mxu1 %v7878_v19 }
 0xa3b   :  { %6866 = vmatprep.subr.bf16.mxu1 %v7879_v20 }
 0xa3e   :  { %6867 = vmatpush3.bf16.msra.mxu1 %v7880_v21 }
 0xa3f   :  { %6868 = vmatprep.subr.bf16.mxu1 %v7881_v22 }
 0xa42   :  { %6869 = vmatpush3.bf16.msra.mxu1 %v7882_v8 }
 0xa43   :  { %6870 = vmatprep.subr.bf16.mxu1 %v7883_v23 }
 0xa46   :  { %6871 = vmatpush3.bf16.msra.mxu1 %v7884_v25 }
 0xa47   :  { %6872 = vmatprep.subr.bf16.mxu1 %v7885_v26 }
 0xa4a   :  { %6873 = vmatpush3.bf16.msra.mxu1 %v7886_v27 }
 0xb08   :  { %v5232_v15 = vpop.f32.mrb[44].mxu1 }
 0xb09   :  { %v6935_v34 = vadd.f32 %v5232_v15, %v4830_v32  ;;  %v5234_v36 = vpop.f32.mrb[45].mxu1 }
 0xb0a   :  { %v6936_v38 = vadd.f32 %v5234_v36, %v4834_v33  ;;  %v5236_v40 = vpop.f32.mrb[46].mxu1 }
 0xb0b   :  { %v5239_v41 = vmax.f32 %v6935_v34, 0.0  ;;  %v5237_v43 = vpop.f32.mrb[47].mxu1 }
 0xb0c   :  { %v5240_v44 = vmax.f32 %v6936_v38, 0.0  ;;  %v7888_v43 = vld [vmem:[#allocation6 + $0x3f0] sm:$0xff]  }
 0xb0d   :  { %v5273_v47 = vpack.c.bf16 %v5239_v41, %v5239_v41  ;;  %v7887_v41 = vld [vmem:[#allocation6 + $0x430] sm:$0xff]  }
 0xb0e   :  { %v5274_v45 = vpack.c.bf16 %v5240_v44, %v5240_v44  ;;  %6874 = vmatprep.subr.bf16.mxu1 %v7887_v41  ;;  %v7889_v44 = vld [vmem:[#allocation6 + $0x438] sm:$0xff]  }
 0xb0f   :  { %6875 = vmatpush3.bf16.msra.mxu1 %v7888_v43 }
 0xb10   :  { %5480 = vmatprep.mubr.bf16.mxu0 %v5274_v45  ;;  %v7890_v45 = vld [vmem:[#allocation6 + $0x3f8] sm:$0xff]   ;;  %6876 = vmatprep.subr.bf16.mxu1 %v7889_v44 }
 0xb11   :  { %5481 = vmatmul.mubr.bf16.vlgmr.msra.gmra.mrb[52].mxu0 %v5273_v47  ;;  %v7892_v47 = vld [vmem:[#allocation6 + $0x448] sm:$0xff]  }
 0xb12   :  { %5699 = vmatpush1.bf16.msra.mxu0 %v7827_v46  ;;  %v7891_v46 = vld [vmem:[#allocation6 + $0x440] sm:$0xff]  }
 0xb13   :  { %5700 = vmatprep.subr.bf16.mxu0 %v7832_v13  ;;  %6877 = vmatpush3.bf16.msra.mxu1 %v7890_v45  ;;  %v7893_v13 = vld [vmem:[#allocation6 + $0x450] sm:$0xff]  }
 0xb16   :  { %5701 = vmatpush1.bf16.msra.mxu0 %v7830_v0  ;;  %v7894_v0 = vld [vmem:[#allocation6 + $0x458] sm:$0xff]  }
 0xb17   :  { %5702 = vmatprep.subr.bf16.mxu0 %v7835_v48  ;;  %v7895_v48 = vld [vmem:[#allocation6 + $0x460] sm:$0xff]  }
 0xb1a   :  { %5703 = vmatpush1.bf16.msra.mxu0 %v7833_v49  ;;  %v7896_v49 = vld [vmem:[#allocation6 + $0x468] sm:$0xff]  }
 0xb1b   :  { %5704 = vmatprep.subr.bf16.mxu0 %v7838_v51  ;;  %v5526_v51 = vld [vmem:[#allocation2 + $0x65] ss:$8 sm:$0x3] }
 0xb1e   :  { %5705 = vmatpush1.bf16.msra.mxu0 %v7836_v52  ;;  %v5531_v52 = vrot.slane %v5526_v51, %v8177_v11 }
 0xb1f   :  { %5706 = vmatprep.subr.bf16.mxu0 %v7841_v53  ;;  %v5535_v53 = vrot.slane %v5526_v51, %v8180_v12  ;;  %v5775_v12 = vld [vmem:[#allocation2 + $0x66] ss:$0 sm:$0xff] }
 0xb22   :  { %5707 = vmatpush1.bf16.msra.mxu0 %v7839_v54 }
 0xb23   :  { %5708 = vmatprep.subr.bf16.mxu0 %v7844_v42 }
 0xb26   :  { %5709 = vmatpush1.bf16.msra.mxu0 %v7842_v35 }
 0xb27   :  { %5710 = vmatprep.subr.bf16.mxu0 %v7847_v55 }
 0xb2a   :  { %5711 = vmatpush1.bf16.msra.mxu0 %v7845_v50 }
 0xb2b   :  { %5712 = vmatprep.subr.bf16.mxu0 %v7850_v56 }
 0xb2e   :  { %5713 = vmatpush1.bf16.msra.mxu0 %v7848_v57 }
 0xb2f   :  { %5714 = vmatprep.subr.bf16.mxu0 %v7853_v58 }
 0xb32   :  { %5715 = vmatpush1.bf16.msra.mxu0 %v7851_v39 }
 0xb33   :  { %5716 = vmatprep.subr.bf16.mxu0 %v7856_v59 }
 0xb36   :  { %5717 = vmatpush1.bf16.msra.mxu0 %v7854_v60  ;;  %v7897_v60 = vld [vmem:[#allocation6 + $0x470] sm:$0xff]  }
 0xb37   :  { %5718 = vmatprep.subr.bf16.mxu0 %v7859_v61  ;;  %v7898_v61 = vld [vmem:[#allocation6 + $0x478] sm:$0xff]  }
 0xb3a   :  { %5719 = vmatpush1.bf16.msra.mxu0 %v7857_v62 }
 0xb3b   :  { %5720 = vmatprep.subr.bf16.mxu0 %v7862_v63 }
 0xb3e   :  { %5721 = vmatpush1.bf16.msra.mxu0 %v7860_v1 }
 0xb3f   :  { %5722 = vmatprep.subr.bf16.mxu0 %v7865_v2 }
 0xb42   :  { %5723 = vmatpush1.bf16.msra.mxu0 %v7863_v3 }
 0xb43   :  { %5724 = vmatprep.subr.bf16.mxu0 %v7868_v4 }
 0xb46   :  { %5725 = vmatpush1.bf16.msra.mxu0 %v7866_v5 }
 0xb47   :  { %5726 = vmatprep.subr.bf16.mxu0 %v7871_v6  ;;  %v5930_v6 = vld [vmem:[#allocation2 + $0x67] ss:$0 sm:$0xff] }
 0xb4a   :  { %5727 = vmatpush1.bf16.msra.mxu0 %v7869_v7 }
 0xb4b   :  { %5728 = vmatprep.subr.bf16.mxu0 %v7874_v9 }
 0xb4e   :  { %5729 = vmatpush1.bf16.msra.mxu0 %v7872_v10 }
 0xb4f   :  { %6913 = vmatprep.subr.bf16.mxu0 %v8055_v37 }
 0xbe4   :  { %v5482_v29 = vpop.f32.mrb[52].mxu0 }
 0xbe5   :  { %v5483_v30 = vadd.f32 %v5482_v29, %v5281_v24  ;;  %v5484_v31 = vpop.f32.mrb[53].mxu0 }
 0xbe6   :  { %v5485_v32 = vadd.f32 %v5484_v31, %v5285_v28  ;;  %v5486_v33 = vpop.f32.mrb[54].mxu0 }
 0xbe7   :  { %v5489_v15 = vmax.f32 %v5483_v30, 0.0  ;;  %v5487_v34 = vpop.f32.mrb[55].mxu0 }
 0xbe8   :  { %v5490_v36 = vmax.f32 %v5485_v32, 0.0 }
 0xbe9   :  { %v5523_v40 = vpack.c.bf16 %v5489_v15, %v5489_v15 }
 0xbea   :  { %v5524_v38 = vpack.c.bf16 %v5490_v36, %v5490_v36 }
 0xbec   :  { %5730 = vmatprep.mubr.bf16.mxu0 %v5524_v38 }
 0xbed   :  { %5731 = vmatmul.mubr.bf16.vlgmr.msra.gmra.mrb[56].mxu0 %v5523_v40 }
 0xbee   :  { %6929 = vmatprep.mubr.msk.bf16.mxu0 %vm8056_vm0, %v8055_v37  ;;  %6914 = vmatpush3.bf16.msra.mxu0 %v7891_v46 }
 0xbef   :  { %6915 = vmatprep.subr.bf16.mxu0 %v8055_v37 }
 0xbf2   :  { %6916 = vmatpush3.bf16.msra.mxu0 %v7892_v47 }
 0xbf3   :  { %6917 = vmatprep.subr.bf16.mxu0 %v8055_v37 }
 0xbf6   :  { %6918 = vmatpush3.bf16.msra.mxu0 %v7893_v13 }
 0xbf7   :  { %6919 = vmatprep.subr.bf16.mxu0 %v8055_v37 }
 0xbfa   :  { %6920 = vmatpush3.bf16.msra.mxu0 %v7894_v0 }
 0xbfb   :  { %6921 = vmatprep.subr.bf16.mxu0 %v8055_v37 }
 0xbfe   :  { %6922 = vmatpush3.bf16.msra.mxu0 %v7895_v48 }
 0xbff   :  { %6923 = vmatprep.subr.bf16.mxu0 %v8055_v37 }
 0xc02   :  { %6924 = vmatpush3.bf16.msra.mxu0 %v7896_v49 }
 0xc03   :  { %6925 = vmatprep.subr.bf16.mxu0 %v8055_v37 }
 0xc06   :  { %6926 = vmatpush3.bf16.msra.mxu0 %v7897_v60 }
 0xc07   :  { %6927 = vmatprep.subr.bf16.mxu0 %v8055_v37 }
 0xc0a   :  { %6928 = vmatpush3.bf16.msra.mxu0 %v7898_v61 }
 0xcc0   :  { %v5732_v54 = vpop.f32.mrb[56].mxu0 }
 0xcc1   :  { %v5733_v42 = vadd.f32 %v5732_v54, %v5531_v52  ;;  %v5734_v35 = vpop.f32.mrb[57].mxu0 }
 0xcc2   :  { %v5735_v55 = vadd.f32 %v5734_v35, %v5535_v53  ;;  %v5736_v50 = vpop.f32.mrb[58].mxu0 }
 0xcc3   :  { %v5739_v56 = vmax.f32 %v5733_v42, 0.0  ;;  %v5737_v57 = vpop.f32.mrb[59].mxu0 }
 0xcc4   :  { %v5740_v58 = vmax.f32 %v5735_v55, 0.0 }
 0xcc5   :  { %v5773_v59 = vpack.c.bf16 %v5739_v56, %v5739_v56 }
 0xcc6   :  { %v5774_v39 = vpack.c.bf16 %v5740_v58, %v5740_v58 }
 0xcc8   :  { %5904 = vmatprep.mubr.bf16.mxu1 %v5774_v39 }
 0xcc9   :  { %5905 = vmatmul.mubr.bf16.vlgmr.msra.gmra.mrb[48].mxu1 %v5773_v59 }
 0xd9c   :  { %v6878_v11 = vpop.f32.mrb[48].mxu1 }
 0xd9d   :  { %v6879_v62 = vpop.f32.mrb[49].mxu1 }
 0xd9e   :  { %v6880_v63 = vadd.f32 %v6879_v62, %v6878_v11  ;;  %v6881_v1 = vpop.f32.mrb[50].mxu1 }
 0xd9f   :  { %v6882_v2 = vpop.f32.mrb[51].mxu1 }
 0xda0   :  { %v5907_v3 = vadd.f32 %v6880_v63, %v5775_v12 }
 0xda2   :  { %v5912_v4 = vmax.f32 %v5907_v3, 0.0 }
 0xda4   :  { %v5929_v5 = vpack.c.bf16 %v5912_v4, %v5912_v4 }
 0xda6   :  { %6930 = vmatmul.mubr.bf16.vlgmr.msra.gmra.mrb[60].mxu0 %v5929_v5 }
 0xe79   :  { %v6013_v7 = vpop.f32.mrb[60].mxu0 }
 0xe7a   :  { %v6014_v9 = vadd.f32 %v6013_v7, %v5930_v6  ;;  %v6931_v10 = vpop.f32.mrb[61].mxu0 }
 0xe7b   :  { %v6016_v16 = vpop.f32.mrb[62].mxu0 }
 0xe7c   :  { %6019 = vst [vmem:[%s8292_s7] sm:$0xff] %v6014_v9  ;;  %v6932_v37 = vpop.f32.mrb[63].mxu0 }
 0xe7d   :  { %6024 = vsyncpa [#allocation3], 1 }
 0xe7e   :  { %6025 = vsyncpa [#allocation5], 1 }
 0xe7f   :  { %6026 = vsyncpa [#allocation8], 1 }

</bundles_post_ra>
